<compile_context>
chip_gen: v7x
topology: tpu7x:2x2x1
jax: 0.10.0
libtpu: 0.0.40
codegen_flags: <defaults>
</compile_context>

<pallas_src>
import functools

import jax
import jax.numpy as jnp
import numpy as np
from jax import lax
from jax.experimental import pallas as pl
from jax.experimental.pallas import tpu as pltpu


def _bio_attention_kernel(scal_ref, w1t_ref, b1_ref, w2t_ref, b2_ref,
                          wm_ref, x_ref, out_ref, spad_ref, *,
                          Nb, H, W, K, PADF):
    """One batch block (Nb samples) per grid step.

    scal_ref: SMEM (2,)            [BN-folded conv bias, gamma]
    w1t_ref : VMEM (C, Cr)         transposed SE conv1 weight
    b1_ref  : VMEM (1, Cr)
    w2t_ref : VMEM (Cr, C)         transposed SE conv2 weight
    b2_ref  : VMEM (1, C)
    wm_ref  : VMEM (2*K*K, H*W)    weight x column-mask table (BN folded)
    x_ref   : VMEM (Nb, C, H*W)    lane-dense input slab
    out_ref : VMEM (Nb, C, H*W)
    spad_ref: VMEM (2, Nb, H*W + 2*PADF)  flat zero-padded [avg_c ; max_c]
    """
    HW = H * W
    P = K // 2

    x = x_ref[...]                                            # (Nb, C, HW) f32

    # ---------------- channel attention (squeeze-and-excite) ----------------
    # Two small MXU matmuls amortised over the batch block.
    pooled = jnp.mean(x, axis=2)                              # (Nb, C) global avg pool
    h = jnp.dot(pooled, w1t_ref[...],
                preferred_element_type=jnp.float32) + b1_ref[...]    # (Nb, Cr)
    h = jnp.maximum(h, 0.0)                                   # ReLU
    a = jnp.dot(h, w2t_ref[...],
                preferred_element_type=jnp.float32) + b2_ref[...]    # (Nb, C)
    ch_att = jax.nn.sigmoid(a)                                # (Nb, C)

    # ---------------- spatial attention ----------------
    avg_c = jnp.mean(x, axis=1)                               # (Nb, HW) mean over C
    max_c = jnp.max(x, axis=1)                                # (Nb, HW) max  over C

    # Zero only the halo (interior is fully overwritten every step).
    halo_zeros = jnp.zeros((2, Nb, PADF), jnp.float32)
    spad_ref[:, :, 0:PADF] = halo_zeros
    spad_ref[:, :, PADF + HW:] = halo_zeros
    spad_ref[0, :, PADF:PADF + HW] = avg_c
    spad_ref[1, :, PADF:PADF + HW] = max_c

    # 7x7 "same" cross-correlation over the 2 feature planes, fully unrolled.
    # Vertical out-of-range taps read the zero halo; horizontal wrap-around is
    # killed by the column masks that are pre-folded into wm_ref.
    acc = jnp.zeros((Nb, HW), jnp.float32)
    for ci in range(2):
        for di in range(K):
            for dj in range(K):
                k0 = PADF + (di - P) * W + (dj - P)           # static offset
                tap = (ci * K + di) * K + dj
                win = spad_ref[ci, :, k0:k0 + HW]             # (Nb, HW) vld-path slice
                acc = acc + wm_ref[tap:tap + 1, :] * win

    # BN (inference) folded into the weights; scal_ref[0] is the folded bias.
    sp_att = jax.nn.sigmoid(acc + scal_ref[0])                # (Nb, HW)

    # ---------------- residual modulation ----------------
    # out = x + gamma * (x * ch_att) * sp_att
    mod = (scal_ref[1] * ch_att)[:, :, None] * sp_att[:, None, :]   # (Nb, C, HW)
    out_ref[...] = (x + x * mod).astype(out_ref.dtype)


def _pick_batch_block(N, C, HW, *, vmem_budget_bytes=24 << 20):
    """Largest Nb that (a) divides N, (b) keeps ~8 tile copies (double-buffered
    in + out + live temporaries) under a conservative VMEM budget that fits the
    32 MiB scoped default on all generations (incl. v7x), and (c) leaves >= 4
    grid steps when the batch allows so both TensorCores keep their pipelines
    full under the "parallel" grid axis."""
    per_sample = C * HW * 4                     # f32 bytes for one (C, HW) plane
    nb = max(1, vmem_budget_bytes // (8 * per_sample))
    if N >= 4:
        nb = min(nb, N // 4)
    nb = max(1, min(nb, N))
    while N % nb:
        nb -= 1
    return nb


def biological_attention(x, params, *, reduction_ratio=8, K=7, eps=1e-5):
    """x: (N, C, H, W) float32. Returns the BiologicalAttention forward pass."""
    N, C, H, W = x.shape
    Cr = C // reduction_ratio
    HW = H * W
    P = K // 2

    # Lane-aligned flat halo (>= P*W + P, rounded up to a multiple of 128) so
    # the interior writes / loads stay lane-aligned.
    halo = P * W + P
    PADF = ((halo + 127) // 128) * 128

    # Fold inference-mode BatchNorm into the spatial conv (tiny wrapper-side op).
    bn_scale = params["bn_w"] / jnp.sqrt(params["bn_var"] + eps)            # (1,)
    w_sp_eff = (params["w_sp"].reshape(2, K, K) * bn_scale).astype(jnp.float32)
    b_sp_eff = (params["b_sp"] - params["bn_mean"]) * bn_scale + params["bn_b"]
    scal = jnp.concatenate([b_sp_eff, params["gamma"]]).astype(jnp.float32)  # (2,)

    # SE weights, transposed for (Nb, C) @ (C, Cr) and (Nb, Cr) @ (Cr, C) matmuls.
    w1t = params["w1"].reshape(Cr, C).T.astype(jnp.float32)                  # (C, Cr)
    b1 = params["b1"].reshape(1, Cr).astype(jnp.float32)
    w2t = params["w2"].reshape(C, Cr).T.astype(jnp.float32)                  # (Cr, C)
    b2 = params["b2"].reshape(1, C).astype(jnp.float32)

    # Column-validity masks for the flattened 7x7 conv, folded with the
    # (BN-scaled) conv weights into one VMEM table: wm[(ci*K+di)*K+dj, :].
    col = np.arange(HW, dtype=np.int64) % W
    masks_np = np.zeros((K, HW), np.float32)
    for dj in range(K):
        off = dj - P
        masks_np[dj] = ((col + off >= 0) & (col + off < W)).astype(np.float32)
    masks = jnp.asarray(masks_np)                                            # (K, HW)
    wm = (w_sp_eff[:, :, :, None] * masks[None, None, :, :]).reshape(2 * K * K, HW)
    wm = wm.astype(jnp.float32)

    x3 = x.reshape(N, C, HW)                                  # free contiguous reshape

    Nb = _pick_batch_block(N, C, HW)
    grid = (N // Nb,)

    kernel = functools.partial(
        _bio_attention_kernel, Nb=Nb, H=H, W=W, K=K, PADF=PADF
    )

    flops = int(N * (4 * K * K * HW + 8 * C * HW + 4 * C * Cr))
    transcendentals = int(N * (C + HW))
    bytes_accessed = int(2 * N * C * HW * 4 + (2 * K * K * HW + 2 * C * Cr + 2 * C) * 4)

    out = pl.pallas_call(
        kernel,
        out_shape=jax.ShapeDtypeStruct((N, C, HW), x.dtype),
        grid=grid,
        in_specs=[
            pl.BlockSpec(memory_space=pltpu.MemorySpace.SMEM),    # [conv bias, gamma]
            pl.BlockSpec((C, Cr), lambda g: (0, 0)),              # w1t
            pl.BlockSpec((1, Cr), lambda g: (0, 0)),              # b1
            pl.BlockSpec((Cr, C), lambda g: (0, 0)),              # w2t
            pl.BlockSpec((1, C), lambda g: (0, 0)),               # b2
            pl.BlockSpec((2 * K * K, HW), lambda g: (0, 0)),      # weight x mask table
            pl.BlockSpec((Nb, C, HW), lambda g: (g, 0, 0)),       # x (lane-dense)
        ],
        out_specs=pl.BlockSpec((Nb, C, HW), lambda g: (g, 0, 0)),
        scratch_shapes=[pltpu.VMEM((2, Nb, HW + 2 * PADF), jnp.float32)],
        compiler_params=pltpu.CompilerParams(
            dimension_semantics=("parallel",)
        ),
        cost_estimate=pl.CostEstimate(
            flops=flops,
            transcendentals=transcendentals,
            bytes_accessed=bytes_accessed,
        ),
    )(scal, w1t, b1, w2t, b2, wm, x3)

    return out.reshape(N, C, H, W)


def _reference(x, params, *, reduction_ratio=8, K=7, eps=1e-5):
    """Independent pure-JAX reference mirroring the PyTorch forward (BN in eval mode)."""
    N, C, H, W = x.shape

    pooled = jnp.mean(x, axis=(2, 3), keepdims=True)                     # (N,C,1,1)
    h = jnp.einsum("nchw,oc->nohw", pooled, params["w1"]) + params["b1"][None, :, None, None]
    h = jax.nn.relu(h)
    a = jnp.einsum("nchw,oc->nohw", h, params["w2"]) + params["b2"][None, :, None, None]
    ch_att = jax.nn.sigmoid(a)                                           # (N,C,1,1)

    feature_refined = x * ch_att

    avg_pool = jnp.mean(x, axis=1, keepdims=True)
    max_pool = jnp.max(x, axis=1, keepdims=True)
    sf = jnp.concatenate([avg_pool, max_pool], axis=1)                   # (N,2,H,W)
    conv = lax.conv_general_dilated(
        sf, params["w_sp"], window_strides=(1, 1),
        padding=[(K // 2, K // 2), (K // 2, K // 2)],
        dimension_numbers=("NCHW", "OIHW", "NCHW"),
    ) + params["b_sp"][None, :, None, None]
    bn = (conv - params["bn_mean"][None, :, None, None]) / jnp.sqrt(
        params["bn_var"][None, :, None, None] + eps
    ) * params["bn_w"][None, :, None, None] + params["bn_b"][None, :, None, None]
    sp_att = jax.nn.sigmoid(bn)                                          # (N,1,H,W)

    refined = feature_refined * sp_att
    return x + params["gamma"][0] * refined


if __name__ == "__main__":
    key = jax.random.PRNGKey(0)
    N, C, H, W = 2, 32, 16, 16          # reduction_ratio=8 requires C >= 8
    R, K = 8, 7
    Cr = C // R

    keys = jax.random.split(key, 7)
    x = jax.random.normal(keys[0], (N, C, H, W), dtype=jnp.float32)

    params = dict(
        w1=jax.random.normal(keys[1], (Cr, C), jnp.float32) * 0.1,         # Conv2d(C, C//r, 1)
        b1=jax.random.normal(keys[2], (Cr,), jnp.float32) * 0.1,
        w2=jax.random.normal(keys[3], (C, Cr), jnp.float32) * 0.1,         # Conv2d(C//r, C, 1)
        b2=jax.random.normal(keys[4], (C,), jnp.float32) * 0.1,
        w_sp=jax.random.normal(keys[5], (1, 2, K, K), jnp.float32) * 0.1,  # Conv2d(2,1,7,p=3)
        b_sp=jax.random.normal(keys[6], (1,), jnp.float32) * 0.1,
        bn_w=jnp.ones((1,), jnp.float32),      # BatchNorm2d(1) default init, eval mode
        bn_b=jnp.zeros((1,), jnp.float32),
        bn_mean=jnp.zeros((1,), jnp.float32),
        bn_var=jnp.ones((1,), jnp.float32),
        gamma=jnp.ones((1,), jnp.float32),     # nn.Parameter(torch.ones(1))
    )

    out = jax.block_until_ready(biological_attention(x, params, reduction_ratio=R, K=K))
    ref = jax.block_until_ready(_reference(x, params, reduction_ratio=R, K=K))

    assert out.shape == (N, C, H, W)
    np.testing.assert_allclose(np.asarray(out), np.asarray(ref), rtol=1e-4, atol=1e-5)

    print("KERNEL_OK")
</pallas_src>

<mosaic_0001>
module attributes {stable_mosaic.version = 11 : i64} {
  func.func @_bio_attention_kernel(%arg0: i32, %arg1: memref<2xf32, #tpu.memory_space<smem>>, %arg2: memref<32x4xf32, #tpu.memory_space<vmem>>, %arg3: memref<1x4xf32, #tpu.memory_space<vmem>>, %arg4: memref<4x32xf32, #tpu.memory_space<vmem>>, %arg5: memref<1x32xf32, #tpu.memory_space<vmem>>, %arg6: memref<98x256xf32, #tpu.memory_space<vmem>>, %arg7: memref<2x32x256xf32, #tpu.memory_space<vmem>>, %arg8: memref<2x32x256xf32, #tpu.memory_space<vmem>>, %arg9: memref<2x2x512xf32, #tpu.memory_space<vmem>>) attributes {dimension_semantics = [#tpu.dimension_semantics<parallel>], iteration_bounds = array<i64: 1>, scalar_prefetch = 0 : i64, scratch_operands = 1 : i64, tpu.core_type = #tpu.core_type<tc>, window_params = [{transform_indices = @transform_0, window_bounds = array<i64: 2>}, {pipeline_mode = #tpu.pipeline_mode<synchronous>, transform_indices = @transform_1, window_bounds = array<i64: 32, 4>}, {pipeline_mode = #tpu.pipeline_mode<synchronous>, transform_indices = @transform_2, window_bounds = array<i64: 1, 4>}, {pipeline_mode = #tpu.pipeline_mode<synchronous>, transform_indices = @transform_3, window_bounds = array<i64: 4, 32>}, {pipeline_mode = #tpu.pipeline_mode<synchronous>, transform_indices = @transform_4, window_bounds = array<i64: 1, 32>}, {pipeline_mode = #tpu.pipeline_mode<synchronous>, transform_indices = @transform_5, window_bounds = array<i64: 98, 256>}, {transform_indices = @transform_6, window_bounds = array<i64: 2, 32, 256>}, {transform_indices = @transform_7, window_bounds = array<i64: 2, 32, 256>}]} {
    %c0 = arith.constant 0 : index
    %c0_0 = arith.constant 0 : index
    %c0_1 = arith.constant 0 : index
    %0 = vector.load %arg7[%c0, %c0_0, %c0_1] : memref<2x32x256xf32, #tpu.memory_space<vmem>>, vector<2x32x256xf32>
    %cst = arith.constant dense<0.000000e+00> : vector<2x32xf32>
    %1 = vector.multi_reduction <add>, %0, %cst [2] : vector<2x32x256xf32> to vector<2x32xf32>
    %cst_2 = arith.constant 2.560000e+02 : f32
    %2 = vector.broadcast %cst_2 : f32 to vector<2x32xf32>
    %3 = arith.divf %1, %2 : vector<2x32xf32>
    %c0_3 = arith.constant 0 : index
    %c0_4 = arith.constant 0 : index
    %4 = vector.load %arg2[%c0_3, %c0_4] : memref<32x4xf32, #tpu.memory_space<vmem>>, vector<32x4xf32>
    %cst_5 = arith.constant dense<0.000000e+00> : vector<2x4xf32>
    %5 = tpu.matmul %3, %4, %cst_5 {dimension_numbers = #tpu.dot_dimension_numbers<[1], [0], [0], [1], [0, 0, 1, 1], [], []>} : vector<2x32xf32>, vector<32x4xf32>, vector<2x4xf32> -> vector<2x4xf32>
    %c0_6 = arith.constant 0 : index
    %c0_7 = arith.constant 0 : index
    %6 = vector.load %arg3[%c0_6, %c0_7] : memref<1x4xf32, #tpu.memory_space<vmem>>, vector<1x4xf32>
    %7 = vector.broadcast %6 : vector<1x4xf32> to vector<2x4xf32>
    %8 = arith.addf %5, %7 : vector<2x4xf32>
    %cst_8 = arith.constant 0.000000e+00 : f32
    %9 = vector.broadcast %cst_8 : f32 to vector<2x4xf32>
    %10 = arith.maximumf %8, %9 : vector<2x4xf32>
    %c0_9 = arith.constant 0 : index
    %c0_10 = arith.constant 0 : index
    %11 = vector.load %arg4[%c0_9, %c0_10] : memref<4x32xf32, #tpu.memory_space<vmem>>, vector<4x32xf32>
    %cst_11 = arith.constant dense<0.000000e+00> : vector<2x32xf32>
    %12 = tpu.matmul %10, %11, %cst_11 {dimension_numbers = #tpu.dot_dimension_numbers<[1], [0], [0], [1], [0, 0, 1, 1], [], []>} : vector<2x4xf32>, vector<4x32xf32>, vector<2x32xf32> -> vector<2x32xf32>
    %c0_12 = arith.constant 0 : index
    %c0_13 = arith.constant 0 : index
    %13 = vector.load %arg5[%c0_12, %c0_13] : memref<1x32xf32, #tpu.memory_space<vmem>>, vector<1x32xf32>
    %14 = vector.broadcast %13 : vector<1x32xf32> to vector<2x32xf32>
    %15 = arith.addf %12, %14 : vector<2x32xf32>
    %16 = arith.negf %15 : vector<2x32xf32>
    %17 = math.exp %16 : vector<2x32xf32>
    %cst_14 = arith.constant 1.000000e+00 : f32
    %18 = vector.broadcast %cst_14 : f32 to vector<2x32xf32>
    %19 = arith.addf %18, %17 : vector<2x32xf32>
    %20 = arith.divf %18, %19 : vector<2x32xf32>
    %cst_15 = arith.constant dense<0.000000e+00> : vector<2x256xf32>
    %21 = vector.multi_reduction <add>, %0, %cst_15 [1] : vector<2x32x256xf32> to vector<2x256xf32>
    %cst_16 = arith.constant 3.200000e+01 : f32
    %22 = vector.broadcast %cst_16 : f32 to vector<2x256xf32>
    %23 = arith.divf %21, %22 : vector<2x256xf32>
    %cst_17 = arith.constant dense<0xFF800000> : vector<2x256xf32>
    %24 = vector.multi_reduction <maximumf>, %0, %cst_17 [1] : vector<2x32x256xf32> to vector<2x256xf32>
    %cst_18 = arith.constant 0.000000e+00 : f32
    %25 = vector.broadcast %cst_18 : f32 to vector<2x2x128xf32>
    %c0_19 = arith.constant 0 : index
    %c0_20 = arith.constant 0 : index
    %c0_21 = arith.constant 0 : index
    %26 = vector.load %arg9[%c0_19, %c0_20, %c0_21] : memref<2x2x512xf32, #tpu.memory_space<vmem>>, vector<2x2x128xf32>
    tpu.vector_store %arg9[%c0_19, %c0_20, %c0_21], %25 {strides = array<i32>} : memref<2x2x512xf32, #tpu.memory_space<vmem>>, vector<2x2x128xf32>,
    %c0_22 = arith.constant 0 : index
    %c0_23 = arith.constant 0 : index
    %c384 = arith.constant 384 : index
    %27 = vector.load %arg9[%c0_22, %c0_23, %c384] : memref<2x2x512xf32, #tpu.memory_space<vmem>>, vector<2x2x128xf32>
    tpu.vector_store %arg9[%c0_22, %c0_23, %c384], %25 {strides = array<i32>} : memref<2x2x512xf32, #tpu.memory_space<vmem>>, vector<2x2x128xf32>,
    %c0_24 = arith.constant 0 : index
    %c0_25 = arith.constant 0 : index
    %c128 = arith.constant 128 : index
    %28 = vector.load %arg9[%c0_24, %c0_25, %c128] : memref<2x2x512xf32, #tpu.memory_space<vmem>>, vector<1x2x256xf32>
    %29 = vector.shape_cast %28 : vector<1x2x256xf32> to vector<2x256xf32>
    %30 = vector.shape_cast %23 : vector<2x256xf32> to vector<1x2x256xf32>
    tpu.vector_store %arg9[%c0_24, %c0_25, %c128], %30 {strides = array<i32>} : memref<2x2x512xf32, #tpu.memory_space<vmem>>, vector<1x2x256xf32>,
    %c1 = arith.constant 1 : index
    %c0_26 = arith.constant 0 : index
    %c128_27 = arith.constant 128 : index
    %31 = vector.load %arg9[%c1, %c0_26, %c128_27] : memref<2x2x512xf32, #tpu.memory_space<vmem>>, vector<1x2x256xf32>
    %32 = vector.shape_cast %31 : vector<1x2x256xf32> to vector<2x256xf32>
    %33 = vector.shape_cast %24 : vector<2x256xf32> to vector<1x2x256xf32>
    tpu.vector_store %arg9[%c1, %c0_26, %c128_27], %33 {strides = array<i32>} : memref<2x2x512xf32, #tpu.memory_space<vmem>>, vector<1x2x256xf32>,
    %cst_28 = arith.constant 0.000000e+00 : f32
    %34 = vector.broadcast %cst_28 : f32 to vector<2x256xf32>
    %c0_29 = arith.constant 0 : index
    %c0_30 = arith.constant 0 : index
    %c77 = arith.constant 77 : index
    %35 = vector.load %arg9[%c0_29, %c0_30, %c77] : memref<2x2x512xf32, #tpu.memory_space<vmem>>, vector<1x2x256xf32>
    %36 = vector.shape_cast %35 : vector<1x2x256xf32> to vector<2x256xf32>
    %c0_31 = arith.constant 0 : index
    %c0_32 = arith.constant 0 : index
    %37 = vector.load %arg6[%c0_31, %c0_32] : memref<98x256xf32, #tpu.memory_space<vmem>>, vector<1x256xf32>
    %38 = vector.broadcast %37 : vector<1x256xf32> to vector<2x256xf32>
    %39 = arith.mulf %38, %36 : vector<2x256xf32>
    %40 = arith.addf %34, %39 : vector<2x256xf32>
    %c0_33 = arith.constant 0 : index
    %c0_34 = arith.constant 0 : index
    %c78 = arith.constant 78 : index
    %41 = vector.load %arg9[%c0_33, %c0_34, %c78] : memref<2x2x512xf32, #tpu.memory_space<vmem>>, vector<1x2x256xf32>
    %42 = vector.shape_cast %41 : vector<1x2x256xf32> to vector<2x256xf32>
    %c1_35 = arith.constant 1 : index
    %c0_36 = arith.constant 0 : index
    %43 = vector.load %arg6[%c1_35, %c0_36] : memref<98x256xf32, #tpu.memory_space<vmem>>, vector<1x256xf32>
    %44 = vector.broadcast %43 : vector<1x256xf32> to vector<2x256xf32>
    %45 = arith.mulf %44, %42 : vector<2x256xf32>
    %46 = arith.addf %40, %45 : vector<2x256xf32>
    %c0_37 = arith.constant 0 : index
    %c0_38 = arith.constant 0 : index
    %c79 = arith.constant 79 : index
    %47 = vector.load %arg9[%c0_37, %c0_38, %c79] : memref<2x2x512xf32, #tpu.memory_space<vmem>>, vector<1x2x256xf32>
    %48 = vector.shape_cast %47 : vector<1x2x256xf32> to vector<2x256xf32>
    %c2 = arith.constant 2 : index
    %c0_39 = arith.constant 0 : index
    %49 = vector.load %arg6[%c2, %c0_39] : memref<98x256xf32, #tpu.memory_space<vmem>>, vector<1x256xf32>
    %50 = vector.broadcast %49 : vector<1x256xf32> to vector<2x256xf32>
    %51 = arith.mulf %50, %48 : vector<2x256xf32>
    %52 = arith.addf %46, %51 : vector<2x256xf32>
    %c0_40 = arith.constant 0 : index
    %c0_41 = arith.constant 0 : index
    %c80 = arith.constant 80 : index
    %53 = vector.load %arg9[%c0_40, %c0_41, %c80] : memref<2x2x512xf32, #tpu.memory_space<vmem>>, vector<1x2x256xf32>
    %54 = vector.shape_cast %53 : vector<1x2x256xf32> to vector<2x256xf32>
    %c3 = arith.constant 3 : index
    %c0_42 = arith.constant 0 : index
    %55 = vector.load %arg6[%c3, %c0_42] : memref<98x256xf32, #tpu.memory_space<vmem>>, vector<1x256xf32>
    %56 = vector.broadcast %55 : vector<1x256xf32> to vector<2x256xf32>
    %57 = arith.mulf %56, %54 : vector<2x256xf32>
    %58 = arith.addf %52, %57 : vector<2x256xf32>
    %c0_43 = arith.constant 0 : index
    %c0_44 = arith.constant 0 : index
    %c81 = arith.constant 81 : index
    %59 = vector.load %arg9[%c0_43, %c0_44, %c81] : memref<2x2x512xf32, #tpu.memory_space<vmem>>, vector<1x2x256xf32>
    %60 = vector.shape_cast %59 : vector<1x2x256xf32> to vector<2x256xf32>
    %c4 = arith.constant 4 : index
    %c0_45 = arith.constant 0 : index
    %61 = vector.load %arg6[%c4, %c0_45] : memref<98x256xf32, #tpu.memory_space<vmem>>, vector<1x256xf32>
    %62 = vector.broadcast %61 : vector<1x256xf32> to vector<2x256xf32>
    %63 = arith.mulf %62, %60 : vector<2x256xf32>
    %64 = arith.addf %58, %63 : vector<2x256xf32>
    %c0_46 = arith.constant 0 : index
    %c0_47 = arith.constant 0 : index
    %c82 = arith.constant 82 : index
    %65 = vector.load %arg9[%c0_46, %c0_47, %c82] : memref<2x2x512xf32, #tpu.memory_space<vmem>>, vector<1x2x256xf32>
    %66 = vector.shape_cast %65 : vector<1x2x256xf32> to vector<2x256xf32>
    %c5 = arith.constant 5 : index
    %c0_48 = arith.constant 0 : index
    %67 = vector.load %arg6[%c5, %c0_48] : memref<98x256xf32, #tpu.memory_space<vmem>>, vector<1x256xf32>
    %68 = vector.broadcast %67 : vector<1x256xf32> to vector<2x256xf32>
    %69 = arith.mulf %68, %66 : vector<2x256xf32>
    %70 = arith.addf %64, %69 : vector<2x256xf32>
    %c0_49 = arith.constant 0 : index
    %c0_50 = arith.constant 0 : index
    %c83 = arith.constant 83 : index
    %71 = vector.load %arg9[%c0_49, %c0_50, %c83] : memref<2x2x512xf32, #tpu.memory_space<vmem>>, vector<1x2x256xf32>
    %72 = vector.shape_cast %71 : vector<1x2x256xf32> to vector<2x256xf32>
    %c6 = arith.constant 6 : index
    %c0_51 = arith.constant 0 : index
    %73 = vector.load %arg6[%c6, %c0_51] : memref<98x256xf32, #tpu.memory_space<vmem>>, vector<1x256xf32>
    %74 = vector.broadcast %73 : vector<1x256xf32> to vector<2x256xf32>
    %75 = arith.mulf %74, %72 : vector<2x256xf32>
    %76 = arith.addf %70, %75 : vector<2x256xf32>
    %c0_52 = arith.constant 0 : index
    %c0_53 = arith.constant 0 : index
    %c93 = arith.constant 93 : index
    %77 = vector.load %arg9[%c0_52, %c0_53, %c93] : memref<2x2x512xf32, #tpu.memory_space<vmem>>, vector<1x2x256xf32>
    %78 = vector.shape_cast %77 : vector<1x2x256xf32> to vector<2x256xf32>
    %c7 = arith.constant 7 : index
    %c0_54 = arith.constant 0 : index
    %79 = vector.load %arg6[%c7, %c0_54] : memref<98x256xf32, #tpu.memory_space<vmem>>, vector<1x256xf32>
    %80 = vector.broadcast %79 : vector<1x256xf32> to vector<2x256xf32>
    %81 = arith.mulf %80, %78 : vector<2x256xf32>
    %82 = arith.addf %76, %81 : vector<2x256xf32>
    %c0_55 = arith.constant 0 : index
    %c0_56 = arith.constant 0 : index
    %c94 = arith.constant 94 : index
    %83 = vector.load %arg9[%c0_55, %c0_56, %c94] : memref<2x2x512xf32, #tpu.memory_space<vmem>>, vector<1x2x256xf32>
    %84 = vector.shape_cast %83 : vector<1x2x256xf32> to vector<2x256xf32>
    %c8 = arith.constant 8 : index
    %c0_57 = arith.constant 0 : index
    %85 = vector.load %arg6[%c8, %c0_57] : memref<98x256xf32, #tpu.memory_space<vmem>>, vector<1x256xf32>
    %86 = vector.broadcast %85 : vector<1x256xf32> to vector<2x256xf32>
    %87 = arith.mulf %86, %84 : vector<2x256xf32>
    %88 = arith.addf %82, %87 : vector<2x256xf32>
    %c0_58 = arith.constant 0 : index
    %c0_59 = arith.constant 0 : index
    %c95 = arith.constant 95 : index
    %89 = vector.load %arg9[%c0_58, %c0_59, %c95] : memref<2x2x512xf32, #tpu.memory_space<vmem>>, vector<1x2x256xf32>
    %90 = vector.shape_cast %89 : vector<1x2x256xf32> to vector<2x256xf32>
    %c9 = arith.constant 9 : index
    %c0_60 = arith.constant 0 : index
    %91 = vector.load %arg6[%c9, %c0_60] : memref<98x256xf32, #tpu.memory_space<vmem>>, vector<1x256xf32>
    %92 = vector.broadcast %91 : vector<1x256xf32> to vector<2x256xf32>
    %93 = arith.mulf %92, %90 : vector<2x256xf32>
    %94 = arith.addf %88, %93 : vector<2x256xf32>
    %c0_61 = arith.constant 0 : index
    %c0_62 = arith.constant 0 : index
    %c96 = arith.constant 96 : index
    %95 = vector.load %arg9[%c0_61, %c0_62, %c96] : memref<2x2x512xf32, #tpu.memory_space<vmem>>, vector<1x2x256xf32>
    %96 = vector.shape_cast %95 : vector<1x2x256xf32> to vector<2x256xf32>
    %c10 = arith.constant 10 : index
    %c0_63 = arith.constant 0 : index
    %97 = vector.load %arg6[%c10, %c0_63] : memref<98x256xf32, #tpu.memory_space<vmem>>, vector<1x256xf32>
    %98 = vector.broadcast %97 : vector<1x256xf32> to vector<2x256xf32>
    %99 = arith.mulf %98, %96 : vector<2x256xf32>
    %100 = arith.addf %94, %99 : vector<2x256xf32>
    %c0_64 = arith.constant 0 : index
    %c0_65 = arith.constant 0 : index
    %c97 = arith.constant 97 : index
    %101 = vector.load %arg9[%c0_64, %c0_65, %c97] : memref<2x2x512xf32, #tpu.memory_space<vmem>>, vector<1x2x256xf32>
    %102 = vector.shape_cast %101 : vector<1x2x256xf32> to vector<2x256xf32>
    %c11 = arith.constant 11 : index
    %c0_66 = arith.constant 0 : index
    %103 = vector.load %arg6[%c11, %c0_66] : memref<98x256xf32, #tpu.memory_space<vmem>>, vector<1x256xf32>
    %104 = vector.broadcast %103 : vector<1x256xf32> to vector<2x256xf32>
    %105 = arith.mulf %104, %102 : vector<2x256xf32>
    %106 = arith.addf %100, %105 : vector<2x256xf32>
    %c0_67 = arith.constant 0 : index
    %c0_68 = arith.constant 0 : index
    %c98 = arith.constant 98 : index
    %107 = vector.load %arg9[%c0_67, %c0_68, %c98] : memref<2x2x512xf32, #tpu.memory_space<vmem>>, vector<1x2x256xf32>
    %108 = vector.shape_cast %107 : vector<1x2x256xf32> to vector<2x256xf32>
    %c12 = arith.constant 12 : index
    %c0_69 = arith.constant 0 : index
    %109 = vector.load %arg6[%c12, %c0_69] : memref<98x256xf32, #tpu.memory_space<vmem>>, vector<1x256xf32>
    %110 = vector.broadcast %109 : vector<1x256xf32> to vector<2x256xf32>
    %111 = arith.mulf %110, %108 : vector<2x256xf32>
    %112 = arith.addf %106, %111 : vector<2x256xf32>
    %c0_70 = arith.constant 0 : index
    %c0_71 = arith.constant 0 : index
    %c99 = arith.constant 99 : index
    %113 = vector.load %arg9[%c0_70, %c0_71, %c99] : memref<2x2x512xf32, #tpu.memory_space<vmem>>, vector<1x2x256xf32>
    %114 = vector.shape_cast %113 : vector<1x2x256xf32> to vector<2x256xf32>
    %c13 = arith.constant 13 : index
    %c0_72 = arith.constant 0 : index
    %115 = vector.load %arg6[%c13, %c0_72] : memref<98x256xf32, #tpu.memory_space<vmem>>, vector<1x256xf32>
    %116 = vector.broadcast %115 : vector<1x256xf32> to vector<2x256xf32>
    %117 = arith.mulf %116, %114 : vector<2x256xf32>
    %118 = arith.addf %112, %117 : vector<2x256xf32>
    %c0_73 = arith.constant 0 : index
    %c0_74 = arith.constant 0 : index
    %c109 = arith.constant 109 : index
    %119 = vector.load %arg9[%c0_73, %c0_74, %c109] : memref<2x2x512xf32, #tpu.memory_space<vmem>>, vector<1x2x256xf32>
    %120 = vector.shape_cast %119 : vector<1x2x256xf32> to vector<2x256xf32>
    %c14 = arith.constant 14 : index
    %c0_75 = arith.constant 0 : index
    %121 = vector.load %arg6[%c14, %c0_75] : memref<98x256xf32, #tpu.memory_space<vmem>>, vector<1x256xf32>
    %122 = vector.broadcast %121 : vector<1x256xf32> to vector<2x256xf32>
    %123 = arith.mulf %122, %120 : vector<2x256xf32>
    %124 = arith.addf %118, %123 : vector<2x256xf32>
    %c0_76 = arith.constant 0 : index
    %c0_77 = arith.constant 0 : index
    %c110 = arith.constant 110 : index
    %125 = vector.load %arg9[%c0_76, %c0_77, %c110] : memref<2x2x512xf32, #tpu.memory_space<vmem>>, vector<1x2x256xf32>
    %126 = vector.shape_cast %125 : vector<1x2x256xf32> to vector<2x256xf32>
    %c15 = arith.constant 15 : index
    %c0_78 = arith.constant 0 : index
    %127 = vector.load %arg6[%c15, %c0_78] : memref<98x256xf32, #tpu.memory_space<vmem>>, vector<1x256xf32>
    %128 = vector.broadcast %127 : vector<1x256xf32> to vector<2x256xf32>
    %129 = arith.mulf %128, %126 : vector<2x256xf32>
    %130 = arith.addf %124, %129 : vector<2x256xf32>
    %c0_79 = arith.constant 0 : index
    %c0_80 = arith.constant 0 : index
    %c111 = arith.constant 111 : index
    %131 = vector.load %arg9[%c0_79, %c0_80, %c111] : memref<2x2x512xf32, #tpu.memory_space<vmem>>, vector<1x2x256xf32>
    %132 = vector.shape_cast %131 : vector<1x2x256xf32> to vector<2x256xf32>
    %c16 = arith.constant 16 : index
    %c0_81 = arith.constant 0 : index
    %133 = vector.load %arg6[%c16, %c0_81] : memref<98x256xf32, #tpu.memory_space<vmem>>, vector<1x256xf32>
    %134 = vector.broadcast %133 : vector<1x256xf32> to vector<2x256xf32>
    %135 = arith.mulf %134, %132 : vector<2x256xf32>
    %136 = arith.addf %130, %135 : vector<2x256xf32>
    %c0_82 = arith.constant 0 : index
    %c0_83 = arith.constant 0 : index
    %c112 = arith.constant 112 : index
    %137 = vector.load %arg9[%c0_82, %c0_83, %c112] : memref<2x2x512xf32, #tpu.memory_space<vmem>>, vector<1x2x256xf32>
    %138 = vector.shape_cast %137 : vector<1x2x256xf32> to vector<2x256xf32>
    %c17 = arith.constant 17 : index
    %c0_84 = arith.constant 0 : index
    %139 = vector.load %arg6[%c17, %c0_84] : memref<98x256xf32, #tpu.memory_space<vmem>>, vector<1x256xf32>
    %140 = vector.broadcast %139 : vector<1x256xf32> to vector<2x256xf32>
    %141 = arith.mulf %140, %138 : vector<2x256xf32>
    %142 = arith.addf %136, %141 : vector<2x256xf32>
    %c0_85 = arith.constant 0 : index
    %c0_86 = arith.constant 0 : index
    %c113 = arith.constant 113 : index
    %143 = vector.load %arg9[%c0_85, %c0_86, %c113] : memref<2x2x512xf32, #tpu.memory_space<vmem>>, vector<1x2x256xf32>
    %144 = vector.shape_cast %143 : vector<1x2x256xf32> to vector<2x256xf32>
    %c18 = arith.constant 18 : index
    %c0_87 = arith.constant 0 : index
    %145 = vector.load %arg6[%c18, %c0_87] : memref<98x256xf32, #tpu.memory_space<vmem>>, vector<1x256xf32>
    %146 = vector.broadcast %145 : vector<1x256xf32> to vector<2x256xf32>
    %147 = arith.mulf %146, %144 : vector<2x256xf32>
    %148 = arith.addf %142, %147 : vector<2x256xf32>
    %c0_88 = arith.constant 0 : index
    %c0_89 = arith.constant 0 : index
    %c114 = arith.constant 114 : index
    %149 = vector.load %arg9[%c0_88, %c0_89, %c114] : memref<2x2x512xf32, #tpu.memory_space<vmem>>, vector<1x2x256xf32>
    %150 = vector.shape_cast %149 : vector<1x2x256xf32> to vector<2x256xf32>
    %c19 = arith.constant 19 : index
    %c0_90 = arith.constant 0 : index
    %151 = vector.load %arg6[%c19, %c0_90] : memref<98x256xf32, #tpu.memory_space<vmem>>, vector<1x256xf32>
    %152 = vector.broadcast %151 : vector<1x256xf32> to vector<2x256xf32>
    %153 = arith.mulf %152, %150 : vector<2x256xf32>
    %154 = arith.addf %148, %153 : vector<2x256xf32>
    %c0_91 = arith.constant 0 : index
    %c0_92 = arith.constant 0 : index
    %c115 = arith.constant 115 : index
    %155 = vector.load %arg9[%c0_91, %c0_92, %c115] : memref<2x2x512xf32, #tpu.memory_space<vmem>>, vector<1x2x256xf32>
    %156 = vector.shape_cast %155 : vector<1x2x256xf32> to vector<2x256xf32>
    %c20 = arith.constant 20 : index
    %c0_93 = arith.constant 0 : index
    %157 = vector.load %arg6[%c20, %c0_93] : memref<98x256xf32, #tpu.memory_space<vmem>>, vector<1x256xf32>
    %158 = vector.broadcast %157 : vector<1x256xf32> to vector<2x256xf32>
    %159 = arith.mulf %158, %156 : vector<2x256xf32>
    %160 = arith.addf %154, %159 : vector<2x256xf32>
    %c0_94 = arith.constant 0 : index
    %c0_95 = arith.constant 0 : index
    %c125 = arith.constant 125 : index
    %161 = vector.load %arg9[%c0_94, %c0_95, %c125] : memref<2x2x512xf32, #tpu.memory_space<vmem>>, vector<1x2x256xf32>
    %162 = vector.shape_cast %161 : vector<1x2x256xf32> to vector<2x256xf32>
    %c21 = arith.constant 21 : index
    %c0_96 = arith.constant 0 : index
    %163 = vector.load %arg6[%c21, %c0_96] : memref<98x256xf32, #tpu.memory_space<vmem>>, vector<1x256xf32>
    %164 = vector.broadcast %163 : vector<1x256xf32> to vector<2x256xf32>
    %165 = arith.mulf %164, %162 : vector<2x256xf32>
    %166 = arith.addf %160, %165 : vector<2x256xf32>
    %c0_97 = arith.constant 0 : index
    %c0_98 = arith.constant 0 : index
    %c126 = arith.constant 126 : index
    %167 = vector.load %arg9[%c0_97, %c0_98, %c126] : memref<2x2x512xf32, #tpu.memory_space<vmem>>, vector<1x2x256xf32>
    %168 = vector.shape_cast %167 : vector<1x2x256xf32> to vector<2x256xf32>
    %c22 = arith.constant 22 : index
    %c0_99 = arith.constant 0 : index
    %169 = vector.load %arg6[%c22, %c0_99] : memref<98x256xf32, #tpu.memory_space<vmem>>, vector<1x256xf32>
    %170 = vector.broadcast %169 : vector<1x256xf32> to vector<2x256xf32>
    %171 = arith.mulf %170, %168 : vector<2x256xf32>
    %172 = arith.addf %166, %171 : vector<2x256xf32>
    %c0_100 = arith.constant 0 : index
    %c0_101 = arith.constant 0 : index
    %c127 = arith.constant 127 : index
    %173 = vector.load %arg9[%c0_100, %c0_101, %c127] : memref<2x2x512xf32, #tpu.memory_space<vmem>>, vector<1x2x256xf32>
    %174 = vector.shape_cast %173 : vector<1x2x256xf32> to vector<2x256xf32>
    %c23 = arith.constant 23 : index
    %c0_102 = arith.constant 0 : index
    %175 = vector.load %arg6[%c23, %c0_102] : memref<98x256xf32, #tpu.memory_space<vmem>>, vector<1x256xf32>
    %176 = vector.broadcast %175 : vector<1x256xf32> to vector<2x256xf32>
    %177 = arith.mulf %176, %174 : vector<2x256xf32>
    %178 = arith.addf %172, %177 : vector<2x256xf32>
    %c0_103 = arith.constant 0 : index
    %c0_104 = arith.constant 0 : index
    %c128_105 = arith.constant 128 : index
    %179 = vector.load %arg9[%c0_103, %c0_104, %c128_105] : memref<2x2x512xf32, #tpu.memory_space<vmem>>, vector<1x2x256xf32>
    %180 = vector.shape_cast %179 : vector<1x2x256xf32> to vector<2x256xf32>
    %c24 = arith.constant 24 : index
    %c0_106 = arith.constant 0 : index
    %181 = vector.load %arg6[%c24, %c0_106] : memref<98x256xf32, #tpu.memory_space<vmem>>, vector<1x256xf32>
    %182 = vector.broadcast %181 : vector<1x256xf32> to vector<2x256xf32>
    %183 = arith.mulf %182, %180 : vector<2x256xf32>
    %184 = arith.addf %178, %183 : vector<2x256xf32>
    %c0_107 = arith.constant 0 : index
    %c0_108 = arith.constant 0 : index
    %c129 = arith.constant 129 : index
    %185 = vector.load %arg9[%c0_107, %c0_108, %c129] : memref<2x2x512xf32, #tpu.memory_space<vmem>>, vector<1x2x256xf32>
    %186 = vector.shape_cast %185 : vector<1x2x256xf32> to vector<2x256xf32>
    %c25 = arith.constant 25 : index
    %c0_109 = arith.constant 0 : index
    %187 = vector.load %arg6[%c25, %c0_109] : memref<98x256xf32, #tpu.memory_space<vmem>>, vector<1x256xf32>
    %188 = vector.broadcast %187 : vector<1x256xf32> to vector<2x256xf32>
    %189 = arith.mulf %188, %186 : vector<2x256xf32>
    %190 = arith.addf %184, %189 : vector<2x256xf32>
    %c0_110 = arith.constant 0 : index
    %c0_111 = arith.constant 0 : index
    %c130 = arith.constant 130 : index
    %191 = vector.load %arg9[%c0_110, %c0_111, %c130] : memref<2x2x512xf32, #tpu.memory_space<vmem>>, vector<1x2x256xf32>
    %192 = vector.shape_cast %191 : vector<1x2x256xf32> to vector<2x256xf32>
    %c26 = arith.constant 26 : index
    %c0_112 = arith.constant 0 : index
    %193 = vector.load %arg6[%c26, %c0_112] : memref<98x256xf32, #tpu.memory_space<vmem>>, vector<1x256xf32>
    %194 = vector.broadcast %193 : vector<1x256xf32> to vector<2x256xf32>
    %195 = arith.mulf %194, %192 : vector<2x256xf32>
    %196 = arith.addf %190, %195 : vector<2x256xf32>
    %c0_113 = arith.constant 0 : index
    %c0_114 = arith.constant 0 : index
    %c131 = arith.constant 131 : index
    %197 = vector.load %arg9[%c0_113, %c0_114, %c131] : memref<2x2x512xf32, #tpu.memory_space<vmem>>, vector<1x2x256xf32>
    %198 = vector.shape_cast %197 : vector<1x2x256xf32> to vector<2x256xf32>
    %c27 = arith.constant 27 : index
    %c0_115 = arith.constant 0 : index
    %199 = vector.load %arg6[%c27, %c0_115] : memref<98x256xf32, #tpu.memory_space<vmem>>, vector<1x256xf32>
    %200 = vector.broadcast %199 : vector<1x256xf32> to vector<2x256xf32>
    %201 = arith.mulf %200, %198 : vector<2x256xf32>
    %202 = arith.addf %196, %201 : vector<2x256xf32>
    %c0_116 = arith.constant 0 : index
    %c0_117 = arith.constant 0 : index
    %c141 = arith.constant 141 : index
    %203 = vector.load %arg9[%c0_116, %c0_117, %c141] : memref<2x2x512xf32, #tpu.memory_space<vmem>>, vector<1x2x256xf32>
    %204 = vector.shape_cast %203 : vector<1x2x256xf32> to vector<2x256xf32>
    %c28 = arith.constant 28 : index
    %c0_118 = arith.constant 0 : index
    %205 = vector.load %arg6[%c28, %c0_118] : memref<98x256xf32, #tpu.memory_space<vmem>>, vector<1x256xf32>
    %206 = vector.broadcast %205 : vector<1x256xf32> to vector<2x256xf32>
    %207 = arith.mulf %206, %204 : vector<2x256xf32>
    %208 = arith.addf %202, %207 : vector<2x256xf32>
    %c0_119 = arith.constant 0 : index
    %c0_120 = arith.constant 0 : index
    %c142 = arith.constant 142 : index
    %209 = vector.load %arg9[%c0_119, %c0_120, %c142] : memref<2x2x512xf32, #tpu.memory_space<vmem>>, vector<1x2x256xf32>
    %210 = vector.shape_cast %209 : vector<1x2x256xf32> to vector<2x256xf32>
    %c29 = arith.constant 29 : index
    %c0_121 = arith.constant 0 : index
    %211 = vector.load %arg6[%c29, %c0_121] : memref<98x256xf32, #tpu.memory_space<vmem>>, vector<1x256xf32>
    %212 = vector.broadcast %211 : vector<1x256xf32> to vector<2x256xf32>
    %213 = arith.mulf %212, %210 : vector<2x256xf32>
    %214 = arith.addf %208, %213 : vector<2x256xf32>
    %c0_122 = arith.constant 0 : index
    %c0_123 = arith.constant 0 : index
    %c143 = arith.constant 143 : index
    %215 = vector.load %arg9[%c0_122, %c0_123, %c143] : memref<2x2x512xf32, #tpu.memory_space<vmem>>, vector<1x2x256xf32>
    %216 = vector.shape_cast %215 : vector<1x2x256xf32> to vector<2x256xf32>
    %c30 = arith.constant 30 : index
    %c0_124 = arith.constant 0 : index
    %217 = vector.load %arg6[%c30, %c0_124] : memref<98x256xf32, #tpu.memory_space<vmem>>, vector<1x256xf32>
    %218 = vector.broadcast %217 : vector<1x256xf32> to vector<2x256xf32>
    %219 = arith.mulf %218, %216 : vector<2x256xf32>
    %220 = arith.addf %214, %219 : vector<2x256xf32>
    %c0_125 = arith.constant 0 : index
    %c0_126 = arith.constant 0 : index
    %c144 = arith.constant 144 : index
    %221 = vector.load %arg9[%c0_125, %c0_126, %c144] : memref<2x2x512xf32, #tpu.memory_space<vmem>>, vector<1x2x256xf32>
    %222 = vector.shape_cast %221 : vector<1x2x256xf32> to vector<2x256xf32>
    %c31 = arith.constant 31 : index
    %c0_127 = arith.constant 0 : index
    %223 = vector.load %arg6[%c31, %c0_127] : memref<98x256xf32, #tpu.memory_space<vmem>>, vector<1x256xf32>
    %224 = vector.broadcast %223 : vector<1x256xf32> to vector<2x256xf32>
    %225 = arith.mulf %224, %222 : vector<2x256xf32>
    %226 = arith.addf %220, %225 : vector<2x256xf32>
    %c0_128 = arith.constant 0 : index
    %c0_129 = arith.constant 0 : index
    %c145 = arith.constant 145 : index
    %227 = vector.load %arg9[%c0_128, %c0_129, %c145] : memref<2x2x512xf32, #tpu.memory_space<vmem>>, vector<1x2x256xf32>
    %228 = vector.shape_cast %227 : vector<1x2x256xf32> to vector<2x256xf32>
    %c32 = arith.constant 32 : index
    %c0_130 = arith.constant 0 : index
    %229 = vector.load %arg6[%c32, %c0_130] : memref<98x256xf32, #tpu.memory_space<vmem>>, vector<1x256xf32>
    %230 = vector.broadcast %229 : vector<1x256xf32> to vector<2x256xf32>
    %231 = arith.mulf %230, %228 : vector<2x256xf32>
    %232 = arith.addf %226, %231 : vector<2x256xf32>
    %c0_131 = arith.constant 0 : index
    %c0_132 = arith.constant 0 : index
    %c146 = arith.constant 146 : index
    %233 = vector.load %arg9[%c0_131, %c0_132, %c146] : memref<2x2x512xf32, #tpu.memory_space<vmem>>, vector<1x2x256xf32>
    %234 = vector.shape_cast %233 : vector<1x2x256xf32> to vector<2x256xf32>
    %c33 = arith.constant 33 : index
    %c0_133 = arith.constant 0 : index
    %235 = vector.load %arg6[%c33, %c0_133] : memref<98x256xf32, #tpu.memory_space<vmem>>, vector<1x256xf32>
    %236 = vector.broadcast %235 : vector<1x256xf32> to vector<2x256xf32>
    %237 = arith.mulf %236, %234 : vector<2x256xf32>
    %238 = arith.addf %232, %237 : vector<2x256xf32>
    %c0_134 = arith.constant 0 : index
    %c0_135 = arith.constant 0 : index
    %c147 = arith.constant 147 : index
    %239 = vector.load %arg9[%c0_134, %c0_135, %c147] : memref<2x2x512xf32, #tpu.memory_space<vmem>>, vector<1x2x256xf32>
    %240 = vector.shape_cast %239 : vector<1x2x256xf32> to vector<2x256xf32>
    %c34 = arith.constant 34 : index
    %c0_136 = arith.constant 0 : index
    %241 = vector.load %arg6[%c34, %c0_136] : memref<98x256xf32, #tpu.memory_space<vmem>>, vector<1x256xf32>
    %242 = vector.broadcast %241 : vector<1x256xf32> to vector<2x256xf32>
    %243 = arith.mulf %242, %240 : vector<2x256xf32>
    %244 = arith.addf %238, %243 : vector<2x256xf32>
    %c0_137 = arith.constant 0 : index
    %c0_138 = arith.constant 0 : index
    %c157 = arith.constant 157 : index
    %245 = vector.load %arg9[%c0_137, %c0_138, %c157] : memref<2x2x512xf32, #tpu.memory_space<vmem>>, vector<1x2x256xf32>
    %246 = vector.shape_cast %245 : vector<1x2x256xf32> to vector<2x256xf32>
    %c35 = arith.constant 35 : index
    %c0_139 = arith.constant 0 : index
    %247 = vector.load %arg6[%c35, %c0_139] : memref<98x256xf32, #tpu.memory_space<vmem>>, vector<1x256xf32>
    %248 = vector.broadcast %247 : vector<1x256xf32> to vector<2x256xf32>
    %249 = arith.mulf %248, %246 : vector<2x256xf32>
    %250 = arith.addf %244, %249 : vector<2x256xf32>
    %c0_140 = arith.constant 0 : index
    %c0_141 = arith.constant 0 : index
    %c158 = arith.constant 158 : index
    %251 = vector.load %arg9[%c0_140, %c0_141, %c158] : memref<2x2x512xf32, #tpu.memory_space<vmem>>, vector<1x2x256xf32>
    %252 = vector.shape_cast %251 : vector<1x2x256xf32> to vector<2x256xf32>
    %c36 = arith.constant 36 : index
    %c0_142 = arith.constant 0 : index
    %253 = vector.load %arg6[%c36, %c0_142] : memref<98x256xf32, #tpu.memory_space<vmem>>, vector<1x256xf32>
    %254 = vector.broadcast %253 : vector<1x256xf32> to vector<2x256xf32>
    %255 = arith.mulf %254, %252 : vector<2x256xf32>
    %256 = arith.addf %250, %255 : vector<2x256xf32>
    %c0_143 = arith.constant 0 : index
    %c0_144 = arith.constant 0 : index
    %c159 = arith.constant 159 : index
    %257 = vector.load %arg9[%c0_143, %c0_144, %c159] : memref<2x2x512xf32, #tpu.memory_space<vmem>>, vector<1x2x256xf32>
    %258 = vector.shape_cast %257 : vector<1x2x256xf32> to vector<2x256xf32>
    %c37 = arith.constant 37 : index
    %c0_145 = arith.constant 0 : index
    %259 = vector.load %arg6[%c37, %c0_145] : memref<98x256xf32, #tpu.memory_space<vmem>>, vector<1x256xf32>
    %260 = vector.broadcast %259 : vector<1x256xf32> to vector<2x256xf32>
    %261 = arith.mulf %260, %258 : vector<2x256xf32>
    %262 = arith.addf %256, %261 : vector<2x256xf32>
    %c0_146 = arith.constant 0 : index
    %c0_147 = arith.constant 0 : index
    %c160 = arith.constant 160 : index
    %263 = vector.load %arg9[%c0_146, %c0_147, %c160] : memref<2x2x512xf32, #tpu.memory_space<vmem>>, vector<1x2x256xf32>
    %264 = vector.shape_cast %263 : vector<1x2x256xf32> to vector<2x256xf32>
    %c38 = arith.constant 38 : index
    %c0_148 = arith.constant 0 : index
    %265 = vector.load %arg6[%c38, %c0_148] : memref<98x256xf32, #tpu.memory_space<vmem>>, vector<1x256xf32>
    %266 = vector.broadcast %265 : vector<1x256xf32> to vector<2x256xf32>
    %267 = arith.mulf %266, %264 : vector<2x256xf32>
    %268 = arith.addf %262, %267 : vector<2x256xf32>
    %c0_149 = arith.constant 0 : index
    %c0_150 = arith.constant 0 : index
    %c161 = arith.constant 161 : index
    %269 = vector.load %arg9[%c0_149, %c0_150, %c161] : memref<2x2x512xf32, #tpu.memory_space<vmem>>, vector<1x2x256xf32>
    %270 = vector.shape_cast %269 : vector<1x2x256xf32> to vector<2x256xf32>
    %c39 = arith.constant 39 : index
    %c0_151 = arith.constant 0 : index
    %271 = vector.load %arg6[%c39, %c0_151] : memref<98x256xf32, #tpu.memory_space<vmem>>, vector<1x256xf32>
    %272 = vector.broadcast %271 : vector<1x256xf32> to vector<2x256xf32>
    %273 = arith.mulf %272, %270 : vector<2x256xf32>
    %274 = arith.addf %268, %273 : vector<2x256xf32>
    %c0_152 = arith.constant 0 : index
    %c0_153 = arith.constant 0 : index
    %c162 = arith.constant 162 : index
    %275 = vector.load %arg9[%c0_152, %c0_153, %c162] : memref<2x2x512xf32, #tpu.memory_space<vmem>>, vector<1x2x256xf32>
    %276 = vector.shape_cast %275 : vector<1x2x256xf32> to vector<2x256xf32>
    %c40 = arith.constant 40 : index
    %c0_154 = arith.constant 0 : index
    %277 = vector.load %arg6[%c40, %c0_154] : memref<98x256xf32, #tpu.memory_space<vmem>>, vector<1x256xf32>
    %278 = vector.broadcast %277 : vector<1x256xf32> to vector<2x256xf32>
    %279 = arith.mulf %278, %276 : vector<2x256xf32>
    %280 = arith.addf %274, %279 : vector<2x256xf32>
    %c0_155 = arith.constant 0 : index
    %c0_156 = arith.constant 0 : index
    %c163 = arith.constant 163 : index
    %281 = vector.load %arg9[%c0_155, %c0_156, %c163] : memref<2x2x512xf32, #tpu.memory_space<vmem>>, vector<1x2x256xf32>
    %282 = vector.shape_cast %281 : vector<1x2x256xf32> to vector<2x256xf32>
    %c41 = arith.constant 41 : index
    %c0_157 = arith.constant 0 : index
    %283 = vector.load %arg6[%c41, %c0_157] : memref<98x256xf32, #tpu.memory_space<vmem>>, vector<1x256xf32>
    %284 = vector.broadcast %283 : vector<1x256xf32> to vector<2x256xf32>
    %285 = arith.mulf %284, %282 : vector<2x256xf32>
    %286 = arith.addf %280, %285 : vector<2x256xf32>
    %c0_158 = arith.constant 0 : index
    %c0_159 = arith.constant 0 : index
    %c173 = arith.constant 173 : index
    %287 = vector.load %arg9[%c0_158, %c0_159, %c173] : memref<2x2x512xf32, #tpu.memory_space<vmem>>, vector<1x2x256xf32>
    %288 = vector.shape_cast %287 : vector<1x2x256xf32> to vector<2x256xf32>
    %c42 = arith.constant 42 : index
    %c0_160 = arith.constant 0 : index
    %289 = vector.load %arg6[%c42, %c0_160] : memref<98x256xf32, #tpu.memory_space<vmem>>, vector<1x256xf32>
    %290 = vector.broadcast %289 : vector<1x256xf32> to vector<2x256xf32>
    %291 = arith.mulf %290, %288 : vector<2x256xf32>
    %292 = arith.addf %286, %291 : vector<2x256xf32>
    %c0_161 = arith.constant 0 : index
    %c0_162 = arith.constant 0 : index
    %c174 = arith.constant 174 : index
    %293 = vector.load %arg9[%c0_161, %c0_162, %c174] : memref<2x2x512xf32, #tpu.memory_space<vmem>>, vector<1x2x256xf32>
    %294 = vector.shape_cast %293 : vector<1x2x256xf32> to vector<2x256xf32>
    %c43 = arith.constant 43 : index
    %c0_163 = arith.constant 0 : index
    %295 = vector.load %arg6[%c43, %c0_163] : memref<98x256xf32, #tpu.memory_space<vmem>>, vector<1x256xf32>
    %296 = vector.broadcast %295 : vector<1x256xf32> to vector<2x256xf32>
    %297 = arith.mulf %296, %294 : vector<2x256xf32>
    %298 = arith.addf %292, %297 : vector<2x256xf32>
    %c0_164 = arith.constant 0 : index
    %c0_165 = arith.constant 0 : index
    %c175 = arith.constant 175 : index
    %299 = vector.load %arg9[%c0_164, %c0_165, %c175] : memref<2x2x512xf32, #tpu.memory_space<vmem>>, vector<1x2x256xf32>
    %300 = vector.shape_cast %299 : vector<1x2x256xf32> to vector<2x256xf32>
    %c44 = arith.constant 44 : index
    %c0_166 = arith.constant 0 : index
    %301 = vector.load %arg6[%c44, %c0_166] : memref<98x256xf32, #tpu.memory_space<vmem>>, vector<1x256xf32>
    %302 = vector.broadcast %301 : vector<1x256xf32> to vector<2x256xf32>
    %303 = arith.mulf %302, %300 : vector<2x256xf32>
    %304 = arith.addf %298, %303 : vector<2x256xf32>
    %c0_167 = arith.constant 0 : index
    %c0_168 = arith.constant 0 : index
    %c176 = arith.constant 176 : index
    %305 = vector.load %arg9[%c0_167, %c0_168, %c176] : memref<2x2x512xf32, #tpu.memory_space<vmem>>, vector<1x2x256xf32>
    %306 = vector.shape_cast %305 : vector<1x2x256xf32> to vector<2x256xf32>
    %c45 = arith.constant 45 : index
    %c0_169 = arith.constant 0 : index
    %307 = vector.load %arg6[%c45, %c0_169] : memref<98x256xf32, #tpu.memory_space<vmem>>, vector<1x256xf32>
    %308 = vector.broadcast %307 : vector<1x256xf32> to vector<2x256xf32>
    %309 = arith.mulf %308, %306 : vector<2x256xf32>
    %310 = arith.addf %304, %309 : vector<2x256xf32>
    %c0_170 = arith.constant 0 : index
    %c0_171 = arith.constant 0 : index
    %c177 = arith.constant 177 : index
    %311 = vector.load %arg9[%c0_170, %c0_171, %c177] : memref<2x2x512xf32, #tpu.memory_space<vmem>>, vector<1x2x256xf32>
    %312 = vector.shape_cast %311 : vector<1x2x256xf32> to vector<2x256xf32>
    %c46 = arith.constant 46 : index
    %c0_172 = arith.constant 0 : index
    %313 = vector.load %arg6[%c46, %c0_172] : memref<98x256xf32, #tpu.memory_space<vmem>>, vector<1x256xf32>
    %314 = vector.broadcast %313 : vector<1x256xf32> to vector<2x256xf32>
    %315 = arith.mulf %314, %312 : vector<2x256xf32>
    %316 = arith.addf %310, %315 : vector<2x256xf32>
    %c0_173 = arith.constant 0 : index
    %c0_174 = arith.constant 0 : index
    %c178 = arith.constant 178 : index
    %317 = vector.load %arg9[%c0_173, %c0_174, %c178] : memref<2x2x512xf32, #tpu.memory_space<vmem>>, vector<1x2x256xf32>
    %318 = vector.shape_cast %317 : vector<1x2x256xf32> to vector<2x256xf32>
    %c47 = arith.constant 47 : index
    %c0_175 = arith.constant 0 : index
    %319 = vector.load %arg6[%c47, %c0_175] : memref<98x256xf32, #tpu.memory_space<vmem>>, vector<1x256xf32>
    %320 = vector.broadcast %319 : vector<1x256xf32> to vector<2x256xf32>
    %321 = arith.mulf %320, %318 : vector<2x256xf32>
    %322 = arith.addf %316, %321 : vector<2x256xf32>
    %c0_176 = arith.constant 0 : index
    %c0_177 = arith.constant 0 : index
    %c179 = arith.constant 179 : index
    %323 = vector.load %arg9[%c0_176, %c0_177, %c179] : memref<2x2x512xf32, #tpu.memory_space<vmem>>, vector<1x2x256xf32>
    %324 = vector.shape_cast %323 : vector<1x2x256xf32> to vector<2x256xf32>
    %c48 = arith.constant 48 : index
    %c0_178 = arith.constant 0 : index
    %325 = vector.load %arg6[%c48, %c0_178] : memref<98x256xf32, #tpu.memory_space<vmem>>, vector<1x256xf32>
    %326 = vector.broadcast %325 : vector<1x256xf32> to vector<2x256xf32>
    %327 = arith.mulf %326, %324 : vector<2x256xf32>
    %328 = arith.addf %322, %327 : vector<2x256xf32>
    %c1_179 = arith.constant 1 : index
    %c0_180 = arith.constant 0 : index
    %c77_181 = arith.constant 77 : index
    %329 = vector.load %arg9[%c1_179, %c0_180, %c77_181] : memref<2x2x512xf32, #tpu.memory_space<vmem>>, vector<1x2x256xf32>
    %330 = vector.shape_cast %329 : vector<1x2x256xf32> to vector<2x256xf32>
    %c49 = arith.constant 49 : index
    %c0_182 = arith.constant 0 : index
    %331 = vector.load %arg6[%c49, %c0_182] : memref<98x256xf32, #tpu.memory_space<vmem>>, vector<1x256xf32>
    %332 = vector.broadcast %331 : vector<1x256xf32> to vector<2x256xf32>
    %333 = arith.mulf %332, %330 : vector<2x256xf32>
    %334 = arith.addf %328, %333 : vector<2x256xf32>
    %c1_183 = arith.constant 1 : index
    %c0_184 = arith.constant 0 : index
    %c78_185 = arith.constant 78 : index
    %335 = vector.load %arg9[%c1_183, %c0_184, %c78_185] : memref<2x2x512xf32, #tpu.memory_space<vmem>>, vector<1x2x256xf32>
    %336 = vector.shape_cast %335 : vector<1x2x256xf32> to vector<2x256xf32>
    %c50 = arith.constant 50 : index
    %c0_186 = arith.constant 0 : index
    %337 = vector.load %arg6[%c50, %c0_186] : memref<98x256xf32, #tpu.memory_space<vmem>>, vector<1x256xf32>
    %338 = vector.broadcast %337 : vector<1x256xf32> to vector<2x256xf32>
    %339 = arith.mulf %338, %336 : vector<2x256xf32>
    %340 = arith.addf %334, %339 : vector<2x256xf32>
    %c1_187 = arith.constant 1 : index
    %c0_188 = arith.constant 0 : index
    %c79_189 = arith.constant 79 : index
    %341 = vector.load %arg9[%c1_187, %c0_188, %c79_189] : memref<2x2x512xf32, #tpu.memory_space<vmem>>, vector<1x2x256xf32>
    %342 = vector.shape_cast %341 : vector<1x2x256xf32> to vector<2x256xf32>
    %c51 = arith.constant 51 : index
    %c0_190 = arith.constant 0 : index
    %343 = vector.load %arg6[%c51, %c0_190] : memref<98x256xf32, #tpu.memory_space<vmem>>, vector<1x256xf32>
    %344 = vector.broadcast %343 : vector<1x256xf32> to vector<2x256xf32>
    %345 = arith.mulf %344, %342 : vector<2x256xf32>
    %346 = arith.addf %340, %345 : vector<2x256xf32>
    %c1_191 = arith.constant 1 : index
    %c0_192 = arith.constant 0 : index
    %c80_193 = arith.constant 80 : index
    %347 = vector.load %arg9[%c1_191, %c0_192, %c80_193] : memref<2x2x512xf32, #tpu.memory_space<vmem>>, vector<1x2x256xf32>
    %348 = vector.shape_cast %347 : vector<1x2x256xf32> to vector<2x256xf32>
    %c52 = arith.constant 52 : index
    %c0_194 = arith.constant 0 : index
    %349 = vector.load %arg6[%c52, %c0_194] : memref<98x256xf32, #tpu.memory_space<vmem>>, vector<1x256xf32>
    %350 = vector.broadcast %349 : vector<1x256xf32> to vector<2x256xf32>
    %351 = arith.mulf %350, %348 : vector<2x256xf32>
    %352 = arith.addf %346, %351 : vector<2x256xf32>
    %c1_195 = arith.constant 1 : index
    %c0_196 = arith.constant 0 : index
    %c81_197 = arith.constant 81 : index
    %353 = vector.load %arg9[%c1_195, %c0_196, %c81_197] : memref<2x2x512xf32, #tpu.memory_space<vmem>>, vector<1x2x256xf32>
    %354 = vector.shape_cast %353 : vector<1x2x256xf32> to vector<2x256xf32>
    %c53 = arith.constant 53 : index
    %c0_198 = arith.constant 0 : index
    %355 = vector.load %arg6[%c53, %c0_198] : memref<98x256xf32, #tpu.memory_space<vmem>>, vector<1x256xf32>
    %356 = vector.broadcast %355 : vector<1x256xf32> to vector<2x256xf32>
    %357 = arith.mulf %356, %354 : vector<2x256xf32>
    %358 = arith.addf %352, %357 : vector<2x256xf32>
    %c1_199 = arith.constant 1 : index
    %c0_200 = arith.constant 0 : index
    %c82_201 = arith.constant 82 : index
    %359 = vector.load %arg9[%c1_199, %c0_200, %c82_201] : memref<2x2x512xf32, #tpu.memory_space<vmem>>, vector<1x2x256xf32>
    %360 = vector.shape_cast %359 : vector<1x2x256xf32> to vector<2x256xf32>
    %c54 = arith.constant 54 : index
    %c0_202 = arith.constant 0 : index
    %361 = vector.load %arg6[%c54, %c0_202] : memref<98x256xf32, #tpu.memory_space<vmem>>, vector<1x256xf32>
    %362 = vector.broadcast %361 : vector<1x256xf32> to vector<2x256xf32>
    %363 = arith.mulf %362, %360 : vector<2x256xf32>
    %364 = arith.addf %358, %363 : vector<2x256xf32>
    %c1_203 = arith.constant 1 : index
    %c0_204 = arith.constant 0 : index
    %c83_205 = arith.constant 83 : index
    %365 = vector.load %arg9[%c1_203, %c0_204, %c83_205] : memref<2x2x512xf32, #tpu.memory_space<vmem>>, vector<1x2x256xf32>
    %366 = vector.shape_cast %365 : vector<1x2x256xf32> to vector<2x256xf32>
    %c55 = arith.constant 55 : index
    %c0_206 = arith.constant 0 : index
    %367 = vector.load %arg6[%c55, %c0_206] : memref<98x256xf32, #tpu.memory_space<vmem>>, vector<1x256xf32>
    %368 = vector.broadcast %367 : vector<1x256xf32> to vector<2x256xf32>
    %369 = arith.mulf %368, %366 : vector<2x256xf32>
    %370 = arith.addf %364, %369 : vector<2x256xf32>
    %c1_207 = arith.constant 1 : index
    %c0_208 = arith.constant 0 : index
    %c93_209 = arith.constant 93 : index
    %371 = vector.load %arg9[%c1_207, %c0_208, %c93_209] : memref<2x2x512xf32, #tpu.memory_space<vmem>>, vector<1x2x256xf32>
    %372 = vector.shape_cast %371 : vector<1x2x256xf32> to vector<2x256xf32>
    %c56 = arith.constant 56 : index
    %c0_210 = arith.constant 0 : index
    %373 = vector.load %arg6[%c56, %c0_210] : memref<98x256xf32, #tpu.memory_space<vmem>>, vector<1x256xf32>
    %374 = vector.broadcast %373 : vector<1x256xf32> to vector<2x256xf32>
    %375 = arith.mulf %374, %372 : vector<2x256xf32>
    %376 = arith.addf %370, %375 : vector<2x256xf32>
    %c1_211 = arith.constant 1 : index
    %c0_212 = arith.constant 0 : index
    %c94_213 = arith.constant 94 : index
    %377 = vector.load %arg9[%c1_211, %c0_212, %c94_213] : memref<2x2x512xf32, #tpu.memory_space<vmem>>, vector<1x2x256xf32>
    %378 = vector.shape_cast %377 : vector<1x2x256xf32> to vector<2x256xf32>
    %c57 = arith.constant 57 : index
    %c0_214 = arith.constant 0 : index
    %379 = vector.load %arg6[%c57, %c0_214] : memref<98x256xf32, #tpu.memory_space<vmem>>, vector<1x256xf32>
    %380 = vector.broadcast %379 : vector<1x256xf32> to vector<2x256xf32>
    %381 = arith.mulf %380, %378 : vector<2x256xf32>
    %382 = arith.addf %376, %381 : vector<2x256xf32>
    %c1_215 = arith.constant 1 : index
    %c0_216 = arith.constant 0 : index
    %c95_217 = arith.constant 95 : index
    %383 = vector.load %arg9[%c1_215, %c0_216, %c95_217] : memref<2x2x512xf32, #tpu.memory_space<vmem>>, vector<1x2x256xf32>
    %384 = vector.shape_cast %383 : vector<1x2x256xf32> to vector<2x256xf32>
    %c58 = arith.constant 58 : index
    %c0_218 = arith.constant 0 : index
    %385 = vector.load %arg6[%c58, %c0_218] : memref<98x256xf32, #tpu.memory_space<vmem>>, vector<1x256xf32>
    %386 = vector.broadcast %385 : vector<1x256xf32> to vector<2x256xf32>
    %387 = arith.mulf %386, %384 : vector<2x256xf32>
    %388 = arith.addf %382, %387 : vector<2x256xf32>
    %c1_219 = arith.constant 1 : index
    %c0_220 = arith.constant 0 : index
    %c96_221 = arith.constant 96 : index
    %389 = vector.load %arg9[%c1_219, %c0_220, %c96_221] : memref<2x2x512xf32, #tpu.memory_space<vmem>>, vector<1x2x256xf32>
    %390 = vector.shape_cast %389 : vector<1x2x256xf32> to vector<2x256xf32>
    %c59 = arith.constant 59 : index
    %c0_222 = arith.constant 0 : index
    %391 = vector.load %arg6[%c59, %c0_222] : memref<98x256xf32, #tpu.memory_space<vmem>>, vector<1x256xf32>
    %392 = vector.broadcast %391 : vector<1x256xf32> to vector<2x256xf32>
    %393 = arith.mulf %392, %390 : vector<2x256xf32>
    %394 = arith.addf %388, %393 : vector<2x256xf32>
    %c1_223 = arith.constant 1 : index
    %c0_224 = arith.constant 0 : index
    %c97_225 = arith.constant 97 : index
    %395 = vector.load %arg9[%c1_223, %c0_224, %c97_225] : memref<2x2x512xf32, #tpu.memory_space<vmem>>, vector<1x2x256xf32>
    %396 = vector.shape_cast %395 : vector<1x2x256xf32> to vector<2x256xf32>
    %c60 = arith.constant 60 : index
    %c0_226 = arith.constant 0 : index
    %397 = vector.load %arg6[%c60, %c0_226] : memref<98x256xf32, #tpu.memory_space<vmem>>, vector<1x256xf32>
    %398 = vector.broadcast %397 : vector<1x256xf32> to vector<2x256xf32>
    %399 = arith.mulf %398, %396 : vector<2x256xf32>
    %400 = arith.addf %394, %399 : vector<2x256xf32>
    %c1_227 = arith.constant 1 : index
    %c0_228 = arith.constant 0 : index
    %c98_229 = arith.constant 98 : index
    %401 = vector.load %arg9[%c1_227, %c0_228, %c98_229] : memref<2x2x512xf32, #tpu.memory_space<vmem>>, vector<1x2x256xf32>
    %402 = vector.shape_cast %401 : vector<1x2x256xf32> to vector<2x256xf32>
    %c61 = arith.constant 61 : index
    %c0_230 = arith.constant 0 : index
    %403 = vector.load %arg6[%c61, %c0_230] : memref<98x256xf32, #tpu.memory_space<vmem>>, vector<1x256xf32>
    %404 = vector.broadcast %403 : vector<1x256xf32> to vector<2x256xf32>
    %405 = arith.mulf %404, %402 : vector<2x256xf32>
    %406 = arith.addf %400, %405 : vector<2x256xf32>
    %c1_231 = arith.constant 1 : index
    %c0_232 = arith.constant 0 : index
    %c99_233 = arith.constant 99 : index
    %407 = vector.load %arg9[%c1_231, %c0_232, %c99_233] : memref<2x2x512xf32, #tpu.memory_space<vmem>>, vector<1x2x256xf32>
    %408 = vector.shape_cast %407 : vector<1x2x256xf32> to vector<2x256xf32>
    %c62 = arith.constant 62 : index
    %c0_234 = arith.constant 0 : index
    %409 = vector.load %arg6[%c62, %c0_234] : memref<98x256xf32, #tpu.memory_space<vmem>>, vector<1x256xf32>
    %410 = vector.broadcast %409 : vector<1x256xf32> to vector<2x256xf32>
    %411 = arith.mulf %410, %408 : vector<2x256xf32>
    %412 = arith.addf %406, %411 : vector<2x256xf32>
    %c1_235 = arith.constant 1 : index
    %c0_236 = arith.constant 0 : index
    %c109_237 = arith.constant 109 : index
    %413 = vector.load %arg9[%c1_235, %c0_236, %c109_237] : memref<2x2x512xf32, #tpu.memory_space<vmem>>, vector<1x2x256xf32>
    %414 = vector.shape_cast %413 : vector<1x2x256xf32> to vector<2x256xf32>
    %c63 = arith.constant 63 : index
    %c0_238 = arith.constant 0 : index
    %415 = vector.load %arg6[%c63, %c0_238] : memref<98x256xf32, #tpu.memory_space<vmem>>, vector<1x256xf32>
    %416 = vector.broadcast %415 : vector<1x256xf32> to vector<2x256xf32>
    %417 = arith.mulf %416, %414 : vector<2x256xf32>
    %418 = arith.addf %412, %417 : vector<2x256xf32>
    %c1_239 = arith.constant 1 : index
    %c0_240 = arith.constant 0 : index
    %c110_241 = arith.constant 110 : index
    %419 = vector.load %arg9[%c1_239, %c0_240, %c110_241] : memref<2x2x512xf32, #tpu.memory_space<vmem>>, vector<1x2x256xf32>
    %420 = vector.shape_cast %419 : vector<1x2x256xf32> to vector<2x256xf32>
    %c64 = arith.constant 64 : index
    %c0_242 = arith.constant 0 : index
    %421 = vector.load %arg6[%c64, %c0_242] : memref<98x256xf32, #tpu.memory_space<vmem>>, vector<1x256xf32>
    %422 = vector.broadcast %421 : vector<1x256xf32> to vector<2x256xf32>
    %423 = arith.mulf %422, %420 : vector<2x256xf32>
    %424 = arith.addf %418, %423 : vector<2x256xf32>
    %c1_243 = arith.constant 1 : index
    %c0_244 = arith.constant 0 : index
    %c111_245 = arith.constant 111 : index
    %425 = vector.load %arg9[%c1_243, %c0_244, %c111_245] : memref<2x2x512xf32, #tpu.memory_space<vmem>>, vector<1x2x256xf32>
    %426 = vector.shape_cast %425 : vector<1x2x256xf32> to vector<2x256xf32>
    %c65 = arith.constant 65 : index
    %c0_246 = arith.constant 0 : index
    %427 = vector.load %arg6[%c65, %c0_246] : memref<98x256xf32, #tpu.memory_space<vmem>>, vector<1x256xf32>
    %428 = vector.broadcast %427 : vector<1x256xf32> to vector<2x256xf32>
    %429 = arith.mulf %428, %426 : vector<2x256xf32>
    %430 = arith.addf %424, %429 : vector<2x256xf32>
    %c1_247 = arith.constant 1 : index
    %c0_248 = arith.constant 0 : index
    %c112_249 = arith.constant 112 : index
    %431 = vector.load %arg9[%c1_247, %c0_248, %c112_249] : memref<2x2x512xf32, #tpu.memory_space<vmem>>, vector<1x2x256xf32>
    %432 = vector.shape_cast %431 : vector<1x2x256xf32> to vector<2x256xf32>
    %c66 = arith.constant 66 : index
    %c0_250 = arith.constant 0 : index
    %433 = vector.load %arg6[%c66, %c0_250] : memref<98x256xf32, #tpu.memory_space<vmem>>, vector<1x256xf32>
    %434 = vector.broadcast %433 : vector<1x256xf32> to vector<2x256xf32>
    %435 = arith.mulf %434, %432 : vector<2x256xf32>
    %436 = arith.addf %430, %435 : vector<2x256xf32>
    %c1_251 = arith.constant 1 : index
    %c0_252 = arith.constant 0 : index
    %c113_253 = arith.constant 113 : index
    %437 = vector.load %arg9[%c1_251, %c0_252, %c113_253] : memref<2x2x512xf32, #tpu.memory_space<vmem>>, vector<1x2x256xf32>
    %438 = vector.shape_cast %437 : vector<1x2x256xf32> to vector<2x256xf32>
    %c67 = arith.constant 67 : index
    %c0_254 = arith.constant 0 : index
    %439 = vector.load %arg6[%c67, %c0_254] : memref<98x256xf32, #tpu.memory_space<vmem>>, vector<1x256xf32>
    %440 = vector.broadcast %439 : vector<1x256xf32> to vector<2x256xf32>
    %441 = arith.mulf %440, %438 : vector<2x256xf32>
    %442 = arith.addf %436, %441 : vector<2x256xf32>
    %c1_255 = arith.constant 1 : index
    %c0_256 = arith.constant 0 : index
    %c114_257 = arith.constant 114 : index
    %443 = vector.load %arg9[%c1_255, %c0_256, %c114_257] : memref<2x2x512xf32, #tpu.memory_space<vmem>>, vector<1x2x256xf32>
    %444 = vector.shape_cast %443 : vector<1x2x256xf32> to vector<2x256xf32>
    %c68 = arith.constant 68 : index
    %c0_258 = arith.constant 0 : index
    %445 = vector.load %arg6[%c68, %c0_258] : memref<98x256xf32, #tpu.memory_space<vmem>>, vector<1x256xf32>
    %446 = vector.broadcast %445 : vector<1x256xf32> to vector<2x256xf32>
    %447 = arith.mulf %446, %444 : vector<2x256xf32>
    %448 = arith.addf %442, %447 : vector<2x256xf32>
    %c1_259 = arith.constant 1 : index
    %c0_260 = arith.constant 0 : index
    %c115_261 = arith.constant 115 : index
    %449 = vector.load %arg9[%c1_259, %c0_260, %c115_261] : memref<2x2x512xf32, #tpu.memory_space<vmem>>, vector<1x2x256xf32>
    %450 = vector.shape_cast %449 : vector<1x2x256xf32> to vector<2x256xf32>
    %c69 = arith.constant 69 : index
    %c0_262 = arith.constant 0 : index
    %451 = vector.load %arg6[%c69, %c0_262] : memref<98x256xf32, #tpu.memory_space<vmem>>, vector<1x256xf32>
    %452 = vector.broadcast %451 : vector<1x256xf32> to vector<2x256xf32>
    %453 = arith.mulf %452, %450 : vector<2x256xf32>
    %454 = arith.addf %448, %453 : vector<2x256xf32>
    %c1_263 = arith.constant 1 : index
    %c0_264 = arith.constant 0 : index
    %c125_265 = arith.constant 125 : index
    %455 = vector.load %arg9[%c1_263, %c0_264, %c125_265] : memref<2x2x512xf32, #tpu.memory_space<vmem>>, vector<1x2x256xf32>
    %456 = vector.shape_cast %455 : vector<1x2x256xf32> to vector<2x256xf32>
    %c70 = arith.constant 70 : index
    %c0_266 = arith.constant 0 : index
    %457 = vector.load %arg6[%c70, %c0_266] : memref<98x256xf32, #tpu.memory_space<vmem>>, vector<1x256xf32>
    %458 = vector.broadcast %457 : vector<1x256xf32> to vector<2x256xf32>
    %459 = arith.mulf %458, %456 : vector<2x256xf32>
    %460 = arith.addf %454, %459 : vector<2x256xf32>
    %c1_267 = arith.constant 1 : index
    %c0_268 = arith.constant 0 : index
    %c126_269 = arith.constant 126 : index
    %461 = vector.load %arg9[%c1_267, %c0_268, %c126_269] : memref<2x2x512xf32, #tpu.memory_space<vmem>>, vector<1x2x256xf32>
    %462 = vector.shape_cast %461 : vector<1x2x256xf32> to vector<2x256xf32>
    %c71 = arith.constant 71 : index
    %c0_270 = arith.constant 0 : index
    %463 = vector.load %arg6[%c71, %c0_270] : memref<98x256xf32, #tpu.memory_space<vmem>>, vector<1x256xf32>
    %464 = vector.broadcast %463 : vector<1x256xf32> to vector<2x256xf32>
    %465 = arith.mulf %464, %462 : vector<2x256xf32>
    %466 = arith.addf %460, %465 : vector<2x256xf32>
    %c1_271 = arith.constant 1 : index
    %c0_272 = arith.constant 0 : index
    %c127_273 = arith.constant 127 : index
    %467 = vector.load %arg9[%c1_271, %c0_272, %c127_273] : memref<2x2x512xf32, #tpu.memory_space<vmem>>, vector<1x2x256xf32>
    %468 = vector.shape_cast %467 : vector<1x2x256xf32> to vector<2x256xf32>
    %c72 = arith.constant 72 : index
    %c0_274 = arith.constant 0 : index
    %469 = vector.load %arg6[%c72, %c0_274] : memref<98x256xf32, #tpu.memory_space<vmem>>, vector<1x256xf32>
    %470 = vector.broadcast %469 : vector<1x256xf32> to vector<2x256xf32>
    %471 = arith.mulf %470, %468 : vector<2x256xf32>
    %472 = arith.addf %466, %471 : vector<2x256xf32>
    %c1_275 = arith.constant 1 : index
    %c0_276 = arith.constant 0 : index
    %c128_277 = arith.constant 128 : index
    %473 = vector.load %arg9[%c1_275, %c0_276, %c128_277] : memref<2x2x512xf32, #tpu.memory_space<vmem>>, vector<1x2x256xf32>
    %474 = vector.shape_cast %473 : vector<1x2x256xf32> to vector<2x256xf32>
    %c73 = arith.constant 73 : index
    %c0_278 = arith.constant 0 : index
    %475 = vector.load %arg6[%c73, %c0_278] : memref<98x256xf32, #tpu.memory_space<vmem>>, vector<1x256xf32>
    %476 = vector.broadcast %475 : vector<1x256xf32> to vector<2x256xf32>
    %477 = arith.mulf %476, %474 : vector<2x256xf32>
    %478 = arith.addf %472, %477 : vector<2x256xf32>
    %c1_279 = arith.constant 1 : index
    %c0_280 = arith.constant 0 : index
    %c129_281 = arith.constant 129 : index
    %479 = vector.load %arg9[%c1_279, %c0_280, %c129_281] : memref<2x2x512xf32, #tpu.memory_space<vmem>>, vector<1x2x256xf32>
    %480 = vector.shape_cast %479 : vector<1x2x256xf32> to vector<2x256xf32>
    %c74 = arith.constant 74 : index
    %c0_282 = arith.constant 0 : index
    %481 = vector.load %arg6[%c74, %c0_282] : memref<98x256xf32, #tpu.memory_space<vmem>>, vector<1x256xf32>
    %482 = vector.broadcast %481 : vector<1x256xf32> to vector<2x256xf32>
    %483 = arith.mulf %482, %480 : vector<2x256xf32>
    %484 = arith.addf %478, %483 : vector<2x256xf32>
    %c1_283 = arith.constant 1 : index
    %c0_284 = arith.constant 0 : index
    %c130_285 = arith.constant 130 : index
    %485 = vector.load %arg9[%c1_283, %c0_284, %c130_285] : memref<2x2x512xf32, #tpu.memory_space<vmem>>, vector<1x2x256xf32>
    %486 = vector.shape_cast %485 : vector<1x2x256xf32> to vector<2x256xf32>
    %c75 = arith.constant 75 : index
    %c0_286 = arith.constant 0 : index
    %487 = vector.load %arg6[%c75, %c0_286] : memref<98x256xf32, #tpu.memory_space<vmem>>, vector<1x256xf32>
    %488 = vector.broadcast %487 : vector<1x256xf32> to vector<2x256xf32>
    %489 = arith.mulf %488, %486 : vector<2x256xf32>
    %490 = arith.addf %484, %489 : vector<2x256xf32>
    %c1_287 = arith.constant 1 : index
    %c0_288 = arith.constant 0 : index
    %c131_289 = arith.constant 131 : index
    %491 = vector.load %arg9[%c1_287, %c0_288, %c131_289] : memref<2x2x512xf32, #tpu.memory_space<vmem>>, vector<1x2x256xf32>
    %492 = vector.shape_cast %491 : vector<1x2x256xf32> to vector<2x256xf32>
    %c76 = arith.constant 76 : index
    %c0_290 = arith.constant 0 : index
    %493 = vector.load %arg6[%c76, %c0_290] : memref<98x256xf32, #tpu.memory_space<vmem>>, vector<1x256xf32>
    %494 = vector.broadcast %493 : vector<1x256xf32> to vector<2x256xf32>
    %495 = arith.mulf %494, %492 : vector<2x256xf32>
    %496 = arith.addf %490, %495 : vector<2x256xf32>
    %c1_291 = arith.constant 1 : index
    %c0_292 = arith.constant 0 : index
    %c141_293 = arith.constant 141 : index
    %497 = vector.load %arg9[%c1_291, %c0_292, %c141_293] : memref<2x2x512xf32, #tpu.memory_space<vmem>>, vector<1x2x256xf32>
    %498 = vector.shape_cast %497 : vector<1x2x256xf32> to vector<2x256xf32>
    %c77_294 = arith.constant 77 : index
    %c0_295 = arith.constant 0 : index
    %499 = vector.load %arg6[%c77_294, %c0_295] : memref<98x256xf32, #tpu.memory_space<vmem>>, vector<1x256xf32>
    %500 = vector.broadcast %499 : vector<1x256xf32> to vector<2x256xf32>
    %501 = arith.mulf %500, %498 : vector<2x256xf32>
    %502 = arith.addf %496, %501 : vector<2x256xf32>
    %c1_296 = arith.constant 1 : index
    %c0_297 = arith.constant 0 : index
    %c142_298 = arith.constant 142 : index
    %503 = vector.load %arg9[%c1_296, %c0_297, %c142_298] : memref<2x2x512xf32, #tpu.memory_space<vmem>>, vector<1x2x256xf32>
    %504 = vector.shape_cast %503 : vector<1x2x256xf32> to vector<2x256xf32>
    %c78_299 = arith.constant 78 : index
    %c0_300 = arith.constant 0 : index
    %505 = vector.load %arg6[%c78_299, %c0_300] : memref<98x256xf32, #tpu.memory_space<vmem>>, vector<1x256xf32>
    %506 = vector.broadcast %505 : vector<1x256xf32> to vector<2x256xf32>
    %507 = arith.mulf %506, %504 : vector<2x256xf32>
    %508 = arith.addf %502, %507 : vector<2x256xf32>
    %c1_301 = arith.constant 1 : index
    %c0_302 = arith.constant 0 : index
    %c143_303 = arith.constant 143 : index
    %509 = vector.load %arg9[%c1_301, %c0_302, %c143_303] : memref<2x2x512xf32, #tpu.memory_space<vmem>>, vector<1x2x256xf32>
    %510 = vector.shape_cast %509 : vector<1x2x256xf32> to vector<2x256xf32>
    %c79_304 = arith.constant 79 : index
    %c0_305 = arith.constant 0 : index
    %511 = vector.load %arg6[%c79_304, %c0_305] : memref<98x256xf32, #tpu.memory_space<vmem>>, vector<1x256xf32>
    %512 = vector.broadcast %511 : vector<1x256xf32> to vector<2x256xf32>
    %513 = arith.mulf %512, %510 : vector<2x256xf32>
    %514 = arith.addf %508, %513 : vector<2x256xf32>
    %c1_306 = arith.constant 1 : index
    %c0_307 = arith.constant 0 : index
    %c144_308 = arith.constant 144 : index
    %515 = vector.load %arg9[%c1_306, %c0_307, %c144_308] : memref<2x2x512xf32, #tpu.memory_space<vmem>>, vector<1x2x256xf32>
    %516 = vector.shape_cast %515 : vector<1x2x256xf32> to vector<2x256xf32>
    %c80_309 = arith.constant 80 : index
    %c0_310 = arith.constant 0 : index
    %517 = vector.load %arg6[%c80_309, %c0_310] : memref<98x256xf32, #tpu.memory_space<vmem>>, vector<1x256xf32>
    %518 = vector.broadcast %517 : vector<1x256xf32> to vector<2x256xf32>
    %519 = arith.mulf %518, %516 : vector<2x256xf32>
    %520 = arith.addf %514, %519 : vector<2x256xf32>
    %c1_311 = arith.constant 1 : index
    %c0_312 = arith.constant 0 : index
    %c145_313 = arith.constant 145 : index
    %521 = vector.load %arg9[%c1_311, %c0_312, %c145_313] : memref<2x2x512xf32, #tpu.memory_space<vmem>>, vector<1x2x256xf32>
    %522 = vector.shape_cast %521 : vector<1x2x256xf32> to vector<2x256xf32>
    %c81_314 = arith.constant 81 : index
    %c0_315 = arith.constant 0 : index
    %523 = vector.load %arg6[%c81_314, %c0_315] : memref<98x256xf32, #tpu.memory_space<vmem>>, vector<1x256xf32>
    %524 = vector.broadcast %523 : vector<1x256xf32> to vector<2x256xf32>
    %525 = arith.mulf %524, %522 : vector<2x256xf32>
    %526 = arith.addf %520, %525 : vector<2x256xf32>
    %c1_316 = arith.constant 1 : index
    %c0_317 = arith.constant 0 : index
    %c146_318 = arith.constant 146 : index
    %527 = vector.load %arg9[%c1_316, %c0_317, %c146_318] : memref<2x2x512xf32, #tpu.memory_space<vmem>>, vector<1x2x256xf32>
    %528 = vector.shape_cast %527 : vector<1x2x256xf32> to vector<2x256xf32>
    %c82_319 = arith.constant 82 : index
    %c0_320 = arith.constant 0 : index
    %529 = vector.load %arg6[%c82_319, %c0_320] : memref<98x256xf32, #tpu.memory_space<vmem>>, vector<1x256xf32>
    %530 = vector.broadcast %529 : vector<1x256xf32> to vector<2x256xf32>
    %531 = arith.mulf %530, %528 : vector<2x256xf32>
    %532 = arith.addf %526, %531 : vector<2x256xf32>
    %c1_321 = arith.constant 1 : index
    %c0_322 = arith.constant 0 : index
    %c147_323 = arith.constant 147 : index
    %533 = vector.load %arg9[%c1_321, %c0_322, %c147_323] : memref<2x2x512xf32, #tpu.memory_space<vmem>>, vector<1x2x256xf32>
    %534 = vector.shape_cast %533 : vector<1x2x256xf32> to vector<2x256xf32>
    %c83_324 = arith.constant 83 : index
    %c0_325 = arith.constant 0 : index
    %535 = vector.load %arg6[%c83_324, %c0_325] : memref<98x256xf32, #tpu.memory_space<vmem>>, vector<1x256xf32>
    %536 = vector.broadcast %535 : vector<1x256xf32> to vector<2x256xf32>
    %537 = arith.mulf %536, %534 : vector<2x256xf32>
    %538 = arith.addf %532, %537 : vector<2x256xf32>
    %c1_326 = arith.constant 1 : index
    %c0_327 = arith.constant 0 : index
    %c157_328 = arith.constant 157 : index
    %539 = vector.load %arg9[%c1_326, %c0_327, %c157_328] : memref<2x2x512xf32, #tpu.memory_space<vmem>>, vector<1x2x256xf32>
    %540 = vector.shape_cast %539 : vector<1x2x256xf32> to vector<2x256xf32>
    %c84 = arith.constant 84 : index
    %c0_329 = arith.constant 0 : index
    %541 = vector.load %arg6[%c84, %c0_329] : memref<98x256xf32, #tpu.memory_space<vmem>>, vector<1x256xf32>
    %542 = vector.broadcast %541 : vector<1x256xf32> to vector<2x256xf32>
    %543 = arith.mulf %542, %540 : vector<2x256xf32>
    %544 = arith.addf %538, %543 : vector<2x256xf32>
    %c1_330 = arith.constant 1 : index
    %c0_331 = arith.constant 0 : index
    %c158_332 = arith.constant 158 : index
    %545 = vector.load %arg9[%c1_330, %c0_331, %c158_332] : memref<2x2x512xf32, #tpu.memory_space<vmem>>, vector<1x2x256xf32>
    %546 = vector.shape_cast %545 : vector<1x2x256xf32> to vector<2x256xf32>
    %c85 = arith.constant 85 : index
    %c0_333 = arith.constant 0 : index
    %547 = vector.load %arg6[%c85, %c0_333] : memref<98x256xf32, #tpu.memory_space<vmem>>, vector<1x256xf32>
    %548 = vector.broadcast %547 : vector<1x256xf32> to vector<2x256xf32>
    %549 = arith.mulf %548, %546 : vector<2x256xf32>
    %550 = arith.addf %544, %549 : vector<2x256xf32>
    %c1_334 = arith.constant 1 : index
    %c0_335 = arith.constant 0 : index
    %c159_336 = arith.constant 159 : index
    %551 = vector.load %arg9[%c1_334, %c0_335, %c159_336] : memref<2x2x512xf32, #tpu.memory_space<vmem>>, vector<1x2x256xf32>
    %552 = vector.shape_cast %551 : vector<1x2x256xf32> to vector<2x256xf32>
    %c86 = arith.constant 86 : index
    %c0_337 = arith.constant 0 : index
    %553 = vector.load %arg6[%c86, %c0_337] : memref<98x256xf32, #tpu.memory_space<vmem>>, vector<1x256xf32>
    %554 = vector.broadcast %553 : vector<1x256xf32> to vector<2x256xf32>
    %555 = arith.mulf %554, %552 : vector<2x256xf32>
    %556 = arith.addf %550, %555 : vector<2x256xf32>
    %c1_338 = arith.constant 1 : index
    %c0_339 = arith.constant 0 : index
    %c160_340 = arith.constant 160 : index
    %557 = vector.load %arg9[%c1_338, %c0_339, %c160_340] : memref<2x2x512xf32, #tpu.memory_space<vmem>>, vector<1x2x256xf32>
    %558 = vector.shape_cast %557 : vector<1x2x256xf32> to vector<2x256xf32>
    %c87 = arith.constant 87 : index
    %c0_341 = arith.constant 0 : index
    %559 = vector.load %arg6[%c87, %c0_341] : memref<98x256xf32, #tpu.memory_space<vmem>>, vector<1x256xf32>
    %560 = vector.broadcast %559 : vector<1x256xf32> to vector<2x256xf32>
    %561 = arith.mulf %560, %558 : vector<2x256xf32>
    %562 = arith.addf %556, %561 : vector<2x256xf32>
    %c1_342 = arith.constant 1 : index
    %c0_343 = arith.constant 0 : index
    %c161_344 = arith.constant 161 : index
    %563 = vector.load %arg9[%c1_342, %c0_343, %c161_344] : memref<2x2x512xf32, #tpu.memory_space<vmem>>, vector<1x2x256xf32>
    %564 = vector.shape_cast %563 : vector<1x2x256xf32> to vector<2x256xf32>
    %c88 = arith.constant 88 : index
    %c0_345 = arith.constant 0 : index
    %565 = vector.load %arg6[%c88, %c0_345] : memref<98x256xf32, #tpu.memory_space<vmem>>, vector<1x256xf32>
    %566 = vector.broadcast %565 : vector<1x256xf32> to vector<2x256xf32>
    %567 = arith.mulf %566, %564 : vector<2x256xf32>
    %568 = arith.addf %562, %567 : vector<2x256xf32>
    %c1_346 = arith.constant 1 : index
    %c0_347 = arith.constant 0 : index
    %c162_348 = arith.constant 162 : index
    %569 = vector.load %arg9[%c1_346, %c0_347, %c162_348] : memref<2x2x512xf32, #tpu.memory_space<vmem>>, vector<1x2x256xf32>
    %570 = vector.shape_cast %569 : vector<1x2x256xf32> to vector<2x256xf32>
    %c89 = arith.constant 89 : index
    %c0_349 = arith.constant 0 : index
    %571 = vector.load %arg6[%c89, %c0_349] : memref<98x256xf32, #tpu.memory_space<vmem>>, vector<1x256xf32>
    %572 = vector.broadcast %571 : vector<1x256xf32> to vector<2x256xf32>
    %573 = arith.mulf %572, %570 : vector<2x256xf32>
    %574 = arith.addf %568, %573 : vector<2x256xf32>
    %c1_350 = arith.constant 1 : index
    %c0_351 = arith.constant 0 : index
    %c163_352 = arith.constant 163 : index
    %575 = vector.load %arg9[%c1_350, %c0_351, %c163_352] : memref<2x2x512xf32, #tpu.memory_space<vmem>>, vector<1x2x256xf32>
    %576 = vector.shape_cast %575 : vector<1x2x256xf32> to vector<2x256xf32>
    %c90 = arith.constant 90 : index
    %c0_353 = arith.constant 0 : index
    %577 = vector.load %arg6[%c90, %c0_353] : memref<98x256xf32, #tpu.memory_space<vmem>>, vector<1x256xf32>
    %578 = vector.broadcast %577 : vector<1x256xf32> to vector<2x256xf32>
    %579 = arith.mulf %578, %576 : vector<2x256xf32>
    %580 = arith.addf %574, %579 : vector<2x256xf32>
    %c1_354 = arith.constant 1 : index
    %c0_355 = arith.constant 0 : index
    %c173_356 = arith.constant 173 : index
    %581 = vector.load %arg9[%c1_354, %c0_355, %c173_356] : memref<2x2x512xf32, #tpu.memory_space<vmem>>, vector<1x2x256xf32>
    %582 = vector.shape_cast %581 : vector<1x2x256xf32> to vector<2x256xf32>
    %c91 = arith.constant 91 : index
    %c0_357 = arith.constant 0 : index
    %583 = vector.load %arg6[%c91, %c0_357] : memref<98x256xf32, #tpu.memory_space<vmem>>, vector<1x256xf32>
    %584 = vector.broadcast %583 : vector<1x256xf32> to vector<2x256xf32>
    %585 = arith.mulf %584, %582 : vector<2x256xf32>
    %586 = arith.addf %580, %585 : vector<2x256xf32>
    %c1_358 = arith.constant 1 : index
    %c0_359 = arith.constant 0 : index
    %c174_360 = arith.constant 174 : index
    %587 = vector.load %arg9[%c1_358, %c0_359, %c174_360] : memref<2x2x512xf32, #tpu.memory_space<vmem>>, vector<1x2x256xf32>
    %588 = vector.shape_cast %587 : vector<1x2x256xf32> to vector<2x256xf32>
    %c92 = arith.constant 92 : index
    %c0_361 = arith.constant 0 : index
    %589 = vector.load %arg6[%c92, %c0_361] : memref<98x256xf32, #tpu.memory_space<vmem>>, vector<1x256xf32>
    %590 = vector.broadcast %589 : vector<1x256xf32> to vector<2x256xf32>
    %591 = arith.mulf %590, %588 : vector<2x256xf32>
    %592 = arith.addf %586, %591 : vector<2x256xf32>
    %c1_362 = arith.constant 1 : index
    %c0_363 = arith.constant 0 : index
    %c175_364 = arith.constant 175 : index
    %593 = vector.load %arg9[%c1_362, %c0_363, %c175_364] : memref<2x2x512xf32, #tpu.memory_space<vmem>>, vector<1x2x256xf32>
    %594 = vector.shape_cast %593 : vector<1x2x256xf32> to vector<2x256xf32>
    %c93_365 = arith.constant 93 : index
    %c0_366 = arith.constant 0 : index
    %595 = vector.load %arg6[%c93_365, %c0_366] : memref<98x256xf32, #tpu.memory_space<vmem>>, vector<1x256xf32>
    %596 = vector.broadcast %595 : vector<1x256xf32> to vector<2x256xf32>
    %597 = arith.mulf %596, %594 : vector<2x256xf32>
    %598 = arith.addf %592, %597 : vector<2x256xf32>
    %c1_367 = arith.constant 1 : index
    %c0_368 = arith.constant 0 : index
    %c176_369 = arith.constant 176 : index
    %599 = vector.load %arg9[%c1_367, %c0_368, %c176_369] : memref<2x2x512xf32, #tpu.memory_space<vmem>>, vector<1x2x256xf32>
    %600 = vector.shape_cast %599 : vector<1x2x256xf32> to vector<2x256xf32>
    %c94_370 = arith.constant 94 : index
    %c0_371 = arith.constant 0 : index
    %601 = vector.load %arg6[%c94_370, %c0_371] : memref<98x256xf32, #tpu.memory_space<vmem>>, vector<1x256xf32>
    %602 = vector.broadcast %601 : vector<1x256xf32> to vector<2x256xf32>
    %603 = arith.mulf %602, %600 : vector<2x256xf32>
    %604 = arith.addf %598, %603 : vector<2x256xf32>
    %c1_372 = arith.constant 1 : index
    %c0_373 = arith.constant 0 : index
    %c177_374 = arith.constant 177 : index
    %605 = vector.load %arg9[%c1_372, %c0_373, %c177_374] : memref<2x2x512xf32, #tpu.memory_space<vmem>>, vector<1x2x256xf32>
    %606 = vector.shape_cast %605 : vector<1x2x256xf32> to vector<2x256xf32>
    %c95_375 = arith.constant 95 : index
    %c0_376 = arith.constant 0 : index
    %607 = vector.load %arg6[%c95_375, %c0_376] : memref<98x256xf32, #tpu.memory_space<vmem>>, vector<1x256xf32>
    %608 = vector.broadcast %607 : vector<1x256xf32> to vector<2x256xf32>
    %609 = arith.mulf %608, %606 : vector<2x256xf32>
    %610 = arith.addf %604, %609 : vector<2x256xf32>
    %c1_377 = arith.constant 1 : index
    %c0_378 = arith.constant 0 : index
    %c178_379 = arith.constant 178 : index
    %611 = vector.load %arg9[%c1_377, %c0_378, %c178_379] : memref<2x2x512xf32, #tpu.memory_space<vmem>>, vector<1x2x256xf32>
    %612 = vector.shape_cast %611 : vector<1x2x256xf32> to vector<2x256xf32>
    %c96_380 = arith.constant 96 : index
    %c0_381 = arith.constant 0 : index
    %613 = vector.load %arg6[%c96_380, %c0_381] : memref<98x256xf32, #tpu.memory_space<vmem>>, vector<1x256xf32>
    %614 = vector.broadcast %613 : vector<1x256xf32> to vector<2x256xf32>
    %615 = arith.mulf %614, %612 : vector<2x256xf32>
    %616 = arith.addf %610, %615 : vector<2x256xf32>
    %c1_382 = arith.constant 1 : index
    %c0_383 = arith.constant 0 : index
    %c179_384 = arith.constant 179 : index
    %617 = vector.load %arg9[%c1_382, %c0_383, %c179_384] : memref<2x2x512xf32, #tpu.memory_space<vmem>>, vector<1x2x256xf32>
    %618 = vector.shape_cast %617 : vector<1x2x256xf32> to vector<2x256xf32>
    %c97_385 = arith.constant 97 : index
    %c0_386 = arith.constant 0 : index
    %619 = vector.load %arg6[%c97_385, %c0_386] : memref<98x256xf32, #tpu.memory_space<vmem>>, vector<1x256xf32>
    %620 = vector.broadcast %619 : vector<1x256xf32> to vector<2x256xf32>
    %621 = arith.mulf %620, %618 : vector<2x256xf32>
    %622 = arith.addf %616, %621 : vector<2x256xf32>
    %c0_387 = arith.constant 0 : index
    %623 = memref.load %arg1[%c0_387] : memref<2xf32, #tpu.memory_space<smem>>
    %624 = vector.broadcast %623 : f32 to vector<2x256xf32>
    %625 = arith.addf %622, %624 : vector<2x256xf32>
    %626 = arith.negf %625 : vector<2x256xf32>
    %627 = math.exp %626 : vector<2x256xf32>
    %cst_388 = arith.constant 1.000000e+00 : f32
    %628 = vector.broadcast %cst_388 : f32 to vector<2x256xf32>
    %629 = arith.addf %628, %627 : vector<2x256xf32>
    %630 = arith.divf %628, %629 : vector<2x256xf32>
    %c1_389 = arith.constant 1 : index
    %631 = memref.load %arg1[%c1_389] : memref<2xf32, #tpu.memory_space<smem>>
    %632 = vector.broadcast %631 : f32 to vector<2x32xf32>
    %633 = arith.mulf %632, %20 : vector<2x32xf32>
    %634 = vector.shape_cast %633 : vector<2x32xf32> to vector<2x32x1xf32>
    %635 = vector.shape_cast %630 : vector<2x256xf32> to vector<2x1x256xf32>
    %636 = vector.broadcast %634 : vector<2x32x1xf32> to vector<2x32x256xf32>
    %637 = vector.broadcast %635 : vector<2x1x256xf32> to vector<2x32x256xf32>
    %638 = arith.mulf %636, %637 : vector<2x32x256xf32>
    %639 = arith.mulf %0, %638 : vector<2x32x256xf32>
    %640 = arith.addf %0, %639 : vector<2x32x256xf32>
    %c0_390 = arith.constant 0 : index
    %c0_391 = arith.constant 0 : index
    %c0_392 = arith.constant 0 : index
    %641 = vector.load %arg8[%c0_390, %c0_391, %c0_392] : memref<2x32x256xf32, #tpu.memory_space<vmem>>, vector<2x32x256xf32>
    tpu.vector_store %arg8[%c0_390, %c0_391, %c0_392], %640 {strides = array<i32>} : memref<2x32x256xf32, #tpu.memory_space<vmem>>, vector<2x32x256xf32>,
    return
  }
  func.func @transform_0(%arg0: i32) -> i32 {
    %c0_i32 = arith.constant 0 : i32
    %c0_i32_0 = arith.constant 0 : i32
    return %c0_i32 : i32
  }
  func.func @transform_1(%arg0: i32) -> (i32, i32) {
    %c0_i32 = arith.constant 0 : i32
    %c0_i32_0 = arith.constant 0 : i32
    %c0_i32_1 = arith.constant 0 : i32
    return %c0_i32, %c0_i32_0 : i32, i32
  }
  func.func @transform_2(%arg0: i32) -> (i32, i32) {
    %c0_i32 = arith.constant 0 : i32
    %c0_i32_0 = arith.constant 0 : i32
    %c0_i32_1 = arith.constant 0 : i32
    return %c0_i32, %c0_i32_0 : i32, i32
  }
  func.func @transform_3(%arg0: i32) -> (i32, i32) {
    %c0_i32 = arith.constant 0 : i32
    %c0_i32_0 = arith.constant 0 : i32
    %c0_i32_1 = arith.constant 0 : i32
    return %c0_i32, %c0_i32_0 : i32, i32
  }
  func.func @transform_4(%arg0: i32) -> (i32, i32) {
    %c0_i32 = arith.constant 0 : i32
    %c0_i32_0 = arith.constant 0 : i32
    %c0_i32_1 = arith.constant 0 : i32
    return %c0_i32, %c0_i32_0 : i32, i32
  }
  func.func @transform_5(%arg0: i32) -> (i32, i32) {
    %c0_i32 = arith.constant 0 : i32
    %c0_i32_0 = arith.constant 0 : i32
    %c0_i32_1 = arith.constant 0 : i32
    return %c0_i32, %c0_i32_0 : i32, i32
  }
  func.func @transform_6(%arg0: i32) -> (i32, i32, i32) {
    %c0_i32 = arith.constant 0 : i32
    %c0_i32_0 = arith.constant 0 : i32
    %c0_i32_1 = arith.constant 0 : i32
    return %arg0, %c0_i32, %c0_i32_0 : i32, i32, i32
  }
  func.func @transform_7(%arg0: i32) -> (i32, i32, i32) {
    %c0_i32 = arith.constant 0 : i32
    %c0_i32_0 = arith.constant 0 : i32
    %c0_i32_1 = arith.constant 0 : i32
    return %arg0, %c0_i32, %c0_i32_0 : i32, i32, i32
  }
}

</mosaic_0001>

<bundles_post_ra>
// kernel: tpu_custom_call.1
= control target key start
LH: loop header
LB: loop body
LE: loop exit
PB: predicated region body
PF: predicated region fallthrough
CT: control target
= control target key end

     0   :  { %12 = vsyncpa [#allocation6], 0  ;;  %s6135_s0 = inlined_call_operand.vmem [shape: f32[2], index: 0, kind: input, shape index: {}]   ;;  %s6136_s1 = inlined_call_operand.vmem [shape: f32[32,4], index: 1, kind: input, shape index: {}]   ;;  %s6137_s2 = inlined_call_operand.vmem [shape: f32[1,4], index: 2, kind: input, shape index: {}]   ;;  %s6138_s3 = inlined_call_operand.vmem [shape: f32[4,32], index: 3, kind: input, shape index: {}]   ;;  %s6139_s4 = inlined_call_operand.vmem [shape: f32[1,32], index: 4, kind: input, shape index: {}]   ;;  %s6140_s5 = inlined_call_operand.hbm [shape: f32[98,256], index: 5, kind: input, shape index: {}]   ;;  %s6141_s6 = inlined_call_operand.hbm [shape: f32[2,32,256], index: 6, kind: input, shape index: {}]   ;;  %s6142_s7 = inlined_call_operand.hbm [shape: f32[2,32,256], index: 7, kind: output, shape index: {}]  }
   0x1   :  { %13 = vsyncpa [#allocation4], 0 }
   0x2   :  { %14 = vsyncpa [#allocation9], 0 }
   0x3   :  { %15 = vsyncpa [#allocation5], 0  ;;  %s22_s26 = sshll.u32 %s6135_s0, 4  ;;  %s23_s26 = int_to_ptr.vmem [resolvable:$true] %s22_s26 }
   0x4   :  { %s3578_s27 = scalar_lea.vmem %s23_s26, 16  ;;  %p3583_p1 = scmp.lt.s32.totalorder %s23_s26, %s23_s26 }
   0x5   :  { %p3579_p0 = scmp.ne.s32.totalorder %s23_s26, %s3578_s27  ;;  %p3584_p2 = scmp.lt.s32.totalorder %s3578_s27, %s3578_s27 }
   0x7   :  { %p3585_p3 = por %p3584_p2, %p3583_p1 }
   0x9   :  { %p3586_p4 = pnand %p3585_p3, %p3579_p0 }
   0xb   :  { %3589 = shalt.err (!%p3586_p4)
}
   0xc   :  { %s3664_s28 = smov [#allocation3]   ;;  %s3665_s29 = smov [#allocation7]  }
   0xd   :  { %25 = dma.vmem_to_smem %s23_s26, 16, %s3664_s28, [#allocation6]  }
   0xe   :  { %s39_s30 = sshll.u32 %s3665_s29, 4  ;;  %s3590_s10 = scalar_lea.hbm %s6140_s5, 3328  ;;  %s40_s30 = int_to_ptr.vmem [resolvable:$true] %s39_s30 }
   0xf   :  { %p3591_p5 = scmp.ne.s32.totalorder %s6140_s5, %s3590_s10  ;;  %p3594_p6 = scmp.lt.u32.totalorder %s3590_s10, %s6140_s5 }
  0x11   :  { %p3596_p7 = pnand %p3594_p6, %p3591_p5 }
  0x13   :  { %3599 = shalt.err (!%p3596_p7)
}
  0x14   :  { %s3600_s14 = scalar_lea.vmem %s40_s30, 3328  ;;  %p3605_p9 = scmp.lt.s32.totalorder %s40_s30, %s40_s30 }
  0x15   :  { %p3601_p8 = scmp.ne.s32.totalorder %s40_s30, %s3600_s14  ;;  %p3606_p10 = scmp.lt.s32.totalorder %s3600_s14, %s3600_s14 }
  0x17   :  { %p3607_p11 = por %p3606_p10, %p3605_p9 }
  0x19   :  { %p3608_p12 = pnand %p3607_p11, %p3601_p8 }
  0x1b   :  { %3611 = shalt.err (!%p3608_p12)
}
  0x1c   :  { %s6143_s15 = smov 256   ;;  %s3667_s16 = smov 16  }
  0x1d   :  { %45 = dma.hbm_to_vmem [thread:$0]  %s6140_s5, 3328, %s40_s30, [#allocation4], %s6143_s15, %s6143_s15, %s3667_s16  }
  0x1e   :  { %s3668_s19 = smov [#allocation8]   ;;  %s3612_s23 = scalar_lea.hbm %s6141_s6, 2048 }
  0x1f   :  { %s51_s20 = sshll.u32 %s3668_s19, 4  ;;  %p3613_p13 = scmp.ne.s32.totalorder %s6141_s6, %s3612_s23  ;;  %s52_s20 = int_to_ptr.vmem [resolvable:$true] %s51_s20 }
  0x20   :  { %p3616_p0 = scmp.lt.u32.totalorder %s3612_s23, %s6141_s6 }
  0x22   :  { %p3618_p1 = pnand %p3616_p0, %p3613_p13 }
  0x24   :  { %3621 = shalt.err (!%p3618_p1)
}
  0x25   :  { %s3622_s28 = scalar_lea.vmem %s52_s20, 2048  ;;  %p3627_p3 = scmp.lt.s32.totalorder %s52_s20, %s52_s20 }
  0x26   :  { %p3623_p2 = scmp.ne.s32.totalorder %s52_s20, %s3622_s28  ;;  %p3628_p4 = scmp.lt.s32.totalorder %s3622_s28, %s3622_s28 }
  0x28   :  { %p3629_p5 = por %p3628_p4, %p3627_p3 }
  0x2a   :  { %p3630_p6 = pnand %p3629_p5, %p3623_p2 }
  0x2c   :  { %3633 = shalt.err (!%p3630_p6)
}
  0x2d   :  { %57 = dma.hbm_to_vmem [thread:$0]  %s6141_s6, 2048, %s52_s20, [#allocation9], %s6143_s15, %s6143_s15, %s3667_s16  }
  0x2e   :  { %3656 = dma.done.wait [#allocation6], 16  }
  0x2f   :  { %3657 = vsyncadd [#allocation6], 4294967280 }
  0x30   :  { %3658 = dma.done.wait [#allocation4], 3328  }
  0x31   :  { %3659 = vsyncadd [#allocation4], 4294963968 }
  0x32   :  { %3660 = dma.done.wait [#allocation9], 2048  }
  0x33   :  { %3661 = vsyncadd [#allocation9], 4294965248 }
  0x34   :  { %67 = sfence }
  0x35   :  { %v72_v0 = vld [vmem:[#allocation8 + $0x20] sm:$0xff]  ;;  %v73_v1 = vld [vmem:[#allocation8 + $0x28] sm:$0xff]  ;;  %v74_v5 = vld [vmem:[#allocation8 + $0x30] sm:$0xff]  ;;  %v3669_v10 = vmov 0.0   ;;  %v136_v18 = vlaneseq  ;;  %v3670_v25 = vmov 1983009808  }
  0x36   :  { %v68_v2 = vld [vmem:[#allocation8] sm:$0xff]  ;;  %v90_v3 = vadd.f32 %v73_v1, %v72_v0  ;;  %v69_v4 = vld [vmem:[#allocation8 + $0x8] sm:$0xff]  ;;  %v75_v6 = vld [vmem:[#allocation8 + $0x38] sm:$0xff]  ;;  %427 = vst [vmem:[#allocation2] sm:$0x3] %v3669_v10  ;;  %3477 = vmatprep.subr.mxu1 %v3669_v10  ;;  %v3800_v26 = vunpack.c.l.s4 %v3670_v25  ;;  %vm182_vm0 = vcmask 1041409  }
  0x37   :  { %v84_v7 = vadd.f32 %v69_v4, %v68_v2  ;;  %v70_v8 = vld [vmem:[#allocation8 + $0x10] sm:$0xff]  ;;  %v71_v9 = vld [vmem:[#allocation8 + $0x18] sm:$0xff]  ;;  %428 = vst [vmem:[#allocation2 + $0x8] sm:$0x3] %v3669_v10  ;;  %429 = vst [vmem:[#allocation2 + $0x6] sm:$0x3] %v3669_v10  ;;  %v93_v11 = vadd.f32 %v75_v6, %v74_v5 }
  0x38   :  { %430 = vst [vmem:[#allocation2 + $0xe] sm:$0x3] %v3669_v10  ;;  %91 = vadd.xlane.f32.xlu1 %v90_v3  ;;  %v350_v12 = vadd.f32 %v70_v8, %v68_v2  ;;  %v359_v13 = vadd.f32 %v71_v9, %v69_v4  ;;  %v391_v14 = vmax.f32 %v68_v2, %v70_v8  ;;  %v78_v15 = vld [vmem:[#allocation8 + $0x50] sm:$0xff]  ;;  %v76_v16 = vld [vmem:[#allocation8 + $0x40] sm:$0xff]  ;;  %v79_v20 = vld [vmem:[#allocation8 + $0x58] sm:$0xff]  ;;  %v438_v25 = vunpack.c.0.s8 %v3800_v26  ;;  %s3674_s13 = smov 51  }
  0x39   :  { %85 = vadd.xlane.f32.xlu0 %v84_v7  ;;  %v87_v17 = vadd.f32 %v71_v9, %v70_v8  ;;  %v400_v19 = vmax.f32 %v69_v4, %v71_v9  ;;  %v77_v21 = vld [vmem:[#allocation8 + $0x48] sm:$0xff]  ;;  %v99_v28 = vadd.f32 %v79_v20, %v78_v15  ;;  %v368_v30 = vadd.f32 %v78_v15, %v76_v16  ;;  %v82_v31 = vld [vmem:[#allocation8 + $0x70] sm:$0xff]  ;;  %v83_v36 = vld [vmem:[#allocation8 + $0x78] sm:$0xff]  ;;  %s3675_s14 = smov 49   ;;  %s3676_s17 = smov 48  }
  0x3a   :  { %v351_v22 = vadd.f32 %v350_v12, %v72_v0  ;;  %v360_v23 = vadd.f32 %v359_v13, %v73_v1  ;;  %v392_v24 = vmax.f32 %v391_v14, %v72_v0  ;;  %v96_v29 = vadd.f32 %v77_v21, %v76_v16  ;;  %v80_v37 = vld [vmem:[#allocation8 + $0x60] sm:$0xff]  ;;  %v81_v38 = vld [vmem:[#allocation8 + $0x68] sm:$0xff]  ;;  %s3677_s18 = smov 47   ;;  %s3678_s19 = smov 46  }
  0x3b   :  { %v401_v27 = vmax.f32 %v400_v19, %v73_v1  ;;  %v377_v35 = vadd.f32 %v79_v20, %v77_v21  ;;  %v409_v40 = vmax.f32 %v76_v16, %v78_v15  ;;  %v418_v41 = vmax.f32 %v77_v21, %v79_v20  ;;  %s3679_s20 = smov 45   ;;  %s3680_s21 = smov 35  }
  0x3c   :  { %94 = vadd.xlane.f32.xlu1 %v93_v11  ;;  %v352_v32 = vadd.f32 %v351_v22, %v74_v5  ;;  %v361_v33 = vadd.f32 %v360_v23, %v75_v6  ;;  %v393_v34 = vmax.f32 %v392_v24, %v74_v5  ;;  %v105_v42 = vadd.f32 %v83_v36, %v82_v31  ;;  %s3681_s22 = smov 34   ;;  %s3682_s23 = smov 33  }
  0x3d   :  { %v402_v39 = vmax.f32 %v401_v27, %v75_v6  ;;  %88 = vadd.xlane.f32.xlu0 %v87_v17  ;;  %v102_v46 = vadd.f32 %v81_v38, %v80_v37  ;;  %v369_v48 = vadd.f32 %v368_v30, %v80_v37  ;;  %v378_v49 = vadd.f32 %v377_v35, %v81_v38  ;;  %s3683_s24 = smov 32   ;;  %s3684_s25 = smov 31  }
  0x3e   :  { %v353_v43 = vrot.slane %v352_v32, 4  ;;  %v362_v44 = vrot.slane %v361_v33, 4  ;;  %v394_v45 = vrot.slane %v393_v34, 4  ;;  %v410_v50 = vmax.f32 %v409_v40, %v80_v37  ;;  %s3685_s26 = smov 30   ;;  %s3686_s27 = smov 29  }
  0x3f   :  { %v403_v47 = vrot.slane %v402_v39, 4  ;;  %v419_v54 = vmax.f32 %v418_v41, %v81_v38  ;;  %v370_v56 = vadd.f32 %v369_v48, %v82_v31  ;;  %v379_v57 = vadd.f32 %v378_v49, %v83_v36  ;;  %s3687_s28 = smov 19   ;;  %s3688_s5 = smov 18  }
  0x40   :  { %v354_v51 = vadd.f32 %v353_v43, %v352_v32  ;;  %v363_v52 = vadd.f32 %v362_v44, %v361_v33  ;;  %v395_v53 = vmax.f32 %v393_v34, %v394_v45  ;;  %100 = vadd.xlane.f32.xlu1 %v99_v28  ;;  %v411_v58 = vmax.f32 %v410_v50, %v82_v31  ;;  %s3689_s29 = smov 17   ;;  %s3690_s6 = smov 15  }
  0x41   :  { %v404_v55 = vmax.f32 %v402_v39, %v403_v47  ;;  %97 = vadd.xlane.f32.xlu0 %v96_v29  ;;  %v420_v62 = vmax.f32 %v419_v54, %v83_v36  ;;  %v371_v0 = vrot.slane %v370_v56, 4  ;;  %v380_v1 = vrot.slane %v379_v57, 4  ;;  %v118_v54 = vld [vmem:[%s6136_s1 + $0x8] sm:$0xff]  ;;  %s3691_s30 = smov 14   ;;  %s3692_s8 = smov 13  }
  0x42   :  { %v355_v59 = vrot.slane %v354_v51, 2  ;;  %v364_v60 = vrot.slane %v363_v52, 2  ;;  %v396_v61 = vrot.slane %v395_v53, 2  ;;  %v412_v2 = vrot.slane %v411_v58, 4  ;;  %s3693_s9 = smov 3   ;;  %s6164_s10 = smov 2  }
  0x43   :  { %v405_v63 = vrot.slane %v404_v55, 2  ;;  %v421_v6 = vrot.slane %v420_v62, 4  ;;  %v372_v8 = vadd.f32 %v371_v0, %v370_v56  ;;  %v381_v9 = vadd.f32 %v380_v1, %v379_v57  ;;  %s6162_s11 = smov 1   ;;  %s6144_s12 = smov 127  }
  0x44   :  { %v356_v3 = vadd.f32 %v355_v59, %v354_v51  ;;  %v365_v4 = vadd.f32 %v364_v60, %v363_v52  ;;  %v397_v5 = vmax.f32 %v395_v53, %v396_v61  ;;  %106 = vadd.xlane.f32.xlu1 %v105_v42  ;;  %v413_v11 = vmax.f32 %v411_v58, %v412_v2  ;;  %v117_v53 = vld [vmem:[%s6136_s1] sm:$0xff]  ;;  %s6146_s0 = smov 126   ;;  %s6148_s15 = smov 125  }
  0x45   :  { %v406_v7 = vmax.f32 %v404_v55, %v405_v63  ;;  %103 = vadd.xlane.f32.xlu0 %v102_v46  ;;  %v422_v15 = vmax.f32 %v420_v62, %v421_v6  ;;  %v373_v17 = vrot.slane %v372_v8, 2  ;;  %v382_v19 = vrot.slane %v381_v9, 2  ;;  %v119_v62 = vld [vmem:[%s6136_s1 + $0x10] sm:$0xff]  ;;  %v120_v63 = vld [vmem:[%s6136_s1 + $0x18] sm:$0xff]  ;;  %s3673_s1 = smov 50  }
  0x46   :  { %v357_v12 = vrot.slane %v356_v3, 1  ;;  %v366_v13 = vrot.slane %v365_v4, 1  ;;  %v398_v14 = vrot.slane %v397_v5, 1  ;;  %v414_v20 = vrot.slane %v413_v11, 2 }
  0x47   :  { %v407_v16 = vrot.slane %v406_v7, 1  ;;  %v3803_v21 = vshrl.u32 %v136_v18, 7  ;;  %v423_v24 = vrot.slane %v422_v15, 2  ;;  %v374_v27 = vadd.f32 %v373_v17, %v372_v8 }
  0x48   :  { %v358_v22 = vadd.f32 %v357_v12, %v356_v3  ;;  %v367_v23 = vadd.f32 %v366_v13, %v365_v4  ;;  %v383_v28 = vadd.f32 %v382_v19, %v381_v9  ;;  %v415_v29 = vmax.f32 %v413_v11, %v414_v20 }
  0x49   :  { %6255 = vst [vmem:[#allocation15_spill] sm:$0xff] %v3803_v21  ;;  %v399_v31 = vmax.f32 %v397_v5, %v398_v14  ;;  %v408_v32 = vmax.f32 %v406_v7, %v407_v16  ;;  %v424_v33 = vmax.f32 %v422_v15, %v423_v24  ;;  %v375_v35 = vrot.slane %v374_v27, 1 }
  0x4a   :  { %v387_v30 = vmul.f32 0.03125, %v358_v22  ;;  %v388_v34 = vmul.f32 0.03125, %v367_v23  ;;  %v384_v36 = vrot.slane %v383_v28, 1  ;;  %v416_v37 = vrot.slane %v415_v29, 1 }
  0x4b   :  { %v425_v38 = vrot.slane %v424_v33, 1  ;;  %v376_v39 = vadd.f32 %v375_v35, %v374_v27  ;;  %v469_v42 = vcombine.low %v399_v31, %v408_v32  ;;  %v3807_v26 = vsub.s32 %v438_v25, %v3803_v21 }
  0x4c   :  { %v385_v40 = vadd.f32 %v384_v36, %v383_v28  ;;  %v417_v41 = vmax.f32 %v415_v29, %v416_v37  ;;  %v435_v44 = vcombine.low %v387_v30, %v388_v34  ;;  %v3671_v56 = vmov 0.0|0.0  }
  0x4d   :  { %v426_v43 = vmax.f32 %v424_v33, %v425_v38  ;;  %v389_v45 = vmul.f32 0.03125, %v376_v39  ;;  %v476_v49 = vrot.slane %v469_v42, %v3807_v26  ;;  %3482 = vmatprep.subr.bf16.mxu0 %v3671_v56  ;;  %v3483_v57 = vpack.c.bf16 %v118_v54, %v117_v53 }
  0x4e   :  { %v390_v46 = vmul.f32 0.03125, %v385_v40  ;;  %v442_v51 = vrot.slane %v435_v44, %v3807_v26  ;;  %vm457_vm1 = vcmask 1043459   ;;  %vm459_vm2 = vcmask 1045509  }
  0x4f   :  { %v477_v47 = vcombine.low %v417_v41, %v426_v43  ;;  %3484 = vmatpush3.bf16.msra.mxu0 %v3483_v57  ;;  %vm461_vm3 = vcmask 1047559   ;;  %v3486_v2 = vpack.c.bf16 %v120_v63, %v119_v62  ;;  %vm3672_vm4 = vmmov 0  }
  0x50   :  { %v443_v48 = vcombine.low %v389_v45, %v390_v46  ;;  %3485 = vmatprep.subr.bf16.mxu0 %v3671_v56  ;;  %3474 = vmatprep.mubr.msk.f32.mxu0 %vm3672_vm4, %v3669_v10  ;;  %vm147_vm5 = vcmask 130112   ;;  %vm154_vm6 = vcmask 195712   ;;  %vm161_vm7 = vcmask 261312  }
  0x51   :  { %v484_v50 = vrot.slane %v477_v47, %v3807_v26  ;;  %3479 = vmatprep.mubr.msk.f32.mxu1 %vm3672_vm4, %v3669_v10  ;;  %v137_v10 = vand.u32 127, %v136_v18  ;;  %vm6221_vm8 = vcmask 261120   ;;  %vm270_vm9 = vcmask 1043456  }
  0x52   :  { %v450_v52 = vrot.slane %v443_v48, %v3807_v26  ;;  %vm266_vm10 = vcmask 31744   ;;  %vm531_vm11 = vcmask 416768   ;;  %vm559_vm12 = vcmask 408576  }
  0x53   :  { %v487_v55 = vrot.slane %v484_v50, 7  ;;  %3487 = vmatpush3.bf16.msra.mxu0 %v3486_v2  ;;  %v142_v14 = vadd.s32 4294967288, %v137_v10  ;;  %v140_v16 = vsub.s32 %v137_v10, %v3803_v21  ;;  %v149_v20 = vadd.s32 4294967280, %v137_v10 }
  0x54   :  { %v455_v58 = vrot.slane %v450_v52, 7  ;;  %v156_v23 = vadd.s32 4294967272, %v137_v10  ;;  %vm587_vm13 = vcmask 400384   ;;  %vm615_vm14 = vcmask 392192  }
  0x55   :  { %v488_v59 = vsel %vm182_vm0, %v487_v55, %v476_v49  ;;  %v145_v18 = vsub.s32 %v142_v14, %v3803_v21  ;;  %v152_v30 = vsub.s32 %v149_v20, %v3803_v21  ;;  %vm643_vm15 = vcmask 384000  }
  0x56   :  { %v456_v60 = vsel %vm182_vm0, %v455_v58, %v442_v51  ;;  %v489_v61 = vsel %vm457_vm1, %v487_v55, %v488_v59  ;;  %v159_v33 = vsub.s32 %v156_v23, %v3803_v21  ;;  %vm6220_vm4 = vcmask 269312  }
  0x57   :  { %v458_v0 = vsel %vm457_vm1, %v455_v58, %v456_v60  ;;  %v490_v1 = vsel %vm459_vm2, %v487_v55, %v489_v61  ;;  %vm699_vm1 = vcmask 367616  }
  0x58   :  { %v460_v3 = vsel %vm459_vm2, %v455_v58, %v458_v0  ;;  %v491_v4 = vsel %vm461_vm3, %v487_v55, %v490_v1  ;;  %vm727_vm2 = vcmask 285696  }
  0x59   :  { %v462_v5 = vsel %vm461_vm3, %v455_v58, %v460_v3  ;;  %494 = vst [vmem:[#allocation2 + $0xa] sm:$0xf] %v491_v4  ;;  %vm755_vm3 = vcmask 277504  }
  0x5a   :  { %464 = vst [vmem:[#allocation2 + $0x2] sm:$0xf] %v462_v5 }
  0x61   :  { %v495_v6 = vld [vmem:[#allocation2] sm:$0x3f] }
  0x62   :  { %v3830_v7 = vrot.slane %v495_v6, %v3807_v26  ;;  %v509_v8 = vcombine.high %v495_v6, %v495_v6  ;;  %v1212_v62 = vld [vmem:[#allocation2 + $0x2] sm:$0x3f] }
  0x63   :  { %v1227_v1 = vcombine.high %v1212_v62, %v1212_v62  ;;  %v4011_v2 = vrot.slane %v1212_v62, %v3807_v26 }
  0x64   :  { %553 = vrot.lane.b32.xlu1 %v3830_v7, %s3673_s1  ;;  %525 = vrot.lane.b32.xlu0 %v3830_v7, %s3674_s13  ;;  %v3838_v9 = vcombine.high %v3830_v7, %v3830_v7  ;;  %v3841_v11 = vrot.slane %v509_v8, %v3807_v26 }
  0x65   :  { %v4022_v5 = vrot.slane %v1227_v1, %v3807_v26 }
  0x68   :  { %527 = vrot.lane.b32.xlu1 %v3838_v9, %s3674_s13  ;;  %581 = vrot.lane.b32.xlu0 %v3830_v7, %s3675_s14 }
  0x6c   :  { %529 = vrot.lane.b32.xlu1 %v3841_v11, %s3674_s13  ;;  %555 = vrot.lane.b32.xlu0 %v3838_v9, %s3673_s1 }
  0x70   :  { %557 = vrot.lane.b32.xlu1 %v3841_v11, %s3673_s1  ;;  %585 = vrot.lane.b32.xlu0 %v3841_v11, %s3675_s14 }
  0x74   :  { %583 = vrot.lane.b32.xlu1 %v3838_v9, %s3675_s14  ;;  %611 = vrot.lane.b32.xlu0 %v3838_v9, %s3676_s17 }
  0x78   :  { %609 = vrot.lane.b32.xlu1 %v3830_v7, %s3676_s17  ;;  %637 = vrot.lane.b32.xlu0 %v3830_v7, %s3677_s18 }
  0x7c   :  { %613 = vrot.lane.b32.xlu1 %v3841_v11, %s3676_s17  ;;  %641 = vrot.lane.b32.xlu0 %v3841_v11, %s3677_s18 }
  0x80   :  { %639 = vrot.lane.b32.xlu1 %v3838_v9, %s3677_s18  ;;  %667 = vrot.lane.b32.xlu0 %v3838_v9, %s3678_s19 }
  0x84   :  { %665 = vrot.lane.b32.xlu1 %v3830_v7, %s3678_s19  ;;  %693 = vrot.lane.b32.xlu0 %v3830_v7, %s3679_s20 }
  0x88   :  { %669 = vrot.lane.b32.xlu1 %v3841_v11, %s3678_s19  ;;  %697 = vrot.lane.b32.xlu0 %v3841_v11, %s3679_s20 }
  0x8c   :  { %695 = vrot.lane.b32.xlu1 %v3838_v9, %s3679_s20  ;;  %723 = vrot.lane.b32.xlu0 %v3838_v9, %s3680_s21 }
  0x90   :  { %721 = vrot.lane.b32.xlu1 %v3830_v7, %s3680_s21  ;;  %749 = vrot.lane.b32.xlu0 %v3830_v7, %s3681_s22 }
  0x94   :  { %725 = vrot.lane.b32.xlu1 %v3841_v11, %s3680_s21  ;;  %753 = vrot.lane.b32.xlu0 %v3841_v11, %s3681_s22 }
  0x98   :  { %751 = vrot.lane.b32.xlu1 %v3838_v9, %s3681_s22  ;;  %779 = vrot.lane.b32.xlu0 %v3838_v9, %s3682_s23 }
  0x9c   :  { %777 = vrot.lane.b32.xlu1 %v3830_v7, %s3682_s23  ;;  %805 = vrot.lane.b32.xlu0 %v3830_v7, %s3683_s24 }
  0xa0   :  { %781 = vrot.lane.b32.xlu1 %v3841_v11, %s3682_s23  ;;  %809 = vrot.lane.b32.xlu0 %v3841_v11, %s3683_s24 }
  0xa4   :  { %807 = vrot.lane.b32.xlu1 %v3838_v9, %s3683_s24  ;;  %834 = vrot.lane.b32.xlu0 %v3838_v9, %s3684_s25 }
  0xa8   :  { %832 = vrot.lane.b32.xlu1 %v3830_v7, %s3684_s25  ;;  %860 = vrot.lane.b32.xlu0 %v3830_v7, %s3685_s26 }
  0xac   :  { %836 = vrot.lane.b32.xlu1 %v3841_v11, %s3684_s25  ;;  %864 = vrot.lane.b32.xlu0 %v3841_v11, %s3685_s26 }
  0xb0   :  { %862 = vrot.lane.b32.xlu1 %v3838_v9, %s3685_s26  ;;  %890 = vrot.lane.b32.xlu0 %v3838_v9, %s3686_s27 }
  0xb4   :  { %888 = vrot.lane.b32.xlu1 %v3830_v7, %s3686_s27  ;;  %916 = vrot.lane.b32.xlu0 %v3830_v7, %s3687_s28 }
  0xb8   :  { %892 = vrot.lane.b32.xlu1 %v3841_v11, %s3686_s27  ;;  %920 = vrot.lane.b32.xlu0 %v3841_v11, %s3687_s28 }
  0xbc   :  { %918 = vrot.lane.b32.xlu1 %v3838_v9, %s3687_s28  ;;  %946 = vrot.lane.b32.xlu0 %v3838_v9, %s3688_s5 }
  0xc0   :  { %944 = vrot.lane.b32.xlu1 %v3830_v7, %s3688_s5  ;;  %972 = vrot.lane.b32.xlu0 %v3830_v7, %s3689_s29 }
  0xc4   :  { %948 = vrot.lane.b32.xlu1 %v3841_v11, %s3688_s5  ;;  %976 = vrot.lane.b32.xlu0 %v3841_v11, %s3689_s29 }
  0xc5   :  { %v92_v12 = vpop.xlane.xlu1 %91 }
  0xc6   :  { %v86_v13 = vpop.xlane.xlu0 %85  ;;  %v111_v31 = vmul.f32 0.00390625, %v92_v12 }
  0xc7   :  { %v109_v17 = vmul.f32 0.00390625, %v86_v13 }
  0xc8   :  { %974 = vrot.lane.b32.xlu1 %v3838_v9, %s3689_s29  ;;  %1002 = vrot.lane.b32.xlu0 %v3838_v9, %s3667_s16  ;;  %v153_v41 = vrot.slane %v111_v31, %v152_v30 }
  0xc9   :  { %v95_v15 = vpop.xlane.xlu1 %94  ;;  %v141_v25 = vrot.slane %v109_v17, %v140_v16 }
  0xca   :  { %v89_v19 = vpop.xlane.xlu0 %88  ;;  %v112_v34 = vmul.f32 0.00390625, %v95_v15 }
  0xcb   :  { %v110_v22 = vmul.f32 0.00390625, %v89_v19 }
  0xcc   :  { %1000 = vrot.lane.b32.xlu1 %v3830_v7, %s3667_s16  ;;  %1028 = vrot.lane.b32.xlu0 %v3830_v7, %s3690_s6  ;;  %v160_v46 = vrot.slane %v112_v34, %v159_v33 }
  0xcd   :  { %v101_v24 = vpop.xlane.xlu1 %100  ;;  %v146_v27 = vrot.slane %v110_v22, %v145_v18 }
  0xce   :  { %v114_v28 = vmul.f32 0.00390625, %v101_v24  ;;  %v98_v29 = vpop.xlane.xlu0 %97 }
  0xcf   :  { %v113_v32 = vmul.f32 0.00390625, %v98_v29  ;;  %v148_v36 = vsel %vm147_vm5, %v146_v27, %v141_v25 }
  0xd0   :  { %1004 = vrot.lane.b32.xlu1 %v3841_v11, %s3667_s16  ;;  %1032 = vrot.lane.b32.xlu0 %v3841_v11, %s3690_s6  ;;  %v170_v37 = vrot.slane %v114_v28, %v145_v18  ;;  %v155_v45 = vsel %vm154_vm6, %v153_v41, %v148_v36 }
  0xd1   :  { %v107_v35 = vpop.xlane.xlu1 %106  ;;  %v166_v38 = vrot.slane %v113_v32, %v140_v16  ;;  %v162_v51 = vsel %vm161_vm7, %v160_v46, %v155_v45 }
  0xd2   :  { %v116_v39 = vmul.f32 0.00390625, %v107_v35  ;;  %v104_v40 = vpop.xlane.xlu0 %103 }
  0xd3   :  { %v115_v42 = vmul.f32 0.00390625, %v104_v40  ;;  %v171_v47 = vsel %vm147_vm5, %v170_v37, %v166_v38  ;;  %vm6222_vm5 = vcmask 252928  }
  0xd4   :  { %v180_v43 = vrot.slane %v116_v39, %v159_v33  ;;  %1030 = vrot.lane.b32.xlu1 %v3838_v9, %s3690_s6  ;;  %1058 = vrot.lane.b32.xlu0 %v3838_v9, %s3691_s30 }
  0xd5   :  { %v175_v44 = vrot.slane %v115_v42, %v152_v30 }
  0xd6   :  { %v3963_v48 = vpop.permute.xlu1 %553  ;;  %v3965_v49 = vpop.permute.xlu0 %525 }
  0xd7   :  { %v176_v50 = vsel %vm154_vm6, %v175_v44, %v171_v47  ;;  %vm6223_vm6 = vcmask 244736  }
  0xd8   :  { %v181_v52 = vsel %vm161_vm7, %v180_v43, %v176_v50  ;;  %1056 = vrot.lane.b32.xlu1 %v3830_v7, %s3691_s30  ;;  %1084 = vrot.lane.b32.xlu0 %v3830_v7, %s3692_s8  ;;  %v258_v43 = vld [vmem:[%s6138_s3] sm:$0xf]  ;;  %s6170_s3 = smov 96   ;;  %vm6224_vm7 = vcmask 236544  }
  0xd9   :  { %v183_v53 = vsel %vm182_vm0, %v181_v52, %v162_v51  ;;  %3478 = vmatpush3.msk.msra.mxu1 %vm270_vm9, %v258_v43  ;;  %vm671_vm0 = vcmask 375808   ;;  %vm6225_vm9 = vcmask 154624  }
  0xda   :  { %3475 = vmatmul.mubr.msk.f32.vlgmr.msra.gmra.mrb[0].mxu0 %vm6221_vm8, %v183_v53  ;;  %v3974_v54 = vpop.permute.xlu1 %527  ;;  %v3976_v55 = vpop.permute.xlu0 %581 }
  0xdc   :  { %1060 = vrot.lane.b32.xlu1 %v3841_v11, %s3691_s30  ;;  %1088 = vrot.lane.b32.xlu0 %v3841_v11, %s3692_s8 }
  0xde   :  { %v3982_v56 = vpop.permute.xlu1 %529  ;;  %v3984_v57 = vpop.permute.xlu0 %555 }
  0xe0   :  { %1086 = vrot.lane.b32.xlu1 %v3838_v9, %s3692_s8  ;;  %1114 = vrot.lane.b32.xlu0 %v3838_v9, %s3693_s9 }
  0xe2   :  { %v3990_v58 = vpop.permute.xlu1 %557  ;;  %v3992_v59 = vpop.permute.xlu0 %585 }
  0xe4   :  { %1112 = vrot.lane.b32.xlu1 %v3830_v7, %s3693_s9  ;;  %1140 = vrot.lane.b32.xlu0 %v3830_v7, %s6164_s10 }
  0xe6   :  { %v3998_v60 = vpop.permute.xlu1 %583  ;;  %v4000_v61 = vpop.permute.xlu0 %611 }
  0xe8   :  { %1116 = vrot.lane.b32.xlu1 %v3841_v11, %s3693_s9  ;;  %1144 = vrot.lane.b32.xlu0 %v3841_v11, %s6164_s10 }
  0xea   :  { %v4006_v63 = vpop.permute.xlu1 %609  ;;  %v4008_v0 = vpop.permute.xlu0 %637 }
  0xec   :  { %1142 = vrot.lane.b32.xlu1 %v3838_v9, %s6164_s10  ;;  %1170 = vrot.lane.b32.xlu0 %v3838_v9, %s6162_s11  ;;  %v4036_v9 = vcombine.high %v4011_v2, %v4011_v2  ;;  %s3707_s10 = smov 98  }
  0xee   :  { %v4017_v3 = vpop.permute.xlu1 %613  ;;  %v4019_v4 = vpop.permute.xlu0 %641 }
  0xf0   :  { %1168 = vrot.lane.b32.xlu1 %v3830_v7, %s6162_s11  ;;  %1243 = vrot.lane.b32.xlu0 %v4011_v2, %s6144_s12 }
  0xf2   :  { %v4028_v6 = vpop.permute.xlu1 %639  ;;  %v4030_v8 = vpop.permute.xlu0 %667 }
  0xf4   :  { %1172 = vrot.lane.b32.xlu1 %v3841_v11, %s6162_s11  ;;  %1247 = vrot.lane.b32.xlu0 %v4022_v5, %s6144_s12  ;;  %s6176_s11 = smov 94  }
  0xf6   :  { %v4040_v10 = vpop.permute.xlu1 %665  ;;  %v4042_v7 = vpop.permute.xlu0 %693 }
  0xf8   :  { %1245 = vrot.lane.b32.xlu1 %v4036_v9, %s6144_s12  ;;  %1273 = vrot.lane.b32.xlu0 %v4036_v9, %s6146_s0  ;;  %s6150_s12 = smov 115  }
  0xfa   :  { %v4048_v12 = vpop.permute.xlu1 %669  ;;  %v4050_v11 = vpop.permute.xlu0 %697 }
  0xfc   :  { %1271 = vrot.lane.b32.xlu1 %v4011_v2, %s6146_s0  ;;  %1299 = vrot.lane.b32.xlu0 %v4011_v2, %s6148_s15 }
  0xfe   :  { %v4056_v13 = vpop.permute.xlu1 %695  ;;  %v4058_v14 = vpop.permute.xlu0 %723 }
 0x100   :  { %1275 = vrot.lane.b32.xlu1 %v4022_v5, %s6146_s0  ;;  %1303 = vrot.lane.b32.xlu0 %v4022_v5, %s6148_s15  ;;  %s6152_s0 = smov 114  }
 0x102   :  { %v4064_v15 = vpop.permute.xlu1 %721  ;;  %v4066_v16 = vpop.permute.xlu0 %749 }
 0x104   :  { %1301 = vrot.lane.b32.xlu1 %v4036_v9, %s6148_s15  ;;  %1329 = vrot.lane.b32.xlu0 %v4036_v9, %s6150_s12  ;;  %s6154_s15 = smov 113  }
 0x106   :  { %v4072_v17 = vpop.permute.xlu1 %725  ;;  %v4074_v18 = vpop.permute.xlu0 %753 }
 0x108   :  { %1327 = vrot.lane.b32.xlu1 %v4011_v2, %s6150_s12  ;;  %1355 = vrot.lane.b32.xlu0 %v4011_v2, %s6152_s0 }
 0x10a   :  { %v4080_v19 = vpop.permute.xlu1 %751  ;;  %v4082_v20 = vpop.permute.xlu0 %779 }
 0x10c   :  { %1331 = vrot.lane.b32.xlu1 %v4022_v5, %s6150_s12  ;;  %1359 = vrot.lane.b32.xlu0 %v4022_v5, %s6152_s0  ;;  %s6156_s12 = smov 112  }
 0x10e   :  { %v4088_v22 = vpop.permute.xlu1 %777  ;;  %v4090_v23 = vpop.permute.xlu0 %805 }
 0x110   :  { %1357 = vrot.lane.b32.xlu1 %v4036_v9, %s6152_s0  ;;  %1385 = vrot.lane.b32.xlu0 %v4036_v9, %s6154_s15  ;;  %s6158_s0 = smov 111  }
 0x112   :  { %v4096_v24 = vpop.permute.xlu1 %781  ;;  %v4098_v25 = vpop.permute.xlu0 %809 }
 0x114   :  { %1383 = vrot.lane.b32.xlu1 %v4011_v2, %s6154_s15  ;;  %1411 = vrot.lane.b32.xlu0 %v4011_v2, %s6156_s12 }
 0x116   :  { %v4104_v27 = vpop.permute.xlu1 %807  ;;  %v4106_v28 = vpop.permute.xlu0 %834 }
 0x118   :  { %1387 = vrot.lane.b32.xlu1 %v4022_v5, %s6154_s15  ;;  %1415 = vrot.lane.b32.xlu0 %v4022_v5, %s6156_s12  ;;  %s6160_s15 = smov 110  }
 0x11a   :  { %v4112_v29 = vpop.permute.xlu1 %832  ;;  %v4114_v30 = vpop.permute.xlu0 %860 }
 0x11b   :  { %6256 = vst [vmem:[#allocation16_spill] sm:$0xff] %v4114_v30 }
 0x11c   :  { %1413 = vrot.lane.b32.xlu1 %v4036_v9, %s6156_s12  ;;  %1441 = vrot.lane.b32.xlu0 %v4036_v9, %s6158_s0  ;;  %s6166_s12 = smov 109  }
 0x11e   :  { %v4120_v31 = vpop.permute.xlu1 %836  ;;  %v4122_v32 = vpop.permute.xlu0 %864 }
 0x11f   :  { %6257 = vst [vmem:[#allocation17_spill] sm:$0xff] %v4122_v32 }
 0x120   :  { %1439 = vrot.lane.b32.xlu1 %v4011_v2, %s6158_s0  ;;  %1467 = vrot.lane.b32.xlu0 %v4011_v2, %s6160_s15 }
 0x122   :  { %v4128_v33 = vpop.permute.xlu1 %862  ;;  %v4130_v34 = vpop.permute.xlu0 %890 }
 0x123   :  { %6258 = vst [vmem:[#allocation18_spill] sm:$0xff] %v4128_v33  ;;  %6259 = vst [vmem:[#allocation19_spill] sm:$0xff] %v4130_v34  ;;  %v4572_v34 = vld [vmem:[#allocation7 + $0x12] ss:$8 sm:$0x3] }
 0x124   :  { %1443 = vrot.lane.b32.xlu1 %v4022_v5, %s6158_s0  ;;  %1471 = vrot.lane.b32.xlu0 %v4022_v5, %s6160_s15  ;;  %s3706_s0 = smov 99  }
 0x126   :  { %v4136_v35 = vpop.permute.xlu1 %888  ;;  %v4138_v36 = vpop.permute.xlu0 %916 }
 0x127   :  { %6260 = vst [vmem:[#allocation20_spill] sm:$0xff] %v4136_v35  ;;  %6261 = vst [vmem:[#allocation21_spill] sm:$0xff] %v4138_v36  ;;  %v4546_v36 = vld [vmem:[#allocation7 + $0x6] ss:$8 sm:$0x3] }
 0x128   :  { %1469 = vrot.lane.b32.xlu1 %v4036_v9, %s6160_s15  ;;  %1497 = vrot.lane.b32.xlu0 %v4036_v9, %s6166_s12  ;;  %s6172_s15 = smov 95   ;;  %v4582_v35 = vld [vmem:[#allocation7 + $0x14] ss:$8 sm:$0x3] }
 0x12a   :  { %v4144_v37 = vpop.permute.xlu1 %892  ;;  %v4146_v38 = vpop.permute.xlu0 %920 }
 0x12b   :  { %6262 = vst [vmem:[#allocation22_spill] sm:$0xff] %v4144_v37  ;;  %6263 = vst [vmem:[#allocation23_spill] sm:$0xff] %v4146_v38  ;;  %v4580_v37 = vld [vmem:[#allocation7 + $0x13] ss:$8 sm:$0x3] }
 0x12c   :  { %1495 = vrot.lane.b32.xlu1 %v4011_v2, %s6166_s12  ;;  %1523 = vrot.lane.b32.xlu0 %v4011_v2, %s3706_s0 }
 0x12e   :  { %v4152_v39 = vpop.permute.xlu1 %918  ;;  %v4154_v40 = vpop.permute.xlu0 %946 }
 0x12f   :  { %6264 = vst [vmem:[#allocation24_spill] sm:$0xff] %v4152_v39  ;;  %6265 = vst [vmem:[#allocation25_spill] sm:$0xff] %v4154_v40  ;;  %v4548_v39 = vld [vmem:[#allocation7 + $0x7] ss:$8 sm:$0x3] }
 0x130   :  { %1499 = vrot.lane.b32.xlu1 %v4022_v5, %s6166_s12  ;;  %1527 = vrot.lane.b32.xlu0 %v4022_v5, %s3706_s0  ;;  %s3708_s12 = smov 97  }
 0x132   :  { %v4160_v41 = vpop.permute.xlu1 %944  ;;  %v4162_v42 = vpop.permute.xlu0 %972 }
 0x133   :  { %6266 = vst [vmem:[#allocation26_spill] sm:$0xff] %v4160_v41  ;;  %6267 = vst [vmem:[#allocation27_spill] sm:$0xff] %v4162_v42  ;;  %v4526_v41 = vld [vmem:[#allocation7 + $0x4] ss:$8 sm:$0x3] }
 0x134   :  { %1525 = vrot.lane.b32.xlu1 %v4036_v9, %s3706_s0  ;;  %1553 = vrot.lane.b32.xlu0 %v4036_v9, %s3707_s10 }
 0x136   :  { %v4171_v44 = vpop.permute.xlu1 %948  ;;  %v4173_v45 = vpop.permute.xlu0 %976 }
 0x137   :  { %6268 = vst [vmem:[#allocation28_spill] sm:$0xff] %v4171_v44  ;;  %6269 = vst [vmem:[#allocation29_spill] sm:$0xff] %v4173_v45  ;;  %v4524_v45 = vld [vmem:[#allocation7 + $0x3] ss:$8 sm:$0x3] }
 0x138   :  { %1551 = vrot.lane.b32.xlu1 %v4011_v2, %s3707_s10  ;;  %1579 = vrot.lane.b32.xlu0 %v4011_v2, %s3708_s12  ;;  %v4530_v44 = vld [vmem:[#allocation7 + $0x5] ss:$8 sm:$0x3] }
 0x13a   :  { %v4179_v46 = vpop.permute.xlu1 %974  ;;  %v4181_v47 = vpop.permute.xlu0 %1002 }
 0x13b   :  { %6270 = vst [vmem:[#allocation30_spill] sm:$0xff] %v4179_v46  ;;  %6271 = vst [vmem:[#allocation31_spill] sm:$0xff] %v4181_v47 }
 0x13c   :  { %1555 = vrot.lane.b32.xlu1 %v4022_v5, %s3707_s10  ;;  %1583 = vrot.lane.b32.xlu0 %v4022_v5, %s3708_s12 }
 0x13e   :  { %v4187_v50 = vpop.permute.xlu1 %1000  ;;  %v4189_v51 = vpop.permute.xlu0 %1028 }
 0x13f   :  { %6272 = vst [vmem:[#allocation32_spill] sm:$0xff] %v4187_v50  ;;  %6273 = vst [vmem:[#allocation33_spill] sm:$0xff] %v4189_v51 }
 0x140   :  { %1581 = vrot.lane.b32.xlu1 %v4036_v9, %s3708_s12  ;;  %1609 = vrot.lane.b32.xlu0 %v4036_v9, %s6170_s3 }
 0x142   :  { %v4195_v52 = vpop.permute.xlu1 %1004  ;;  %v4197_v53 = vpop.permute.xlu0 %1032 }
 0x143   :  { %6274 = vst [vmem:[#allocation34_spill] sm:$0xff] %v4195_v52  ;;  %6275 = vst [vmem:[#allocation35_spill] sm:$0xff] %v4197_v53 }
 0x144   :  { %1607 = vrot.lane.b32.xlu1 %v4011_v2, %s6170_s3  ;;  %1635 = vrot.lane.b32.xlu0 %v4011_v2, %s6172_s15 }
 0x146   :  { %v4203_v62 = vpop.permute.xlu1 %1030  ;;  %v4205_v1 = vpop.permute.xlu0 %1058 }
 0x147   :  { %6276 = vst [vmem:[#allocation36_spill] sm:$0xff] %v4203_v62  ;;  %6277 = vst [vmem:[#allocation37_spill] sm:$0xff] %v4205_v1 }
 0x148   :  { %1611 = vrot.lane.b32.xlu1 %v4022_v5, %s6170_s3  ;;  %1639 = vrot.lane.b32.xlu0 %v4022_v5, %s6172_s15  ;;  %s6178_s3 = smov 93  }
 0x14a   :  { %v4211_v43 = vpop.permute.xlu1 %1056  ;;  %v4213_v51 = vpop.permute.xlu0 %1084 }
 0x14b   :  { %6278 = vst [vmem:[#allocation38_spill] sm:$0xff] %v4211_v43  ;;  %6279 = vst [vmem:[#allocation39_spill] sm:$0xff] %v4213_v51 }
 0x14c   :  { %1637 = vrot.lane.b32.xlu1 %v4036_v9, %s6172_s15  ;;  %1665 = vrot.lane.b32.xlu0 %v4036_v9, %s6176_s11  ;;  %s6182_s15 = smov 83  }
 0x14e   :  { %v4219_v62 = vpop.permute.xlu1 %1060  ;;  %v4221_v1 = vpop.permute.xlu0 %1088 }
 0x14f   :  { %6280 = vst [vmem:[#allocation40_spill] sm:$0xff] %v4219_v62  ;;  %6281 = vst [vmem:[#allocation41_spill] sm:$0xff] %v4221_v1 }
 0x150   :  { %1663 = vrot.lane.b32.xlu1 %v4011_v2, %s6176_s11  ;;  %1691 = vrot.lane.b32.xlu0 %v4011_v2, %s6178_s3 }
 0x152   :  { %v4227_v43 = vpop.permute.xlu1 %1086  ;;  %v4229_v51 = vpop.permute.xlu0 %1114 }
 0x153   :  { %6282 = vst [vmem:[#allocation42_spill] sm:$0xff] %v4227_v43  ;;  %6283 = vst [vmem:[#allocation43_spill] sm:$0xff] %v4229_v51 }
 0x154   :  { %1667 = vrot.lane.b32.xlu1 %v4022_v5, %s6176_s11  ;;  %1695 = vrot.lane.b32.xlu0 %v4022_v5, %s6178_s3  ;;  %s6184_s11 = smov 82  }
 0x156   :  { %v4235_v62 = vpop.permute.xlu1 %1112  ;;  %v4237_v1 = vpop.permute.xlu0 %1140 }
 0x157   :  { %6284 = vst [vmem:[#allocation44_spill] sm:$0xff] %v4235_v62  ;;  %6285 = vst [vmem:[#allocation45_spill] sm:$0xff] %v4237_v1 }
 0x158   :  { %1693 = vrot.lane.b32.xlu1 %v4036_v9, %s6178_s3  ;;  %1721 = vrot.lane.b32.xlu0 %v4036_v9, %s6182_s15  ;;  %s6188_s3 = smov 81  }
 0x15a   :  { %v4243_v43 = vpop.permute.xlu1 %1116  ;;  %v4245_v51 = vpop.permute.xlu0 %1144 }
 0x15b   :  { %6286 = vst [vmem:[#allocation46_spill] sm:$0xff] %v4243_v43  ;;  %6287 = vst [vmem:[#allocation47_spill] sm:$0xff] %v4245_v51 }
 0x15c   :  { %1719 = vrot.lane.b32.xlu1 %v4011_v2, %s6182_s15  ;;  %1747 = vrot.lane.b32.xlu0 %v4011_v2, %s6184_s11 }
 0x15e   :  { %v4251_v62 = vpop.permute.xlu1 %1142  ;;  %v4253_v1 = vpop.permute.xlu0 %1170 }
 0x15f   :  { %6288 = vst [vmem:[#allocation48_spill] sm:$0xff] %v4251_v62  ;;  %6289 = vst [vmem:[#allocation49_spill] sm:$0xff] %v4253_v1 }
 0x160   :  { %1723 = vrot.lane.b32.xlu1 %v4022_v5, %s6182_s15  ;;  %1751 = vrot.lane.b32.xlu0 %v4022_v5, %s6184_s11  ;;  %s6191_s15 = smov 80  }
 0x162   :  { %v4259_v43 = vpop.permute.xlu1 %1168  ;;  %v4261_v51 = vpop.permute.xlu0 %1243 }
 0x163   :  { %6290 = vst [vmem:[#allocation50_spill] sm:$0xff] %v4259_v43  ;;  %6291 = vst [vmem:[#allocation51_spill] sm:$0xff] %v4261_v51 }
 0x164   :  { %1749 = vrot.lane.b32.xlu1 %v4036_v9, %s6184_s11  ;;  %1777 = vrot.lane.b32.xlu0 %v4036_v9, %s6188_s3  ;;  %s3717_s11 = smov 79  }
 0x166   :  { %v4267_v62 = vpop.permute.xlu1 %1172  ;;  %v4269_v1 = vpop.permute.xlu0 %1247 }
 0x167   :  { %6292 = vst [vmem:[#allocation52_spill] sm:$0xff] %v4267_v62  ;;  %6293 = vst [vmem:[#allocation53_spill] sm:$0xff] %v4269_v1 }
 0x168   :  { %1775 = vrot.lane.b32.xlu1 %v4011_v2, %s6188_s3  ;;  %1803 = vrot.lane.b32.xlu0 %v4011_v2, %s6191_s15 }
 0x16a   :  { %v4275_v43 = vpop.permute.xlu1 %1245  ;;  %v4277_v51 = vpop.permute.xlu0 %1273 }
 0x16b   :  { %6294 = vst [vmem:[#allocation54_spill] sm:$0xff] %v4275_v43  ;;  %6295 = vst [vmem:[#allocation55_spill] sm:$0xff] %v4277_v51 }
 0x16c   :  { %1779 = vrot.lane.b32.xlu1 %v4022_v5, %s6188_s3  ;;  %1807 = vrot.lane.b32.xlu0 %v4022_v5, %s6191_s15  ;;  %s3718_s3 = smov 78  }
 0x16e   :  { %v4283_v62 = vpop.permute.xlu1 %1271  ;;  %v4285_v1 = vpop.permute.xlu0 %1299 }
 0x16f   :  { %6296 = vst [vmem:[#allocation56_spill] sm:$0xff] %v4283_v62  ;;  %6297 = vst [vmem:[#allocation57_spill] sm:$0xff] %v4285_v1 }
 0x170   :  { %1805 = vrot.lane.b32.xlu1 %v4036_v9, %s6191_s15  ;;  %1833 = vrot.lane.b32.xlu0 %v4036_v9, %s3717_s11  ;;  %s3719_s15 = smov 77  }
 0x172   :  { %v4291_v43 = vpop.permute.xlu1 %1275  ;;  %v4293_v51 = vpop.permute.xlu0 %1303 }
 0x173   :  { %6298 = vst [vmem:[#allocation58_spill] sm:$0xff] %v4291_v43  ;;  %6299 = vst [vmem:[#allocation59_spill] sm:$0xff] %v4293_v51  ;;  %v1902_v43 = vld [vmem:[#allocation2 + $0x8] sm:$0x3f] }
 0x174   :  { %1831 = vrot.lane.b32.xlu1 %v4011_v2, %s3717_s11  ;;  %1859 = vrot.lane.b32.xlu0 %v4011_v2, %s3718_s3  ;;  %v1917_v50 = vcombine.high %v1902_v43, %v1902_v43  ;;  %v4312_v47 = vrot.slane %v1902_v43, %v3807_v26 }
 0x176   :  { %v4299_v62 = vpop.permute.xlu1 %1301  ;;  %v4301_v1 = vpop.permute.xlu0 %1329  ;;  %v4323_v52 = vrot.slane %v1917_v50, %v3807_v26 }
 0x177   :  { %6300 = vst [vmem:[#allocation60_spill] sm:$0xff] %v4299_v62  ;;  %6301 = vst [vmem:[#allocation61_spill] sm:$0xff] %v4301_v1 }
 0x178   :  { %1835 = vrot.lane.b32.xlu1 %v4022_v5, %s3717_s11  ;;  %1863 = vrot.lane.b32.xlu0 %v4022_v5, %s3718_s3 }
 0x17a   :  { %v4307_v53 = vpop.permute.xlu1 %1327  ;;  %v4309_v51 = vpop.permute.xlu0 %1355 }
 0x17b   :  { %6302 = vst [vmem:[#allocation62_spill] sm:$0xff] %v4307_v53  ;;  %6303 = vst [vmem:[#allocation63_spill] sm:$0xff] %v4309_v51 }
 0x17c   :  { %1861 = vrot.lane.b32.xlu1 %v4036_v9, %s3718_s3  ;;  %1889 = vrot.lane.b32.xlu0 %v4036_v9, %s3719_s15  ;;  %v4337_v9 = vcombine.high %v4312_v47, %v4312_v47 }
 0x17e   :  { %v4318_v1 = vpop.permute.xlu1 %1331  ;;  %v4320_v62 = vpop.permute.xlu0 %1359 }
 0x17f   :  { %6304 = vst [vmem:[#allocation64_spill] sm:$0xff] %v4318_v1  ;;  %6305 = vst [vmem:[#allocation65_spill] sm:$0xff] %v4320_v62 }
 0x180   :  { %1887 = vrot.lane.b32.xlu1 %v4011_v2, %s3719_s15  ;;  %1933 = vrot.lane.b32.xlu0 %v4312_v47, %s3674_s13 }
 0x182   :  { %v4329_v43 = vpop.permute.xlu1 %1357  ;;  %v4331_v51 = vpop.permute.xlu0 %1385 }
 0x183   :  { %6306 = vst [vmem:[#allocation66_spill] sm:$0xff] %v4329_v43  ;;  %6307 = vst [vmem:[#allocation67_spill] sm:$0xff] %v4331_v51 }
 0x184   :  { %1891 = vrot.lane.b32.xlu1 %v4022_v5, %s3719_s15  ;;  %1937 = vrot.lane.b32.xlu0 %v4323_v52, %s3674_s13 }
 0x186   :  { %v4341_v50 = vpop.permute.xlu1 %1383  ;;  %v4343_v2 = vpop.permute.xlu0 %1411 }
 0x187   :  { %6308 = vst [vmem:[#allocation68_spill] sm:$0xff] %v4341_v50  ;;  %6309 = vst [vmem:[#allocation69_spill] sm:$0xff] %v4343_v2 }
 0x188   :  { %1935 = vrot.lane.b32.xlu1 %v4337_v9, %s3674_s13  ;;  %1962 = vrot.lane.b32.xlu0 %v4337_v9, %s3673_s1 }
 0x18a   :  { %v4349_v51 = vpop.permute.xlu1 %1387  ;;  %v4351_v5 = vpop.permute.xlu0 %1415 }
 0x18b   :  { %6310 = vst [vmem:[#allocation70_spill] sm:$0xff] %v4349_v51  ;;  %6311 = vst [vmem:[#allocation71_spill] sm:$0xff] %v4351_v5 }
 0x18c   :  { %1960 = vrot.lane.b32.xlu1 %v4312_v47, %s3673_s1  ;;  %1987 = vrot.lane.b32.xlu0 %v4312_v47, %s3675_s14 }
 0x18e   :  { %v4357_v62 = vpop.permute.xlu1 %1413  ;;  %v4359_v50 = vpop.permute.xlu0 %1441 }
 0x18f   :  { %6312 = vst [vmem:[#allocation72_spill] sm:$0xff] %v4357_v62  ;;  %6313 = vst [vmem:[#allocation73_spill] sm:$0xff] %v4359_v50 }
 0x190   :  { %1964 = vrot.lane.b32.xlu1 %v4323_v52, %s3673_s1  ;;  %1991 = vrot.lane.b32.xlu0 %v4323_v52, %s3675_s14 }
 0x192   :  { %v4365_v2 = vpop.permute.xlu1 %1439  ;;  %v4367_v51 = vpop.permute.xlu0 %1467 }
 0x193   :  { %6314 = vst [vmem:[#allocation74_spill] sm:$0xff] %v4365_v2  ;;  %6315 = vst [vmem:[#allocation75_spill] sm:$0xff] %v4367_v51 }
 0x194   :  { %1989 = vrot.lane.b32.xlu1 %v4337_v9, %s3675_s14  ;;  %2016 = vrot.lane.b32.xlu0 %v4337_v9, %s3676_s17  ;;  %s6423_s14 = smov 1  }
 0x196   :  { %v4373_v5 = vpop.permute.xlu1 %1443  ;;  %v4375_v62 = vpop.permute.xlu0 %1471 }
 0x197   :  { %6316 = vst [vmem:[#allocation76_spill] sm:$0xff] %v4373_v5  ;;  %6317 = vst [vmem:[#allocation77_spill] sm:$0xff] %v4375_v62 }
 0x198   :  { %2014 = vrot.lane.b32.xlu1 %v4312_v47, %s3676_s17  ;;  %2041 = vrot.lane.b32.xlu0 %v4312_v47, %s3677_s18 }
 0x19a   :  { %v4381_v50 = vpop.permute.xlu1 %1469  ;;  %v4383_v2 = vpop.permute.xlu0 %1497 }
 0x19b   :  { %6318 = vst [vmem:[#allocation78_spill] sm:$0xff] %v4381_v50  ;;  %6319 = vst [vmem:[#allocation79_spill] sm:$0xff] %v4383_v2 }
 0x19c   :  { %2018 = vrot.lane.b32.xlu1 %v4323_v52, %s3676_s17  ;;  %2045 = vrot.lane.b32.xlu0 %v4323_v52, %s3677_s18  ;;  %s6425_s17 = smov 127  }
 0x19e   :  { %v4389_v51 = vpop.permute.xlu1 %1495  ;;  %v4391_v5 = vpop.permute.xlu0 %1523 }
 0x19f   :  { %6320 = vst [vmem:[#allocation80_spill] sm:$0xff] %v4389_v51  ;;  %6321 = vst [vmem:[#allocation81_spill] sm:$0xff] %v4391_v5 }
 0x1a0   :  { %2043 = vrot.lane.b32.xlu1 %v4337_v9, %s3677_s18  ;;  %2070 = vrot.lane.b32.xlu0 %v4337_v9, %s3678_s19  ;;  %s6441_s18 = smov 126  }
 0x1a2   :  { %v4397_v62 = vpop.permute.xlu1 %1499  ;;  %v4399_v50 = vpop.permute.xlu0 %1527 }
 0x1a3   :  { %6322 = vst [vmem:[#allocation82_spill] sm:$0xff] %v4397_v62  ;;  %6323 = vst [vmem:[#allocation83_spill] sm:$0xff] %v4399_v50  ;;  %v3448_v50 = vld [vmem:[%s6137_s2] ss:$0 sm:$0xff]  ;;  %s6409_s2 = smov 2  }
 0x1a4   :  { %2068 = vrot.lane.b32.xlu1 %v4312_v47, %s3678_s19  ;;  %2095 = vrot.lane.b32.xlu0 %v4312_v47, %s3679_s20 }
 0x1a6   :  { %v4405_v2 = vpop.permute.xlu1 %1525  ;;  %v4407_v51 = vpop.permute.xlu0 %1553 }
 0x1a7   :  { %6324 = vst [vmem:[#allocation84_spill] sm:$0xff] %v4405_v2  ;;  %6325 = vst [vmem:[#allocation85_spill] sm:$0xff] %v4407_v51 }
 0x1a8   :  { %2072 = vrot.lane.b32.xlu1 %v4323_v52, %s3678_s19  ;;  %2099 = vrot.lane.b32.xlu0 %v4323_v52, %s3679_s20  ;;  %s6454_s19 = smov 125  }
 0x1aa   :  { %v4413_v5 = vpop.permute.xlu1 %1551  ;;  %v4418_v62 = vpop.permute.xlu0 %1579 }
 0x1ab   :  { %6326 = vst [vmem:[#allocation86_spill] sm:$0xff] %v4413_v5  ;;  %6327 = vst [vmem:[#allocation87_spill] sm:$0xff] %v4418_v62 }
 0x1ac   :  { %2097 = vrot.lane.b32.xlu1 %v4337_v9, %s3679_s20  ;;  %2124 = vrot.lane.b32.xlu0 %v4337_v9, %s3680_s21  ;;  %s6478_s20 = smov 115  }
 0x1ad   :  { %v253_v2 = vpop.f32.mrb[0].mxu0 }
 0x1ae   :  { %v254_v51 = vadd.f32 %v3448_v50, %v253_v2  ;;  %v3476_v43 = vpop.f32.mrb[1].mxu0  ;;  %v4424_v1 = vpop.permute.xlu1 %1555 }
 0x1af   :  { %6328 = vst [vmem:[#allocation88_spill] sm:$0xff] %v4424_v1  ;;  %v4426_v53 = vpop.permute.xlu0 %1583 }
 0x1b0   :  { %6329 = vst [vmem:[#allocation89_spill] sm:$0xff] %v4426_v53  ;;  %v257_v5 = vmax.f32 %v254_v51, 0.0  ;;  %2122 = vrot.lane.b32.xlu1 %v4312_v47, %s3680_s21  ;;  %2149 = vrot.lane.b32.xlu0 %v4312_v47, %s3681_s22  ;;  %v2597_v53 = vld [vmem:[#allocation2 + $0xa] sm:$0x3f] }
 0x1b2   :  { %3480 = vmatmul.mubr.msk.f32.vlgmr.msra.gmra.mrb[0].mxu1 %vm266_vm10, %v257_v5  ;;  %v4432_v62 = vpop.permute.xlu1 %1581  ;;  %vm6234_vm10 = vcmask 146432  }
 0x1b3   :  { %6330 = vst [vmem:[#allocation90_spill] sm:$0xff] %v4432_v62  ;;  %v4434_v42 = vpop.permute.xlu0 %1609  ;;  %v4512_v62 = vld [vmem:[#allocation7 + $0x1] ss:$8 sm:$0x3] }
 0x1b4   :  { %6331 = vst [vmem:[#allocation91_spill] sm:$0xff] %v4434_v42  ;;  %2126 = vrot.lane.b32.xlu1 %v4323_v52, %s3680_s21  ;;  %2153 = vrot.lane.b32.xlu0 %v4323_v52, %s3681_s22  ;;  %v4504_v42 = vsub.s32 1, %v3803_v21  ;;  %s6491_s21 = smov 114  }
 0x1b6   :  { %v4440_v43 = vpop.permute.xlu1 %1607 }
 0x1b7   :  { %6332 = vst [vmem:[#allocation92_spill] sm:$0xff] %v4440_v43  ;;  %v4442_v51 = vpop.permute.xlu0 %1635 }
 0x1b8   :  { %6333 = vst [vmem:[#allocation93_spill] sm:$0xff] %v4442_v51  ;;  %2151 = vrot.lane.b32.xlu1 %v4337_v9, %s3681_s22  ;;  %2178 = vrot.lane.b32.xlu0 %v4337_v9, %s3682_s23  ;;  %s6515_s22 = smov 113  }
 0x1ba   :  { %v4448_v50 = vpop.permute.xlu1 %1611 }
 0x1bb   :  { %6334 = vst [vmem:[#allocation94_spill] sm:$0xff] %v4448_v50  ;;  %v4450_v2 = vpop.permute.xlu0 %1639 }
 0x1bc   :  { %6335 = vst [vmem:[#allocation95_spill] sm:$0xff] %v4450_v2  ;;  %2176 = vrot.lane.b32.xlu1 %v4312_v47, %s3682_s23  ;;  %2203 = vrot.lane.b32.xlu0 %v4312_v47, %s3683_s24 }
 0x1be   :  { %v4456_v5 = vpop.permute.xlu1 %1637 }
 0x1bf   :  { %6336 = vst [vmem:[#allocation96_spill] sm:$0xff] %v4456_v5  ;;  %v4458_v43 = vpop.permute.xlu0 %1665 }
 0x1c0   :  { %6337 = vst [vmem:[#allocation97_spill] sm:$0xff] %v4458_v43  ;;  %2180 = vrot.lane.b32.xlu1 %v4323_v52, %s3682_s23  ;;  %2207 = vrot.lane.b32.xlu0 %v4323_v52, %s3683_s24  ;;  %s6527_s23 = smov 112  }
 0x1c2   :  { %v4464_v51 = vpop.permute.xlu1 %1663 }
 0x1c3   :  { %6338 = vst [vmem:[#allocation98_spill] sm:$0xff] %v4464_v51  ;;  %v4466_v50 = vpop.permute.xlu0 %1691 }
 0x1c4   :  { %6339 = vst [vmem:[#allocation99_spill] sm:$0xff] %v4466_v50  ;;  %2205 = vrot.lane.b32.xlu1 %v4337_v9, %s3683_s24  ;;  %2232 = vrot.lane.b32.xlu0 %v4337_v9, %s3684_s25  ;;  %s6546_s24 = smov 111  }
 0x1c6   :  { %v4472_v2 = vpop.permute.xlu1 %1667 }
 0x1c7   :  { %6340 = vst [vmem:[#allocation100_spill] sm:$0xff] %v4472_v2  ;;  %v4474_v5 = vpop.permute.xlu0 %1695 }
 0x1c8   :  { %6341 = vst [vmem:[#allocation101_spill] sm:$0xff] %v4474_v5  ;;  %2230 = vrot.lane.b32.xlu1 %v4312_v47, %s3684_s25  ;;  %2257 = vrot.lane.b32.xlu0 %v4312_v47, %s3685_s26 }
 0x1ca   :  { %v4480_v43 = vpop.permute.xlu1 %1693 }
 0x1cb   :  { %6342 = vst [vmem:[#allocation102_spill] sm:$0xff] %v4480_v43  ;;  %v4482_v51 = vpop.permute.xlu0 %1721 }
 0x1cc   :  { %6343 = vst [vmem:[#allocation103_spill] sm:$0xff] %v4482_v51  ;;  %2234 = vrot.lane.b32.xlu1 %v4323_v52, %s3684_s25  ;;  %2261 = vrot.lane.b32.xlu0 %v4323_v52, %s3685_s26  ;;  %v4501_v51 = vsub.s32 0, %v3803_v21  ;;  %v4537_v21 = vrot.slane %v2597_v53, %v3807_v26  ;;  %s6551_s25 = smov 110  }
 0x1ce   :  { %v4488_v50 = vpop.permute.xlu1 %1719  ;;  %v546_v40 = vrot.slane %v4512_v62, %v4501_v51  ;;  %6350 = vst [vmem:[#allocation110_spill] sm:$0xff] %v4537_v21 }
 0x1cf   :  { %6344 = vst [vmem:[#allocation104_spill] sm:$0xff] %v4488_v50  ;;  %v4490_v2 = vpop.permute.xlu0 %1747  ;;  %v4506_v50 = vld [vmem:[#allocation7] ss:$8 sm:$0x3] }
 0x1d0   :  { %6345 = vst [vmem:[#allocation105_spill] sm:$0xff] %v4490_v2  ;;  %2259 = vrot.lane.b32.xlu1 %v4337_v9, %s3685_s26  ;;  %2286 = vrot.lane.b32.xlu0 %v4337_v9, %s3686_s27  ;;  %v2612_v2 = vcombine.high %v2597_v53, %v2597_v53  ;;  %v560_v53 = vsel %vm559_vm12, %v3963_v48, %v3984_v57  ;;  %s6558_s26 = smov 109  }
 0x1d1   :  { %v564_v48 = vmul.f32 %v560_v53, %v546_v40 }
 0x1d2   :  { %v4496_v5 = vpop.permute.xlu1 %1723  ;;  %v4540_v46 = vrot.slane %v2612_v2, %v3807_v26  ;;  %v561_v26 = vsel %vm559_vm12, %v3984_v57, %v3990_v58  ;;  %v4620_v2 = vld [vmem:[#allocation7 + $0x16] ss:$8 sm:$0x3]  ;;  %v532_v57 = vsel %vm531_vm11, %v3965_v49, %v3974_v54  ;;  %v617_v58 = vsel %vm615_vm14, %v4000_v61, %v4017_v3 }
 0x1d3   :  { %6346 = vst [vmem:[#allocation106_spill] sm:$0xff] %v4496_v5  ;;  %v4498_v43 = vpop.permute.xlu0 %1751  ;;  %v616_v3 = vsel %vm615_vm14, %v4006_v63, %v4000_v61  ;;  %v6358_v49 = vrot.slane %v4506_v50, %v4501_v51  ;;  %v6360_v63 = vrot.slane %v4524_v45, %v4504_v42 }
 0x1d4   :  { %6347 = vst [vmem:[#allocation107_spill] sm:$0xff] %v4498_v43  ;;  %2284 = vrot.lane.b32.xlu1 %v4312_v47, %s3686_s27  ;;  %2311 = vrot.lane.b32.xlu0 %v4312_v47, %s3687_s28  ;;  %v4514_v43 = vld [vmem:[#allocation7 + $0x2] ss:$8 sm:$0x3]  ;;  %6351 = vst [vmem:[#allocation111_spill] sm:$0xff] %v4540_v46 }
 0x1d5   :  { %v578_v38 = vrot.slane %v4514_v43, %v4504_v42  ;;  %v4560_v46 = vld [vmem:[#allocation7 + $0x11] ss:$8 sm:$0x3]  ;;  %v6359_v30 = vrot.slane %v4514_v43, %v4501_v51 }
 0x1d6   :  { %v4516_v5 = vpop.permute.xlu1 %1749 }
 0x1d7   :  { %6348 = vst [vmem:[#allocation108_spill] sm:$0xff] %v4516_v5  ;;  %v4518_v1 = vpop.permute.xlu0 %1777 }
 0x1d8   :  { %6349 = vst [vmem:[#allocation109_spill] sm:$0xff] %v4518_v1  ;;  %2288 = vrot.lane.b32.xlu1 %v4323_v52, %s3686_s27  ;;  %2315 = vrot.lane.b32.xlu0 %v4323_v52, %s3687_s28  ;;  %v550_v1 = vrot.slane %v4512_v62, %v4504_v42  ;;  %v4558_v62 = vld [vmem:[#allocation7 + $0x10] ss:$8 sm:$0x3]  ;;  %s6585_s27 = smov 96  }
 0x1da   :  { %v4562_v5 = vpop.permute.xlu1 %1775  ;;  %v565_v33 = vmul.f32 %v561_v26, %v550_v1  ;;  %v913_v26 = vrot.slane %v4620_v2, %v4504_v42 }
 0x1db   :  { %6352 = vst [vmem:[#allocation112_spill] sm:$0xff] %v4562_v5  ;;  %v4564_v21 = vpop.permute.xlu0 %1803  ;;  %v4605_v5 = vld [vmem:[#allocation7 + $0x15] ss:$8 sm:$0x3] }
 0x1dc   :  { %6353 = vst [vmem:[#allocation113_spill] sm:$0xff] %v4564_v21  ;;  %2313 = vrot.lane.b32.xlu1 %v4337_v9, %s3687_s28  ;;  %2340 = vrot.lane.b32.xlu0 %v4337_v9, %s3688_s5  ;;  %s6590_s28 = smov 95  }
 0x1de   :  { %v4607_v32 = vpop.permute.xlu1 %1779 }
 0x1df   :  { %6354 = vst [vmem:[#allocation114_spill] sm:$0xff] %v4607_v32  ;;  %v4609_v21 = vpop.permute.xlu0 %1807  ;;  %v533_v32 = vsel %vm531_vm11, %v3974_v54, %v3982_v56  ;;  %v588_v56 = vsel %vm587_vm13, %v3976_v55, %v3998_v60  ;;  %v4649_v54 = vld [vmem:[#allocation7 + $0x17] ss:$8 sm:$0x3] }
 0x1e0   :  { %6355 = vst [vmem:[#allocation115_spill] sm:$0xff] %v4609_v21  ;;  %v589_v21 = vsel %vm587_vm13, %v3998_v60, %v3992_v59  ;;  %2338 = vrot.lane.b32.xlu1 %v4312_v47, %s3688_s5  ;;  %2365 = vrot.lane.b32.xlu0 %v4312_v47, %s3689_s29  ;;  %v6357_v60 = vrot.slane %v4506_v50, %v4504_v42 }
 0x1e1   :  { %v593_v53 = vmul.f32 %v589_v21, %v578_v38  ;;  %v536_v59 = vmul.f32 %v532_v57, %v6358_v49  ;;  %v4672_v21 = vld [vmem:[#allocation7 + $0x20] ss:$8 sm:$0x3]  ;;  %v621_v38 = vmul.f32 %v617_v58, %v6360_v63  ;;  %v6361_v50 = vrot.slane %v4524_v45, %v4501_v51 }
 0x1e2   :  { %v4651_v1 = vpop.permute.xlu1 %1805  ;;  %v537_v40 = vmul.f32 %v533_v32, %v6357_v60  ;;  %v645_v32 = vsel %vm643_vm15, %v4028_v6, %v4019_v4  ;;  %v937_v4 = vrot.slane %v4649_v54, %v4501_v51  ;;  %v672_v45 = vsel %vm671_vm0, %v4040_v10, %v4030_v8 }
 0x1e3   :  { %v4653_v55 = vpop.permute.xlu0 %1833  ;;  %v566_v43 = vadd.f32 %v564_v48, %v536_v59  ;;  %v620_v57 = vmul.f32 %v616_v3, %v6361_v50  ;;  %v965_v59 = vrot.slane %v4672_v21, %v4501_v51  ;;  %v6364_v10 = vrot.slane %v4530_v44, %v4504_v42 }
 0x1e4   :  { %6356 = vst [vmem:[#allocation116_spill] sm:$0xff] %v4653_v55  ;;  %v592_v55 = vmul.f32 %v588_v56, %v6359_v30  ;;  %2342 = vrot.lane.b32.xlu1 %v4323_v52, %s3688_s5  ;;  %2369 = vrot.lane.b32.xlu0 %v4323_v52, %s3689_s29  ;;  %v567_v61 = vadd.f32 %v565_v33, %v537_v40  ;;  %s6595_s5 = smov 94  }
 0x1e5   :  { %v644_v30 = vsel %vm643_vm15, %v4008_v0, %v4028_v6  ;;  %v673_v33 = vsel %vm671_vm0, %v4030_v8, %v4048_v12  ;;  %v941_v56 = vrot.slane %v4649_v54, %v4504_v42  ;;  %v6362_v6 = vrot.slane %v4526_v41, %v4504_v42  ;;  %v4706_v12 = vld [vmem:[#allocation7 + $0x21] ss:$8 sm:$0x3] }
 0x1e6   :  { %v4694_v58 = vpop.permute.xlu1 %1831  ;;  %v595_v0 = vadd.f32 %v593_v53, %v567_v61  ;;  %v594_v60 = vadd.f32 %v592_v55, %v566_v43  ;;  %v6363_v40 = vrot.slane %v4526_v41, %v4501_v51  ;;  %v701_v53 = vsel %vm699_vm1, %v4056_v13, %v4050_v11  ;;  %v4734_v43 = vld [vmem:[#allocation7 + $0x22] ss:$8 sm:$0x3] }
 0x1e7   :  { %v4696_v49 = vpop.permute.xlu0 %1859  ;;  %v649_v48 = vmul.f32 %v645_v32, %v6362_v6  ;;  %v677_v55 = vmul.f32 %v673_v33, %v6364_v10  ;;  %v700_v41 = vsel %vm699_vm1, %v4042_v7, %v4056_v13  ;;  %v969_v11 = vrot.slane %v4672_v21, %v4504_v42  ;;  %v6403_v21 = vld [vmem:[#allocation33_spill] sm:$0xff] }
 0x1e8   :  { %v648_v3 = vmul.f32 %v644_v30, %v6363_v40  ;;  %2367 = vrot.lane.b32.xlu1 %v4337_v9, %s3689_s29  ;;  %2394 = vrot.lane.b32.xlu0 %v4337_v9, %s3667_s16  ;;  %v623_v8 = vadd.f32 %v621_v38, %v595_v0  ;;  %v622_v32 = vadd.f32 %v620_v57, %v594_v60  ;;  %v4754_v60 = vld [vmem:[#allocation7 + $0x23] ss:$8 sm:$0x3]  ;;  %s6597_s29 = smov 93  }
 0x1e9   :  { %v6365_v61 = vrot.slane %v4530_v44, %v4501_v51  ;;  %v729_v38 = vsel %vm727_vm2, %v4058_v14, %v4072_v17  ;;  %v993_v30 = vrot.slane %v4706_v12, %v4501_v51  ;;  %v6366_v57 = vrot.slane %v4546_v36, %v4504_v42 }
 0x1ea   :  { %v4736_v50 = vpop.permute.xlu1 %1835  ;;  %v651_v13 = vadd.f32 %v649_v48, %v623_v8  ;;  %v728_v44 = vsel %vm727_vm2, %v4064_v15, %v4058_v14  ;;  %v997_v17 = vrot.slane %v4706_v12, %v4504_v42  ;;  %v650_v0 = vadd.f32 %v648_v3, %v622_v32 }
 0x1eb   :  { %v676_v63 = vmul.f32 %v672_v45, %v6365_v61  ;;  %v4738_v7 = vpop.permute.xlu0 %1863  ;;  %v705_v33 = vmul.f32 %v701_v53, %v6366_v57  ;;  %v6367_v6 = vrot.slane %v4546_v36, %v4501_v51  ;;  %v757_v48 = vsel %vm755_vm3, %v4080_v19, %v4074_v18 }
 0x1ec   :  { %2392 = vrot.lane.b32.xlu1 %v4312_v47, %s3667_s16  ;;  %2419 = vrot.lane.b32.xlu0 %v4312_v47, %s3690_s6  ;;  %v679_v14 = vadd.f32 %v677_v55, %v651_v13  ;;  %v6368_v15 = vrot.slane %v4548_v39, %v4504_v42  ;;  %v756_v36 = vsel %vm755_vm3, %v4066_v16, %v4080_v19 }
 0x1ed   :  { %v704_v45 = vmul.f32 %v700_v41, %v6367_v6  ;;  %v1021_v18 = vrot.slane %v4734_v43, %v4501_v51  ;;  %v678_v3 = vadd.f32 %v676_v63, %v650_v0  ;;  %v6369_v53 = vrot.slane %v4548_v39, %v4501_v51 }
 0x1ee   :  { %v733_v40 = vmul.f32 %v729_v38, %v6368_v15  ;;  %v785_v10 = vsel %vm6220_vm4, %v4082_v20, %v4096_v24  ;;  %v1025_v55 = vrot.slane %v4734_v43, %v4504_v42  ;;  %v4776_v41 = vpop.permute.xlu1 %1861  ;;  %v707_v16 = vadd.f32 %v705_v33, %v679_v14  ;;  %v4788_v24 = vld [vmem:[#allocation7 + $0x24] ss:$8 sm:$0x3]  ;;  %v4816_v15 = vld [vmem:[#allocation7 + $0x25] ss:$8 sm:$0x3] }
 0x1ef   :  { %v732_v8 = vmul.f32 %v728_v44, %v6369_v53  ;;  %v4778_v32 = vpop.permute.xlu0 %1889  ;;  %v6370_v19 = vrot.slane %v4558_v62, %v4504_v42  ;;  %v784_v39 = vsel %vm6220_vm4, %v4088_v22, %v4082_v20  ;;  %v1049_v63 = vrot.slane %v4754_v60, %v4501_v51 }
 0x1f0   :  { %v706_v38 = vadd.f32 %v704_v45, %v678_v3  ;;  %v6371_v13 = vrot.slane %v4558_v62, %v4501_v51  ;;  %v812_v33 = vsel %vm6221_vm8, %v4104_v27, %v4098_v25  ;;  %2396 = vrot.lane.b32.xlu1 %v4323_v52, %s3667_s16  ;;  %2423 = vrot.lane.b32.xlu0 %v4323_v52, %s3690_s6  ;;  %vm6226_vm4 = vcmask 138240  }
 0x1f1   :  { %v761_v61 = vmul.f32 %v757_v48, %v6370_v19  ;;  %v735_v20 = vadd.f32 %v733_v40, %v707_v16  ;;  %v6372_v22 = vrot.slane %v4560_v46, %v4504_v42  ;;  %v811_v62 = vsel %vm6221_vm8, %v4090_v23, %v4104_v27  ;;  %v6376_v16 = vld [vmem:[#allocation17_spill] sm:$0xff]  ;;  %v6377_v19 = vld [vmem:[#allocation18_spill] sm:$0xff] }
 0x1f2   :  { %v760_v57 = vmul.f32 %v756_v36, %v6371_v13  ;;  %v1053_v25 = vrot.slane %v4754_v60, %v4504_v42  ;;  %v734_v0 = vadd.f32 %v732_v8, %v706_v38  ;;  %v6373_v6 = vrot.slane %v4560_v46, %v4501_v51  ;;  %v4818_v40 = vpop.permute.xlu1 %1887 }
 0x1f3   :  { %v789_v44 = vmul.f32 %v785_v10, %v6372_v22  ;;  %v840_v48 = vsel %vm6222_vm5, %v4106_v28, %v4120_v31  ;;  %v1077_v14 = vrot.slane %v4788_v24, %v4501_v51  ;;  %v4820_v23 = vpop.permute.xlu0 %1933  ;;  %v763_v27 = vadd.f32 %v761_v61, %v735_v20 }
 0x1f4   :  { %v788_v45 = vmul.f32 %v784_v39, %v6373_v6  ;;  %v6374_v36 = vrot.slane %v4572_v34, %v4504_v42  ;;  %v839_v46 = vsel %vm6222_vm5, %v4112_v29, %v4106_v28  ;;  %v1081_v31 = vrot.slane %v4788_v24, %v4504_v42  ;;  %v4836_v39 = vld [vmem:[#allocation7 + $0x26] ss:$8 sm:$0x3]  ;;  %2421 = vrot.lane.b32.xlu1 %v4337_v9, %s3690_s6  ;;  %s6601_s6 = smov 83  }
 0x1f5   :  { %v762_v53 = vadd.f32 %v760_v57, %v734_v0  ;;  %v6375_v8 = vrot.slane %v4572_v34, %v4501_v51  ;;  %v868_v61 = vsel %vm6223_vm6, %v6377_v19, %v6376_v16  ;;  %vm6233_vm8 = vcmask 130048   ;;  %2448 = vrot.lane.b32.xlu0 %v4337_v9, %s3691_s30  ;;  %v6379_v34 = vld [vmem:[#allocation16_spill] sm:$0xff]  ;;  %v6382_v0 = vld [vmem:[#allocation19_spill] sm:$0xff]  ;;  %v4870_v16 = vld [vmem:[#allocation7 + $0x27] ss:$8 sm:$0x3] }
 0x1f6   :  { %v816_v3 = vmul.f32 %v812_v33, %v6374_v36  ;;  %v791_v28 = vadd.f32 %v789_v44, %v763_v27  ;;  %v6378_v29 = vrot.slane %v4580_v37, %v4504_v42  ;;  %v867_v13 = vsel %vm6223_vm6, %v6379_v34, %v6377_v19 }
 0x1f7   :  { %v815_v10 = vmul.f32 %v811_v62, %v6375_v8  ;;  %vm6227_vm5 = vcmask 121856   ;;  %v790_v33 = vadd.f32 %v788_v45, %v762_v53  ;;  %v6380_v20 = vrot.slane %v4580_v37, %v4501_v51  ;;  %v6381_v62 = vld [vmem:[#allocation22_spill] sm:$0xff]  ;;  %v4860_v27 = vpop.permute.xlu0 %1937  ;;  %v6384_v53 = vld [vmem:[#allocation20_spill] sm:$0xff] }
 0x1f8   :  { %v844_v38 = vmul.f32 %v840_v48, %v6378_v29  ;;  %v896_v44 = vsel %vm6224_vm7, %v6382_v0, %v6381_v62  ;;  %v1109_v6 = vrot.slane %v4816_v15, %v4504_v42  ;;  %v4858_v48 = vpop.permute.xlu1 %1891  ;;  %v818_v36 = vadd.f32 %v816_v3, %v791_v28  ;;  %v6387_v3 = vld [vmem:[#allocation24_spill] sm:$0xff]  ;;  %2446 = vrot.lane.b32.xlu1 %v4312_v47, %s3691_s30 }
 0x1f9   :  { %v843_v22 = vmul.f32 %v839_v46, %v6380_v20  ;;  %v6383_v8 = vrot.slane %v4582_v35, %v4504_v42  ;;  %v895_v37 = vsel %vm6224_vm7, %v6384_v53, %v6382_v0  ;;  %v817_v19 = vadd.f32 %v815_v10, %v790_v33  ;;  %v6386_v20 = vld [vmem:[#allocation23_spill] sm:$0xff]  ;;  %2473 = vrot.lane.b32.xlu0 %v4312_v47, %s3692_s8  ;;  %v6392_v46 = vld [vmem:[#allocation25_spill] sm:$0xff]  ;;  %v6396_v0 = vld [vmem:[#allocation30_spill] sm:$0xff] }
 0x1fa   :  { %v6385_v29 = vrot.slane %v4582_v35, %v4501_v51  ;;  %v924_v28 = vsel %vm6225_vm9, %v6387_v3, %v6386_v20  ;;  %vm6228_vm6 = vcmask 113664   ;;  %v846_v62 = vadd.f32 %v844_v38, %v818_v36  ;;  %v6389_v35 = vld [vmem:[#allocation21_spill] sm:$0xff]  ;;  %v6391_v20 = vld [vmem:[#allocation28_spill] sm:$0xff] }
 0x1fb   :  { %v872_v45 = vmul.f32 %v868_v61, %v6383_v8  ;;  %v1185_v61 = vld [vmem:[#allocation7 + $0x30] ss:$8 sm:$0x3]  ;;  %v6388_v10 = vrot.slane %v4605_v5, %v4504_v42  ;;  %vm6229_vm7 = vcmask 105472   ;;  %v845_v8 = vadd.f32 %v843_v22, %v817_v19  ;;  %v6393_v19 = vld [vmem:[#allocation26_spill] sm:$0xff] }
 0x1fc   :  { %v871_v34 = vmul.f32 %v867_v13, %v6385_v29  ;;  %v923_v13 = vsel %vm6225_vm9, %v6389_v35, %v6387_v3  ;;  %v6390_v53 = vrot.slane %v4605_v5, %v4501_v51  ;;  %v952_v38 = vsel %vm6234_vm10, %v6392_v46, %v6391_v20  ;;  %v4898_v36 = vpop.permute.xlu1 %1935  ;;  %2450 = vrot.lane.b32.xlu1 %v4323_v52, %s3691_s30  ;;  %s6603_s30 = smov 82  }
 0x1fd   :  { %v900_v33 = vmul.f32 %v896_v44, %v6388_v10  ;;  %v4900_v10 = vpop.permute.xlu0 %1962  ;;  %v874_v3 = vadd.f32 %v872_v45, %v846_v62  ;;  %v928_v22 = vmul.f32 %v924_v28, %v913_v26  ;;  %v951_v5 = vsel %vm6234_vm10, %v6393_v19, %v6392_v46  ;;  %v6395_v44 = vld [vmem:[#allocation29_spill] sm:$0xff]  ;;  %v3454_v45 = vld.sshfl [vmem:[#allocation2 + $0x2] sm:$0x33 pattern:$0x76325410]  ;;  %2477 = vrot.lane.b32.xlu0 %v4323_v52, %s3692_s8 }
 0x1fe   :  { %v899_v29 = vmul.f32 %v895_v37, %v6390_v53  ;;  %v1190_v37 = vrot.slane %v1185_v61, %v4501_v51  ;;  %v873_v35 = vadd.f32 %v871_v34, %v845_v8  ;;  %v6394_v53 = vrot.slane %v4620_v2, %v4501_v51  ;;  %v6397_v2 = vld [vmem:[#allocation27_spill] sm:$0xff]  ;;  %v6398_v8 = vld [vmem:[#allocation34_spill] sm:$0xff] }
 0x1ff   :  { %v980_v57 = vsel %vm6226_vm4, %v6396_v0, %v6395_v44  ;;  %vm6230_vm9 = vcmask 23552   ;;  %v902_v26 = vadd.f32 %v900_v33, %v874_v3  ;;  %v956_v46 = vmul.f32 %v952_v38, %v941_v56  ;;  %v6399_v44 = vld [vmem:[#allocation31_spill] sm:$0xff] }
 0x200   :  { %v927_v20 = vmul.f32 %v923_v13, %v6394_v53  ;;  %v979_v34 = vsel %vm6226_vm4, %v6397_v2, %v6396_v0  ;;  %v1194_v28 = vrot.slane %v1185_v61, %v4504_v42  ;;  %v901_v62 = vadd.f32 %v899_v29, %v873_v35  ;;  %v4932_v3 = vpop.permute.xlu1 %1960  ;;  %v6400_v61 = vld [vmem:[#allocation32_spill] sm:$0xff]  ;;  %2475 = vrot.lane.b32.xlu1 %v4337_v9, %s3692_s8 }
 0x201   :  { %v955_v13 = vmul.f32 %v951_v5, %v937_v4  ;;  %v1008_v19 = vsel %vm6233_vm8, %v6399_v44, %v6398_v8  ;;  %v1205_v33 = vcombine.high %v3454_v45, %v3454_v45  ;;  %v4934_v53 = vpop.permute.xlu0 %1987  ;;  %v930_v56 = vadd.f32 %v928_v22, %v902_v26  ;;  %v6401_v5 = vld [vmem:[#allocation35_spill] sm:$0xff]  ;;  %v6402_v35 = vld [vmem:[#allocation36_spill] sm:$0xff]  ;;  %2502 = vrot.lane.b32.xlu0 %v4337_v9, %s3693_s9 }
 0x202   :  { %v984_v0 = vmul.f32 %v980_v57, %v969_v11  ;;  %v1007_v29 = vsel %vm6233_vm8, %v6400_v61, %v6399_v44  ;;  %v4942_v54 = vmul.f32 %v3454_v45, %v1190_v37  ;;  %v929_v4 = vadd.f32 %v927_v20, %v901_v62  ;;  %v4950_v22 = vld [vmem:[#allocation7 + $0x31] ss:$8 sm:$0x3]  ;;  %v6407_v61 = vld [vmem:[#allocation41_spill] sm:$0xff] }
 0x203   :  { %v983_v38 = vmul.f32 %v979_v34, %v965_v59  ;;  %v1036_v2 = vsel %vm6227_vm5, %v6402_v35, %v6401_v5  ;;  %vm6231_vm4 = vcmask 15360   ;;  %v958_v11 = vadd.f32 %v956_v46, %v930_v56  ;;  %v6404_v26 = vld [vmem:[#allocation40_spill] sm:$0xff]  ;;  %v6405_v34 = vld [vmem:[#allocation37_spill] sm:$0xff] }
 0x204   :  { %v1012_v57 = vmul.f32 %v1008_v19, %v997_v17  ;;  %v1035_v59 = vsel %vm6227_vm5, %v6403_v21, %v6402_v35  ;;  %v1165_v37 = vrot.slane %v4870_v16, %v4504_v42  ;;  %v957_v20 = vadd.f32 %v955_v13, %v929_v4  ;;  %v4972_v8 = vpop.permute.xlu1 %1964  ;;  %v6406_v13 = vld [vmem:[#allocation38_spill] sm:$0xff]  ;;  %v4984_v56 = vld [vmem:[#allocation7 + $0x32] ss:$8 sm:$0x3]  ;;  %2500 = vrot.lane.b32.xlu1 %v4312_v47, %s3693_s9 }
 0x205   :  { %v1011_v45 = vmul.f32 %v1007_v29, %v993_v30  ;;  %v1064_v46 = vsel %vm6228_vm6, %v6405_v34, %v6404_v26  ;;  %v4970_v62 = vmul.f32 %v1205_v33, %v1194_v28  ;;  %v4974_v17 = vpop.permute.xlu0 %1991  ;;  %v986_v44 = vadd.f32 %v984_v0, %v958_v11  ;;  %v6408_v0 = vld [vmem:[#allocation42_spill] sm:$0xff]  ;;  %2527 = vrot.lane.b32.xlu0 %v4312_v47, %s6409_s2  ;;  %v6412_v11 = vld [vmem:[#allocation43_spill] sm:$0xff] }
 0x206   :  { %v1040_v19 = vmul.f32 %v1036_v2, %v1025_v55  ;;  %v1063_v12 = vsel %vm6228_vm6, %v6406_v13, %v6405_v34  ;;  %v1219_v30 = vrot.slane %v4950_v22, %v4501_v51  ;;  %v985_v28 = vadd.f32 %v983_v38, %v957_v20  ;;  %v6410_v38 = vld [vmem:[#allocation39_spill] sm:$0xff]  ;;  %v6411_v2 = vld [vmem:[#allocation46_spill] sm:$0xff] }
 0x207   :  { %v1039_v33 = vmul.f32 %v1035_v59, %v1021_v18  ;;  %v1092_v29 = vsel %vm6229_vm7, %v6408_v0, %v6407_v61  ;;  %vm6232_vm5 = vcmask 7168   ;;  %v1014_v55 = vadd.f32 %v1012_v57, %v986_v44  ;;  %v5012_v21 = vld [vmem:[#allocation7 + $0x33] ss:$8 sm:$0x3] }
 0x208   :  { %v1068_v4 = vmul.f32 %v1064_v46, %v1053_v25  ;;  %v1091_v43 = vsel %vm6229_vm7, %v6410_v38, %v6408_v0  ;;  %v1223_v18 = vrot.slane %v4950_v22, %v4504_v42  ;;  %v1013_v5 = vadd.f32 %v1011_v45, %v985_v28  ;;  %v5014_v59 = vpop.permute.xlu1 %1989  ;;  %v6414_v13 = vld [vmem:[#allocation47_spill] sm:$0xff]  ;;  %2504 = vrot.lane.b32.xlu1 %v4323_v52, %s3693_s9  ;;  %v6418_v38 = vld [vmem:[#allocation52_spill] sm:$0xff] }
 0x209   :  { %v1067_v35 = vmul.f32 %v1063_v12, %v1049_v63  ;;  %v1120_v57 = vsel %vm6230_vm9, %v6412_v11, %v6411_v2  ;;  %vm6235_vm6 = vcmask 1039360   ;;  %v1264_v25 = vrot.slane %v4984_v56, %v4501_v51  ;;  %v5016_v20 = vpop.permute.xlu0 %2016  ;;  %v6413_v63 = vld [vmem:[#allocation44_spill] sm:$0xff]  ;;  %2531 = vrot.lane.b32.xlu0 %v4323_v52, %s6409_s2 }
 0x20a   :  { %v1042_v26 = vadd.f32 %v1040_v19, %v1014_v55  ;;  %v1096_v60 = vmul.f32 %v1092_v29, %v1081_v31  ;;  %v1119_v45 = vsel %vm6230_vm9, %v6413_v63, %v6412_v11  ;;  %v1268_v34 = vrot.slane %v4984_v56, %v4504_v42  ;;  %v6415_v12 = vld [vmem:[#allocation48_spill] sm:$0xff]  ;;  %v6436_v63 = vld [vmem:[#allocation59_spill] sm:$0xff] }
 0x20b   :  { %v1041_v46 = vadd.f32 %v1039_v33, %v1013_v5  ;;  %v1095_v44 = vmul.f32 %v1091_v43, %v1077_v14  ;;  %v1148_v19 = vsel %vm6231_vm4, %v6415_v12, %v6414_v13  ;;  %vm6236_vm7 = vcmask 1031168   ;;  %v6416_v33 = vld [vmem:[#allocation45_spill] sm:$0xff]  ;;  %v5044_v61 = vld [vmem:[#allocation7 + $0x34] ss:$8 sm:$0x3] }
 0x20c   :  { %v1070_v31 = vadd.f32 %v1068_v4, %v1042_v26  ;;  %v1124_v28 = vmul.f32 %v1120_v57, %v1109_v6  ;;  %v1147_v24 = vsel %vm6231_vm4, %v6416_v33, %v6415_v12  ;;  %v1292_v14 = vrot.slane %v5012_v21, %v4501_v51  ;;  %v6419_v4 = vld [vmem:[#allocation49_spill] sm:$0xff]  ;;  %v5052_v6 = vld [vmem:[#allocation7 + $0x35] ss:$8 sm:$0x3]  ;;  %v5054_v5 = vpop.permute.xlu1 %2014  ;;  %v6421_v26 = vld [vmem:[#allocation50_spill] sm:$0xff]  ;;  %2529 = vrot.lane.b32.xlu1 %v4337_v9, %s6409_s2 }
 0x20d   :  { %v1069_v0 = vadd.f32 %v1067_v35, %v1041_v46  ;;  %v6417_v29 = vrot.slane %v4816_v15, %v4501_v51  ;;  %v1176_v43 = vsel %vm6232_vm5, %v6419_v4, %v6418_v38  ;;  %vm6237_vm9 = vcmask 1022976   ;;  %v5056_v2 = vpop.permute.xlu0 %2041  ;;  %2556 = vrot.lane.b32.xlu0 %v4337_v9, %s6423_s14  ;;  %v6430_v9 = vld [vmem:[#allocation55_spill] sm:$0xff] }
 0x20e   :  { %v1098_v11 = vadd.f32 %v1096_v60, %v1070_v31  ;;  %v6420_v57 = vrot.slane %v4836_v39, %v4504_v42  ;;  %v1175_v15 = vsel %vm6232_vm5, %v6421_v26, %v6419_v4  ;;  %v6422_v46 = vrot.slane %v4836_v39, %v4501_v51  ;;  %v5071_v60 = vld [vmem:[#allocation7 + $0x36] ss:$8 sm:$0x3]  ;;  %v5073_v31 = vld [vmem:[#allocation7 + $0x37] ss:$8 sm:$0x3] }
 0x20f   :  { %v1123_v55 = vmul.f32 %v1119_v45, %v6417_v29  ;;  %v1097_v45 = vadd.f32 %v1095_v44, %v1069_v0  ;;  %vm6238_vm4 = vcmask 941056   ;;  %v1180_v39 = vmul.f32 %v1176_v43, %v1165_v37  ;;  %v5152_v44 = vld [vmem:[#allocation7 + $0x45] ss:$8 sm:$0x3] }
 0x210   :  { %v1152_v35 = vmul.f32 %v1148_v19, %v6420_v57  ;;  %v1151_v13 = vmul.f32 %v1147_v24, %v6422_v46  ;;  %v1126_v19 = vadd.f32 %v1124_v28, %v1098_v11  ;;  %v5086_v24 = vld [vmem:[#allocation7 + $0x40] ss:$8 sm:$0x3]  ;;  %v6424_v29 = vrot.slane %v4870_v16, %v4501_v51  ;;  %v5093_v28 = vld [vmem:[#allocation7 + $0x41] ss:$8 sm:$0x3]  ;;  %v5095_v37 = vpop.permute.xlu1 %2018  ;;  %2554 = vrot.lane.b32.xlu1 %v4312_v47, %s6423_s14 }
 0x211   :  { %v1125_v0 = vadd.f32 %v1123_v55, %v1097_v45  ;;  %vm6239_vm5 = vcmask 932864   ;;  %v5097_v4 = vpop.permute.xlu0 %2045  ;;  %v5105_v57 = vld [vmem:[#allocation7 + $0x42] ss:$8 sm:$0x3]  ;;  %vm6240_vm8 = vcmask 924672   ;;  %v6428_v16 = vld [vmem:[#allocation51_spill] sm:$0xff] }
 0x212   :  { %v1179_v38 = vmul.f32 %v1175_v15, %v6424_v29  ;;  %v1154_v43 = vadd.f32 %v1152_v35, %v1126_v19  ;;  %v5111_v35 = vld [vmem:[#allocation7 + $0x43] ss:$8 sm:$0x3]  ;;  %vm6242_vm10 = vcmask 916480   ;;  %v6431_v15 = vld [vmem:[#allocation56_spill] sm:$0xff] }
 0x213   :  { %v1153_v26 = vadd.f32 %v1151_v13, %v1125_v0  ;;  %v6426_v46 = vld [vmem:[#allocation110_spill] sm:$0xff]  ;;  %v6429_v55 = vld [vmem:[#allocation53_spill] sm:$0xff] }
 0x214   :  { %2628 = vrot.lane.b32.xlu0 %v6426_v46, %s6425_s17  ;;  %v1182_v19 = vadd.f32 %v1180_v39, %v1154_v43  ;;  %v6427_v29 = vld [vmem:[#allocation54_spill] sm:$0xff]  ;;  %2558 = vrot.lane.b32.xlu1 %v4323_v52, %s6423_s14  ;;  %v6440_v52 = vld [vmem:[#allocation64_spill] sm:$0xff] }
 0x215   :  { %v1250_v13 = vsel %vm6235_vm6, %v6428_v16, %v6427_v29  ;;  %v1181_v45 = vadd.f32 %v1179_v38, %v1153_v26  ;;  %v1251_v11 = vsel %vm6235_vm6, %v6427_v29, %v6429_v55  ;;  %v5131_v43 = vld [vmem:[#allocation7 + $0x44] ss:$8 sm:$0x3]  ;;  %v5133_v16 = vpop.permute.xlu1 %2043  ;;  %v5135_v0 = vpop.permute.xlu0 %2070  ;;  %v1278_v38 = vsel %vm6236_vm7, %v6431_v15, %v6430_v9  ;;  %v6433_v29 = vld [vmem:[#allocation111_spill] sm:$0xff] }
 0x216   :  { %v1254_v39 = vmul.f32 %v1250_v13, %v1219_v30  ;;  %v6432_v47 = vld [vmem:[#allocation58_spill] sm:$0xff]  ;;  %vm6243_vm6 = vcmask 908288   ;;  %v5158_v15 = vcombine.high %v6426_v46, %v6426_v46  ;;  %v1211_v26 = vadd.f32 %v4970_v62, %v1182_v19  ;;  %v6435_v13 = vld [vmem:[#allocation57_spill] sm:$0xff] }
 0x217   :  { %v1279_v33 = vsel %vm6236_vm7, %v6430_v9, %v6432_v47  ;;  %v1255_v30 = vmul.f32 %v1251_v11, %v1223_v18  ;;  %v6434_v9 = vld [vmem:[#allocation60_spill] sm:$0xff]  ;;  %v1210_v55 = vadd.f32 %v4942_v54, %v1181_v45  ;;  %v1282_v12 = vmul.f32 %v1278_v38, %v1264_v25  ;;  %v5180_v18 = vld [vmem:[#allocation7 + $0x46] ss:$8 sm:$0x3] }
 0x218   :  { %2632 = vrot.lane.b32.xlu0 %v6433_v29, %s6425_s17  ;;  %v1306_v47 = vsel %vm6237_vm9, %v6435_v13, %v6434_v9  ;;  %v1307_v62 = vsel %vm6237_vm9, %v6434_v9, %v6436_v63  ;;  %vm6244_vm7 = vcmask 900096   ;;  %v1283_v54 = vmul.f32 %v1279_v33, %v1268_v34  ;;  %v6438_v45 = vld [vmem:[#allocation61_spill] sm:$0xff]  ;;  %v6439_v25 = vld [vmem:[#allocation62_spill] sm:$0xff]  ;;  %2630 = vrot.lane.b32.xlu1 %v5158_v15, %s6425_s17 }
 0x219   :  { %v5182_v11 = vpop.permute.xlu1 %2068  ;;  %v5184_v19 = vpop.permute.xlu0 %2095  ;;  %v1334_v38 = vsel %vm6238_vm4, %v6439_v25, %v6438_v45  ;;  %v1256_v13 = vadd.f32 %v1254_v39, %v1210_v55  ;;  %v1310_v22 = vmul.f32 %v1306_v47, %v1292_v14  ;;  %v1335_v56 = vsel %vm6238_vm4, %v6438_v45, %v6440_v52  ;;  %v5202_v34 = vld [vmem:[#allocation7 + $0x47] ss:$8 sm:$0x3]  ;;  %v6444_v14 = vld [vmem:[#allocation63_spill] sm:$0xff]  ;;  %v6451_v52 = vld [vmem:[#allocation68_spill] sm:$0xff] }
 0x21a   :  { %6437 = vst [vmem:[#allocation17_spill] sm:$0xff] %v5184_v19  ;;  %vm6245_vm9 = vcmask 891904   ;;  %v1257_v33 = vadd.f32 %v1255_v30, %v1211_v26  ;;  %v6442_v39 = vrot.slane %v5012_v21, %v4504_v42  ;;  %v6443_v25 = vld [vmem:[#allocation66_spill] sm:$0xff]  ;;  %v6445_v9 = vrot.slane %v5044_v61, %v4501_v51  ;;  %v6446_v19 = vld [vmem:[#allocation65_spill] sm:$0xff] }
 0x21b   :  { %v1362_v47 = vsel %vm6239_vm5, %v6444_v14, %v6443_v25  ;;  %v1284_v45 = vadd.f32 %v1282_v12, %v1256_v13  ;;  %v1363_v26 = vsel %vm6239_vm5, %v6443_v25, %v6446_v19  ;;  %vm6246_vm4 = vcmask 809984   ;;  %v6450_v14 = vld [vmem:[#allocation67_spill] sm:$0xff] }
 0x21c   :  { %2657 = vrot.lane.b32.xlu0 %v5158_v15, %s6441_s18  ;;  %v1311_v55 = vmul.f32 %v1307_v62, %v6442_v39  ;;  %v1338_v63 = vmul.f32 %v1334_v38, %v6445_v9  ;;  %v1285_v39 = vadd.f32 %v1283_v54, %v1257_v33  ;;  %v6449_v12 = vrot.slane %v5044_v61, %v4504_v42  ;;  %v5236_v9 = vld [vmem:[#allocation7 + $0x50] ss:$8 sm:$0x3] }
 0x21d   :  { %v5224_v30 = vpop.permute.xlu1 %2072  ;;  %v5226_v62 = vpop.permute.xlu0 %2099  ;;  %v1390_v38 = vsel %vm6240_vm8, %v6451_v52, %v6450_v14  ;;  %v1312_v25 = vadd.f32 %v1310_v22, %v1284_v45  ;;  %v6452_v21 = vrot.slane %v5052_v6, %v4501_v51  ;;  %vm6247_vm5 = vcmask 801792   ;;  %2655 = vrot.lane.b32.xlu1 %v6426_v46, %s6441_s18  ;;  %v6456_v33 = vld [vmem:[#allocation72_spill] sm:$0xff]  ;;  %v6457_v52 = vld [vmem:[#allocation69_spill] sm:$0xff] }
 0x21e   :  { %6447 = vst [vmem:[#allocation18_spill] sm:$0xff] %v5224_v30  ;;  %6448 = vst [vmem:[#allocation16_spill] sm:$0xff] %v5226_v62  ;;  %v1339_v13 = vmul.f32 %v1335_v56, %v6449_v12  ;;  %v6453_v62 = vld [vmem:[#allocation70_spill] sm:$0xff]  ;;  %v1313_v61 = vadd.f32 %v1311_v55, %v1285_v39  ;;  %v6455_v56 = vrot.slane %v5052_v6, %v4504_v42 }
 0x21f   :  { %v1366_v30 = vmul.f32 %v1362_v47, %v6452_v21  ;;  %v1391_v54 = vsel %vm6240_vm8, %v6450_v14, %v6453_v62  ;;  %v1418_v47 = vsel %vm6242_vm10, %v6457_v52, %v6456_v33  ;;  %v1340_v21 = vadd.f32 %v1338_v63, %v1312_v25  ;;  %v6459_v14 = vld [vmem:[#allocation71_spill] sm:$0xff] }
 0x220   :  { %2682 = vrot.lane.b32.xlu0 %v6426_v46, %s6454_s19  ;;  %v1367_v22 = vmul.f32 %v1363_v26, %v6455_v56  ;;  %v6458_v62 = vrot.slane %v5071_v60, %v4501_v51  ;;  %v1419_v55 = vsel %vm6242_vm10, %v6456_v33, %v6459_v14  ;;  %vm6249_vm8 = vcmask 793600   ;;  %v5264_v26 = vld [vmem:[#allocation7 + $0x51] ss:$8 sm:$0x3]  ;;  %v6470_v33 = vld [vmem:[#allocation77_spill] sm:$0xff] }
 0x221   :  { %v5266_v39 = vpop.permute.xlu1 %2097  ;;  %v5268_v56 = vpop.permute.xlu0 %2124  ;;  %v1341_v52 = vadd.f32 %v1339_v13, %v1313_v61  ;;  %v6461_v63 = vrot.slane %v5071_v60, %v4504_v42  ;;  %v1368_v14 = vadd.f32 %v1366_v30, %v1340_v21  ;;  %v6464_v6 = vrot.slane %v5073_v31, %v4501_v51  ;;  %v5284_v61 = vld [vmem:[#allocation7 + $0x52] ss:$8 sm:$0x3]  ;;  %2659 = vrot.lane.b32.xlu1 %v6433_v29, %s6441_s18  ;;  %v6467_v21 = vld [vmem:[#allocation78_spill] sm:$0xff] }
 0x222   :  { %v1394_v12 = vmul.f32 %v1390_v38, %v6458_v62  ;;  %6460 = vst [vmem:[#allocation22_spill] sm:$0xff] %v5266_v39  ;;  %v6462_v38 = vld [vmem:[#allocation73_spill] sm:$0xff]  ;;  %v6463_v62 = vld [vmem:[#allocation74_spill] sm:$0xff]  ;;  %v6465_v39 = vld [vmem:[#allocation76_spill] sm:$0xff]  ;;  %vm1613_vm10 = vcmask 785408   ;;  %v6466_v30 = vrot.slane %v5073_v31, %v4504_v42  ;;  %v6476_v31 = vrot.slane %v5093_v28, %v4501_v51 }
 0x223   :  { %v1395_v25 = vmul.f32 %v1391_v54, %v6461_v63  ;;  %v1446_v45 = vsel %vm6243_vm6, %v6463_v62, %v6462_v38  ;;  %v1422_v19 = vmul.f32 %v1418_v47, %v6464_v6  ;;  %v1447_v13 = vsel %vm6243_vm6, %v6462_v38, %v6465_v39  ;;  %v6468_v47 = vld [vmem:[#allocation75_spill] sm:$0xff]  ;;  %v6475_v39 = vld [vmem:[#allocation80_spill] sm:$0xff] }
 0x224   :  { %2686 = vrot.lane.b32.xlu0 %v6433_v29, %s6454_s19  ;;  %v1369_v60 = vadd.f32 %v1367_v22, %v1341_v52  ;;  %v1423_v54 = vmul.f32 %v1419_v55, %v6466_v30  ;;  %v1474_v6 = vsel %vm6244_vm7, %v6468_v47, %v6467_v21  ;;  %v1396_v63 = vadd.f32 %v1394_v12, %v1368_v14  ;;  %v6474_v47 = vld [vmem:[#allocation79_spill] sm:$0xff] }
 0x225   :  { %v6469_v38 = vrot.slane %v5086_v24, %v4501_v51  ;;  %v1475_v22 = vsel %vm6244_vm7, %v6467_v21, %v6470_v33  ;;  %vm6250_vm6 = vcmask 777216   ;;  %v5306_v55 = vpop.permute.xlu1 %2122  ;;  %v5308_v52 = vpop.permute.xlu0 %2149  ;;  %v6473_v12 = vrot.slane %v5086_v24, %v4504_v42  ;;  %v5318_v21 = vld [vmem:[#allocation7 + $0x53] ss:$8 sm:$0x3]  ;;  %2684 = vrot.lane.b32.xlu1 %v5158_v15, %s6454_s19 }
 0x226   :  { %6471 = vst [vmem:[#allocation19_spill] sm:$0xff] %v5306_v55  ;;  %6472 = vst [vmem:[#allocation20_spill] sm:$0xff] %v5308_v52  ;;  %v1397_v30 = vadd.f32 %v1395_v25, %v1369_v60  ;;  %v1478_v55 = vmul.f32 %v1474_v6, %v6476_v31  ;;  %v6477_v52 = vld [vmem:[#allocation82_spill] sm:$0xff]  ;;  %vm1669_vm7 = vcmask 769024   ;;  %v6480_v60 = vld [vmem:[#allocation84_spill] sm:$0xff] }
 0x227   :  { %v1450_v62 = vmul.f32 %v1446_v45, %v6469_v38  ;;  %v1451_v14 = vmul.f32 %v1447_v13, %v6473_v12  ;;  %v1502_v45 = vsel %vm6245_vm9, %v6475_v39, %v6474_v47  ;;  %v1424_v38 = vadd.f32 %v1422_v19, %v1396_v63  ;;  %v6481_v39 = vld [vmem:[#allocation81_spill] sm:$0xff] }
 0x228   :  { %v1503_v25 = vsel %vm6245_vm9, %v6474_v47, %v6477_v52  ;;  %2711 = vrot.lane.b32.xlu0 %v5158_v15, %s6478_s20  ;;  %v1425_v24 = vadd.f32 %v1423_v54, %v1397_v30  ;;  %v6479_v13 = vrot.slane %v5093_v28, %v4504_v42  ;;  %v1530_v6 = vsel %vm6246_vm4, %v6481_v39, %v6480_v60  ;;  %v6483_v47 = vld [vmem:[#allocation83_spill] sm:$0xff] }
 0x229   :  { %v1452_v31 = vadd.f32 %v1450_v62, %v1424_v38  ;;  %v6482_v52 = vrot.slane %v5105_v57, %v4501_v51  ;;  %v1531_v54 = vsel %vm6246_vm4, %v6480_v60, %v6483_v47  ;;  %vm6251_vm9 = vcmask 760832   ;;  %v5348_v30 = vpop.permute.xlu1 %2126  ;;  %2709 = vrot.lane.b32.xlu1 %v6426_v46, %s6478_s20  ;;  %v6496_v60 = vld [vmem:[#allocation89_spill] sm:$0xff] }
 0x22a   :  { %v1479_v19 = vmul.f32 %v1475_v22, %v6479_v13  ;;  %v5346_v22 = vld [vmem:[#allocation7 + $0x54] ss:$8 sm:$0x3]  ;;  %6484 = vst [vmem:[#allocation23_spill] sm:$0xff] %v5348_v30  ;;  %v5350_v13 = vpop.permute.xlu0 %2153  ;;  %v1453_v39 = vadd.f32 %v1451_v14, %v1425_v24  ;;  %v6486_v62 = vrot.slane %v5105_v57, %v4504_v42  ;;  %v6489_v28 = vrot.slane %v5111_v35, %v4501_v51 }
 0x22b   :  { %v1506_v12 = vmul.f32 %v1502_v45, %v6482_v52  ;;  %6485 = vst [vmem:[#allocation24_spill] sm:$0xff] %v5350_v13  ;;  %v6487_v45 = vld [vmem:[#allocation85_spill] sm:$0xff]  ;;  %v6488_v52 = vld [vmem:[#allocation86_spill] sm:$0xff]  ;;  %v1480_v47 = vadd.f32 %v1478_v55, %v1452_v31  ;;  %v6490_v30 = vld [vmem:[#allocation88_spill] sm:$0xff]  ;;  %vm1725_vm4 = vcmask 678912   ;;  %v6492_v55 = vrot.slane %v5111_v35, %v4504_v42 }
 0x22c   :  { %v1507_v38 = vmul.f32 %v1503_v25, %v6486_v62  ;;  %v1558_v63 = vsel %vm6247_vm5, %v6488_v52, %v6487_v45  ;;  %v1534_v33 = vmul.f32 %v1530_v6, %v6489_v28  ;;  %v1559_v14 = vsel %vm6247_vm5, %v6487_v45, %v6490_v30  ;;  %v5366_v24 = vld [vmem:[#allocation7 + $0x55] ss:$8 sm:$0x3]  ;;  %2736 = vrot.lane.b32.xlu0 %v6426_v46, %s6491_s21  ;;  %v6493_v31 = vld [vmem:[#allocation90_spill] sm:$0xff] }
 0x22d   :  { %v1481_v57 = vadd.f32 %v1479_v19, %v1453_v39  ;;  %v1535_v25 = vmul.f32 %v1531_v54, %v6492_v55  ;;  %v6494_v6 = vld [vmem:[#allocation87_spill] sm:$0xff]  ;;  %v1508_v62 = vadd.f32 %v1506_v12, %v1480_v47  ;;  %v6495_v45 = vrot.slane %v5131_v43, %v4501_v51  ;;  %v5388_v54 = vpop.permute.xlu1 %2151  ;;  %v6500_v30 = vld [vmem:[#allocation92_spill] sm:$0xff]  ;;  %2713 = vrot.lane.b32.xlu1 %v6433_v29, %s6478_s20 }
 0x22e   :  { %v1586_v28 = vsel %vm6249_vm8, %v6494_v6, %v6493_v31  ;;  %v1587_v19 = vsel %vm6249_vm8, %v6493_v31, %v6496_v60  ;;  %vm6253_vm5 = vcmask 670720   ;;  %v5390_v39 = vpop.permute.xlu0 %2178  ;;  %v6498_v12 = vrot.slane %v5131_v43, %v4504_v42  ;;  %v6499_v6 = vld [vmem:[#allocation91_spill] sm:$0xff] }
 0x22f   :  { %v1562_v52 = vmul.f32 %v1558_v63, %v6495_v45  ;;  %6497 = vst [vmem:[#allocation21_spill] sm:$0xff] %v5390_v39  ;;  %v1509_v55 = vadd.f32 %v1507_v38, %v1481_v57  ;;  %v1614_v63 = vsel %vm1613_vm10, %v6500_v30, %v6499_v6  ;;  %v5400_v31 = vld [vmem:[#allocation7 + $0x56] ss:$8 sm:$0x3]  ;;  %v1536_v45 = vadd.f32 %v1534_v33, %v1508_v62  ;;  %v6502_v39 = vld [vmem:[#allocation94_spill] sm:$0xff]  ;;  %v6505_v30 = vld [vmem:[#allocation93_spill] sm:$0xff] }
 0x230   :  { %v1563_v47 = vmul.f32 %v1559_v14, %v6498_v12  ;;  %v6501_v35 = vrot.slane %v5152_v44, %v4501_v51  ;;  %v1615_v38 = vsel %vm1613_vm10, %v6499_v6, %v6502_v39  ;;  %vm1781_vm8 = vcmask 662528   ;;  %2740 = vrot.lane.b32.xlu0 %v6433_v29, %s6491_s21  ;;  %v6504_v57 = vld [vmem:[#allocation96_spill] sm:$0xff]  ;;  %v6507_v6 = vld [vmem:[#allocation95_spill] sm:$0xff]  ;;  %v6511_v62 = vld [vmem:[#allocation97_spill] sm:$0xff] }
 0x231   :  { %v1537_v43 = vadd.f32 %v1535_v25, %v1509_v55  ;;  %v6503_v14 = vrot.slane %v5152_v44, %v4504_v42  ;;  %v6506_v39 = vrot.slane %v5180_v18, %v4501_v51  ;;  %v1643_v25 = vsel %vm6250_vm6, %v6504_v57, %v6507_v6  ;;  %v5430_v55 = vpop.permute.xlu1 %2176  ;;  %2738 = vrot.lane.b32.xlu1 %v5158_v15, %s6491_s21 }
 0x232   :  { %v1590_v13 = vmul.f32 %v1586_v28, %v6501_v35  ;;  %v1642_v28 = vsel %vm6250_vm6, %v6505_v30, %v6504_v57  ;;  %v1564_v35 = vadd.f32 %v1562_v52, %v1536_v45  ;;  %6508 = vst [vmem:[#allocation28_spill] sm:$0xff] %v5430_v55  ;;  %v6510_v52 = vrot.slane %v5180_v18, %v4504_v42  ;;  %v6514_v55 = vld [vmem:[#allocation100_spill] sm:$0xff]  ;;  %v6520_v57 = vld [vmem:[#allocation101_spill] sm:$0xff] }
 0x233   :  { %v1591_v33 = vmul.f32 %v1587_v19, %v6503_v14  ;;  %v1618_v12 = vmul.f32 %v1614_v63, %v6506_v39  ;;  %v5428_v19 = vld [vmem:[#allocation7 + $0x57] ss:$8 sm:$0x3]  ;;  %v5432_v14 = vpop.permute.xlu0 %2203  ;;  %v1565_v30 = vadd.f32 %v1563_v47, %v1537_v43  ;;  %v6512_v63 = vld [vmem:[#allocation98_spill] sm:$0xff]  ;;  %v6513_v44 = vrot.slane %v5202_v34, %v4501_v51 }
 0x234   :  { %6509 = vst [vmem:[#allocation25_spill] sm:$0xff] %v5432_v14  ;;  %v1619_v45 = vmul.f32 %v1615_v38, %v6510_v52  ;;  %v1670_v39 = vsel %vm1669_vm7, %v6512_v63, %v6511_v62  ;;  %v1592_v6 = vadd.f32 %v1590_v13, %v1564_v35  ;;  %v1671_v47 = vsel %vm1669_vm7, %v6511_v62, %v6514_v55  ;;  %v5448_v43 = vld [vmem:[#allocation7 + $0x60] ss:$8 sm:$0x3]  ;;  %v6524_v62 = vld [vmem:[#allocation104_spill] sm:$0xff] }
 0x235   :  { %v1646_v60 = vmul.f32 %v1642_v28, %v6513_v44  ;;  %vm6254_vm6 = vcmask 654336   ;;  %2765 = vrot.lane.b32.xlu0 %v5158_v15, %s6515_s22  ;;  %v1593_v18 = vadd.f32 %v1591_v33, %v1565_v30  ;;  %v6516_v13 = vrot.slane %v5202_v34, %v4504_v42  ;;  %v6517_v35 = vld [vmem:[#allocation102_spill] sm:$0xff]  ;;  %v6518_v28 = vld [vmem:[#allocation99_spill] sm:$0xff]  ;;  %2763 = vrot.lane.b32.xlu1 %v6426_v46, %s6515_s22 }
 0x236   :  { %v1698_v44 = vsel %vm6251_vm9, %v6518_v28, %v6517_v35  ;;  %v1620_v55 = vadd.f32 %v1618_v12, %v1592_v6  ;;  %v6519_v52 = vrot.slane %v5236_v9, %v4501_v51  ;;  %v1699_v33 = vsel %vm6251_vm9, %v6517_v35, %v6520_v57  ;;  %v6523_v6 = vld [vmem:[#allocation103_spill] sm:$0xff]  ;;  %v5482_v57 = vld [vmem:[#allocation7 + $0x61] ss:$8 sm:$0x3] }
 0x237   :  { %v1647_v38 = vmul.f32 %v1643_v25, %v6516_v13  ;;  %v5470_v25 = vpop.permute.xlu1 %2180  ;;  %v5472_v30 = vpop.permute.xlu0 %2207  ;;  %v1621_v13 = vadd.f32 %v1619_v45, %v1593_v18  ;;  %v6522_v28 = vrot.slane %v5236_v9, %v4504_v42  ;;  %v6525_v34 = vrot.slane %v5264_v26, %v4501_v51  ;;  %v6529_v18 = vld [vmem:[#allocation108_spill] sm:$0xff] }
 0x238   :  { %v1674_v63 = vmul.f32 %v1670_v39, %v6519_v52  ;;  %6521 = vst [vmem:[#allocation26_spill] sm:$0xff] %v5472_v30  ;;  %v1726_v39 = vsel %vm1725_vm4, %v6524_v62, %v6523_v6  ;;  %v1648_v35 = vadd.f32 %v1646_v60, %v1620_v55  ;;  %v6526_v30 = vld [vmem:[#allocation106_spill] sm:$0xff]  ;;  %vm1837_vm9 = vcmask 646144   ;;  %v6530_v62 = vld [vmem:[#allocation105_spill] sm:$0xff] }
 0x239   :  { %v1675_v12 = vmul.f32 %v1671_v47, %v6522_v28  ;;  %v1702_v14 = vmul.f32 %v1698_v44, %v6525_v34  ;;  %v1727_v45 = vsel %vm1725_vm4, %v6523_v6, %v6526_v30  ;;  %2790 = vrot.lane.b32.xlu0 %v6426_v46, %s6527_s23  ;;  %v1649_v9 = vadd.f32 %v1647_v38, %v1621_v13  ;;  %v6532_v6 = vld [vmem:[#allocation107_spill] sm:$0xff]  ;;  %v6535_v55 = vld [vmem:[#allocation109_spill] sm:$0xff] }
 0x23a   :  { %v6528_v47 = vrot.slane %v5264_v26, %v4504_v42  ;;  %v1754_v44 = vsel %vm6253_vm5, %v6530_v62, %v6529_v18  ;;  %v1676_v34 = vadd.f32 %v1674_v63, %v1648_v35  ;;  %v6531_v30 = vrot.slane %v5284_v61, %v4501_v51  ;;  %2767 = vrot.lane.b32.xlu1 %v6433_v29, %s6515_s22 }
 0x23b   :  { %v1755_v38 = vsel %vm6253_vm5, %v6529_v18, %v6532_v6  ;;  %v5512_v13 = vpop.permute.xlu1 %2205  ;;  %v1677_v62 = vadd.f32 %v1675_v12, %v1649_v9  ;;  %v6534_v63 = vrot.slane %v5284_v61, %v4504_v42  ;;  %v1913_v18 = vrot.slane %v5482_v57, %v4504_v42  ;;  %v5530_v9 = vld [vmem:[#allocation7 + $0x63] ss:$8 sm:$0x3] }
 0x23c   :  { %v1703_v60 = vmul.f32 %v1699_v33, %v6528_v47  ;;  %v1730_v28 = vmul.f32 %v1726_v39, %v6531_v30  ;;  %v5510_v33 = vld [vmem:[#allocation7 + $0x62] ss:$8 sm:$0x3]  ;;  %6533 = vst [vmem:[#allocation29_spill] sm:$0xff] %v5512_v13  ;;  %v5514_v47 = vpop.permute.xlu0 %2232  ;;  %v6536_v39 = vld [vmem:[#allocation112_spill] sm:$0xff]  ;;  %v1704_v6 = vadd.f32 %v1702_v14, %v1676_v34  ;;  %v6537_v26 = vrot.slane %v5318_v21, %v4501_v51 }
 0x23d   :  { %v1731_v35 = vmul.f32 %v1727_v45, %v6534_v63  ;;  %v1782_v30 = vsel %vm1781_vm8, %v6536_v39, %v6535_v55  ;;  %v6538_v13 = vld [vmem:[#allocation114_spill] sm:$0xff]  ;;  %vm1865_vm5 = vcmask 637952   ;;  %2794 = vrot.lane.b32.xlu0 %v6433_v29, %s6527_s23  ;;  %v6539_v14 = vrot.slane %v5318_v21, %v4504_v42  ;;  %v6542_v39 = vld [vmem:[#allocation115_spill] sm:$0xff] }
 0x23e   :  { %v1758_v52 = vmul.f32 %v1754_v44, %v6537_v26  ;;  %v1783_v12 = vsel %vm1781_vm8, %v6535_v55, %v6538_v13  ;;  %v1705_v61 = vadd.f32 %v1703_v60, %v1677_v62  ;;  %v6540_v44 = vld [vmem:[#allocation113_spill] sm:$0xff]  ;;  %v1732_v26 = vadd.f32 %v1730_v28, %v1704_v6  ;;  %v6544_v6 = vld [vmem:[#allocation116_spill] sm:$0xff]  ;;  %2792 = vrot.lane.b32.xlu1 %v5158_v15, %s6527_s23 }
 0x23f   :  { %v1759_v45 = vmul.f32 %v1755_v38, %v6539_v14  ;;  %v1810_v34 = vsel %vm6254_vm6, %v6540_v44, %v4651_v1  ;;  %v6541_v13 = vrot.slane %v5346_v22, %v4501_v51  ;;  %v1811_v60 = vsel %vm6254_vm6, %v4651_v1, %v6542_v39  ;;  %v5552_v38 = vpop.permute.xlu1 %2230  ;;  %v5564_v1 = vld [vmem:[#allocation7 + $0x64] ss:$8 sm:$0x3] }
 0x240   :  { %v5554_v62 = vpop.permute.xlu0 %2257  ;;  %v1733_v14 = vadd.f32 %v1731_v35, %v1705_v61  ;;  %v6543_v44 = vrot.slane %v5346_v22, %v4504_v42  ;;  %v1760_v39 = vadd.f32 %v1758_v52, %v1732_v26  ;;  %v6545_v21 = vrot.slane %v5366_v24, %v4501_v51 }
 0x241   :  { %v1786_v63 = vmul.f32 %v1782_v30, %v6541_v13  ;;  %v1838_v30 = vsel %vm1837_vm9, %v4694_v58, %v6544_v6  ;;  %v1980_v13 = vrot.slane %v5530_v9, %v4501_v51  ;;  %v1839_v35 = vsel %vm1837_vm9, %v6544_v6, %v4736_v50  ;;  %2819 = vrot.lane.b32.xlu0 %v5158_v15, %s6546_s24 }
 0x242   :  { %v1787_v28 = vmul.f32 %v1783_v12, %v6543_v44  ;;  %v1814_v55 = vmul.f32 %v1810_v34, %v6545_v21  ;;  %vm1893_vm6 = vcmask 629760   ;;  %v1761_v58 = vadd.f32 %v1759_v45, %v1733_v14  ;;  %2817 = vrot.lane.b32.xlu1 %v6426_v46, %s6546_s24 }
 0x243   :  { %v6547_v22 = vrot.slane %v5366_v24, %v4504_v42  ;;  %v1866_v12 = vsel %vm1865_vm5, %v4696_v49, %v4776_v41  ;;  %v1984_v61 = vrot.slane %v5530_v9, %v4504_v42  ;;  %v1788_v50 = vadd.f32 %v1786_v63, %v1760_v39  ;;  %v5594_v21 = vpop.permute.xlu1 %2234 }
 0x244   :  { %v6548_v34 = vrot.slane %v5400_v31, %v4501_v51  ;;  %v1867_v45 = vsel %vm1865_vm5, %v4776_v41, %v4738_v7  ;;  %v2007_v24 = vrot.slane %v5564_v1, %v4501_v51  ;;  %v5596_v49 = vpop.permute.xlu0 %2261  ;;  %v1789_v14 = vadd.f32 %v1787_v28, %v1761_v58  ;;  %v5612_v58 = vld [vmem:[#allocation7 + $0x66] ss:$8 sm:$0x3] }
 0x245   :  { %v1815_v52 = vmul.f32 %v1811_v60, %v6547_v22  ;;  %v5592_v60 = vld [vmem:[#allocation7 + $0x65] ss:$8 sm:$0x3]  ;;  %v6549_v63 = vrot.slane %v5400_v31, %v4504_v42  ;;  %v1894_v6 = vsel %vm1893_vm6, %v4818_v40, %v4778_v32  ;;  %v2011_v7 = vrot.slane %v5564_v1, %v4504_v42  ;;  %2844 = vrot.lane.b32.xlu0 %v6426_v46, %s6551_s25 }
 0x246   :  { %v1842_v26 = vmul.f32 %v1838_v30, %v6548_v34  ;;  %v1816_v41 = vadd.f32 %v1814_v55, %v1788_v50  ;;  %v6550_v30 = vrot.slane %v5428_v19, %v4501_v51  ;;  %v1895_v28 = vsel %vm1893_vm6, %v4778_v32, %v4858_v48  ;;  %2821 = vrot.lane.b32.xlu1 %v6433_v29, %s6546_s24 }
 0x247   :  { %v1843_v44 = vmul.f32 %v1839_v35, %v6549_v63  ;;  %v1817_v40 = vadd.f32 %v1815_v52, %v1789_v14  ;;  %v6552_v31 = vrot.slane %v5428_v19, %v4504_v42  ;;  %v1939_v1 = vsel %vm531_vm11, %v4820_v23, %v4898_v36 }
 0x248   :  { %v1870_v39 = vmul.f32 %v1866_v12, %v6550_v30  ;;  %v2034_v32 = vrot.slane %v5592_v60, %v4501_v51  ;;  %v1844_v48 = vadd.f32 %v1842_v26, %v1816_v41  ;;  %v6553_v35 = vrot.slane %v5448_v43, %v4501_v51  ;;  %v5634_v12 = vpop.permute.xlu1 %2259  ;;  %v5636_v50 = vpop.permute.xlu0 %2286 }
 0x249   :  { %v1871_v55 = vmul.f32 %v1867_v45, %v6552_v31  ;;  %v1940_v52 = vsel %vm531_vm11, %v4898_v36, %v4860_v27  ;;  %v2038_v19 = vrot.slane %v5592_v60, %v4504_v42  ;;  %v1845_v23 = vadd.f32 %v1843_v44, %v1817_v40  ;;  %v5646_v27 = vld [vmem:[#allocation7 + $0x67] ss:$8 sm:$0x3]  ;;  %2848 = vrot.lane.b32.xlu0 %v6433_v29, %s6551_s25 }
 0x24a   :  { %v1898_v22 = vmul.f32 %v1894_v6, %v6553_v35  ;;  %v6554_v34 = vrot.slane %v5448_v43, %v4504_v42  ;;  %v1966_v45 = vsel %vm559_vm12, %v4932_v3, %v4900_v10  ;;  %v2061_v14 = vrot.slane %v5612_v58, %v4501_v51  ;;  %v5694_v35 = vld [vmem:[#allocation7 + $0x71] ss:$8 sm:$0x3]  ;;  %2846 = vrot.lane.b32.xlu1 %v5158_v15, %s6551_s25 }
 0x24b   :  { %v1872_v36 = vadd.f32 %v1870_v39, %v1844_v48  ;;  %v6555_v60 = vrot.slane %v5482_v57, %v4501_v51  ;;  %v1967_v44 = vsel %vm559_vm12, %v4900_v10, %v4972_v8  ;;  %v1873_v3 = vadd.f32 %v1871_v55, %v1845_v23 }
 0x24c   :  { %v1899_v26 = vmul.f32 %v1895_v28, %v6554_v34  ;;  %v1944_v43 = vmul.f32 %v1940_v52, %v1913_v18  ;;  %v1993_v6 = vsel %vm587_vm13, %v4934_v53, %v5014_v59  ;;  %v2065_v41 = vrot.slane %v5612_v58, %v4504_v42  ;;  %v5674_v18 = vld [vmem:[#allocation7 + $0x70] ss:$8 sm:$0x3]  ;;  %v5676_v28 = vpop.permute.xlu1 %2284  ;;  %v5678_v53 = vpop.permute.xlu0 %2311 }
 0x24d   :  { %v1943_v63 = vmul.f32 %v1939_v1, %v6555_v60  ;;  %v1900_v30 = vadd.f32 %v1898_v22, %v1872_v36  ;;  %v6556_v10 = vrot.slane %v5510_v33, %v4501_v51  ;;  %v1994_v39 = vsel %vm587_vm13, %v5014_v59, %v4974_v17  ;;  %2873 = vrot.lane.b32.xlu0 %v5158_v15, %s6558_s26 }
 0x24e   :  { %v2088_v57 = vrot.slane %v5646_v27, %v4501_v51  ;;  %v1901_v40 = vadd.f32 %v1899_v26, %v1873_v3  ;;  %v6557_v58 = vrot.slane %v5510_v33, %v4504_v42  ;;  %v2020_v55 = vsel %vm615_vm14, %v5054_v5, %v5016_v20  ;;  %2871 = vrot.lane.b32.xlu1 %v6426_v46, %s6558_s26 }
 0x24f   :  { %v1970_v8 = vmul.f32 %v1966_v45, %v6556_v10  ;;  %v2092_v17 = vrot.slane %v5646_v27, %v4504_v42  ;;  %v1945_v59 = vadd.f32 %v1943_v63, %v1900_v30  ;;  %v1997_v1 = vmul.f32 %v1993_v6, %v1980_v13  ;;  %v2164_v45 = vld [vmem:[#allocation7 + $0x72] ss:$8 sm:$0x3]  ;;  %v6560_v63 = vld [vmem:[#allocation22_spill] sm:$0xff] }
 0x250   :  { %v1971_v31 = vmul.f32 %v1967_v44, %v6557_v58  ;;  %v2021_v48 = vsel %vm615_vm14, %v5016_v20, %v5095_v37  ;;  %v1946_v5 = vadd.f32 %v1944_v43, %v1901_v40  ;;  %v1998_v33 = vmul.f32 %v1994_v39, %v1984_v61  ;;  %v5710_v23 = vpop.permute.xlu1 %2288  ;;  %v5712_v34 = vpop.permute.xlu0 %2315  ;;  %v6562_v6 = vld [vmem:[#allocation16_spill] sm:$0xff]  ;;  %v6563_v40 = vld [vmem:[#allocation19_spill] sm:$0xff] }
 0x251   :  { %v2047_v22 = vsel %vm643_vm15, %v5056_v2, %v5133_v16  ;;  %v2115_v9 = vrot.slane %v5674_v18, %v4501_v51  ;;  %v1972_v13 = vadd.f32 %v1970_v8, %v1945_v59  ;;  %v2024_v52 = vmul.f32 %v2020_v55, %v2007_v24  ;;  %2898 = vrot.lane.b32.xlu0 %v6426_v46, %s3706_s0  ;;  %v2191_v10 = vld [vmem:[#allocation7 + $0x73] ss:$8 sm:$0x3] }
 0x252   :  { %v2048_v20 = vsel %vm643_vm15, %v5133_v16, %v5097_v4  ;;  %v2119_v37 = vrot.slane %v5674_v18, %v4504_v42  ;;  %v1973_v61 = vadd.f32 %v1971_v31, %v1946_v5  ;;  %v2025_v26 = vmul.f32 %v2021_v48, %v2011_v7  ;;  %v6559_v4 = vld [vmem:[#allocation18_spill] sm:$0xff]  ;;  %v6564_v59 = vld [vmem:[#allocation23_spill] sm:$0xff]  ;;  %2875 = vrot.lane.b32.xlu1 %v6433_v29, %s6558_s26  ;;  %v6565_v5 = vld [vmem:[#allocation20_spill] sm:$0xff] }
 0x253   :  { %v2074_v2 = vsel %vm671_vm0, %v5182_v11, %v5135_v0  ;;  %v2142_v24 = vrot.slane %v5694_v35, %v4501_v51  ;;  %v1999_v27 = vadd.f32 %v1997_v1, %v1972_v13  ;;  %v2051_v36 = vmul.f32 %v2047_v22, %v2034_v32  ;;  %v6561_v11 = vld [vmem:[#allocation17_spill] sm:$0xff]  ;;  %v2218_v48 = vld [vmem:[#allocation7 + $0x74] ss:$8 sm:$0x3] }
 0x254   :  { %v2075_v16 = vsel %vm671_vm0, %v5135_v0, %v6559_v4  ;;  %v2000_v7 = vadd.f32 %v1998_v33, %v1973_v61  ;;  %v2052_v60 = vmul.f32 %v2048_v20, %v2038_v19  ;;  %v2101_v44 = vsel %vm699_vm1, %v6561_v11, %v6560_v63  ;;  %v5735_v8 = vpop.permute.xlu1 %2313  ;;  %v5737_v39 = vpop.permute.xlu0 %2340  ;;  %v6572_v11 = vld [vmem:[#allocation25_spill] sm:$0xff] }
 0x255   :  { %v2146_v3 = vrot.slane %v5694_v35, %v4504_v42  ;;  %v2026_v32 = vadd.f32 %v2024_v52, %v1999_v27  ;;  %v2078_v43 = vmul.f32 %v2074_v2, %v2061_v14  ;;  %v2102_v0 = vsel %vm699_vm1, %v6560_v63, %v6562_v6  ;;  %2902 = vrot.lane.b32.xlu0 %v6433_v29, %s3706_s0  ;;  %v6566_v52 = vld [vmem:[#allocation24_spill] sm:$0xff]  ;;  %v6571_v63 = vld [vmem:[#allocation29_spill] sm:$0xff]  ;;  %v6574_v6 = vld [vmem:[#allocation26_spill] sm:$0xff] }
 0x256   :  { %v2169_v30 = vrot.slane %v2164_v45, %v4501_v51  ;;  %v2027_v19 = vadd.f32 %v2025_v26, %v2000_v7  ;;  %v2079_v18 = vmul.f32 %v2075_v16, %v2065_v41  ;;  %v2128_v58 = vsel %vm727_vm2, %v6563_v40, %v5268_v56  ;;  %v6568_v27 = vld [vmem:[#allocation28_spill] sm:$0xff]  ;;  %2900 = vrot.lane.b32.xlu1 %v5158_v15, %s3706_s0  ;;  %s6104_s0 = sld [smem:[#allocation3]] }
 0x257   :  { %v2173_v31 = vrot.slane %v2164_v45, %v4504_v42  ;;  %v2053_v14 = vadd.f32 %v2051_v36, %v2026_v32  ;;  %v2105_v55 = vmul.f32 %v2101_v44, %v2088_v57  ;;  %v2129_v1 = vsel %vm727_vm2, %v5268_v56, %v6564_v59  ;;  %v6567_v45 = vld [vmem:[#allocation21_spill] sm:$0xff]  ;;  %v2245_v16 = vld [vmem:[#allocation7 + $0x75] ss:$8 sm:$0x3] }
 0x258   :  { %v2054_v41 = vadd.f32 %v2052_v60, %v2027_v19  ;;  %v2106_v35 = vmul.f32 %v2102_v0, %v2092_v17  ;;  %v2155_v33 = vsel %vm755_vm3, %v6565_v5, %v5388_v54  ;;  %v2196_v22 = vrot.slane %v2191_v10, %v4501_v51  ;;  %v5758_v61 = vpop.permute.xlu1 %2338  ;;  %v5760_v26 = vpop.permute.xlu0 %2365 }
 0x259   :  { %v2080_v57 = vadd.f32 %v2078_v43, %v2053_v14  ;;  %v2132_v13 = vmul.f32 %v2128_v58, %v2115_v9  ;;  %v2156_v56 = vsel %vm755_vm3, %v5388_v54, %v6566_v52  ;;  %v2200_v20 = vrot.slane %v2191_v10, %v4504_v42  ;;  %2927 = vrot.lane.b32.xlu0 %v5158_v15, %s3707_s10  ;;  %v2272_v10 = vld [vmem:[#allocation7 + $0x76] ss:$8 sm:$0x3] }
 0x25a   :  { %v2081_v2 = vadd.f32 %v2079_v18, %v2054_v41  ;;  %v2133_v17 = vmul.f32 %v2129_v1, %v2119_v37  ;;  %vm6569_vm11 = vcmask 269312   ;;  %v2223_v4 = vrot.slane %v2218_v48, %v4501_v51  ;;  %v2299_v1 = vld [vmem:[#allocation7 + $0x77] ss:$8 sm:$0x3]  ;;  %2925 = vrot.lane.b32.xlu1 %v6426_v46, %s3707_s10 }
 0x25b   :  { %v2182_v36 = vsel %vm6569_vm11, %v6568_v27, %v6567_v45  ;;  %v2107_v9 = vadd.f32 %v2105_v55, %v2080_v57  ;;  %v2159_v7 = vmul.f32 %v2155_v33, %v2142_v24  ;;  %vm6570_vm12 = vmmov %vm6569_vm11  ;;  %v2160_v60 = vmul.f32 %v2156_v56, %v2146_v3  ;;  %v2326_v56 = vld [vmem:[#allocation7 + $0x80] ss:$8 sm:$0x3] }
 0x25c   :  { %v2183_v54 = vsel %vm6570_vm12, %v6567_v45, %v5470_v25  ;;  %v2108_v37 = vadd.f32 %v2106_v35, %v2081_v2  ;;  %vm6573_vm13 = vcmask 261120   ;;  %v2227_v32 = vrot.slane %v2218_v48, %v4504_v42  ;;  %v2343_v19 = vpop.permute.xlu1 %2342  ;;  %v5781_v18 = vpop.permute.xlu0 %2369  ;;  %v2353_v45 = vld [vmem:[#allocation7 + $0x81] ss:$8 sm:$0x3] }
 0x25d   :  { %v2209_v44 = vsel %vm6573_vm13, %v6572_v11, %v6571_v63  ;;  %v2134_v43 = vadd.f32 %v2132_v13, %v2107_v9  ;;  %v2186_v24 = vmul.f32 %v2182_v36, %v2169_v30  ;;  %vm6575_vm14 = vmmov %vm6573_vm13  ;;  %v2250_v0 = vrot.slane %v2245_v16, %v4501_v51  ;;  %2952 = vrot.lane.b32.xlu0 %v6426_v46, %s3708_s12 }
 0x25e   :  { %v2210_v25 = vsel %vm6575_vm14, %v6571_v63, %v6574_v6  ;;  %v2135_v40 = vadd.f32 %v2133_v17, %v2108_v37  ;;  %v2187_v3 = vmul.f32 %v2183_v54, %v2173_v31  ;;  %vm6576_vm15 = vcmask 252928   ;;  %2929 = vrot.lane.b32.xlu1 %v6433_v29, %s3707_s10  ;;  %s6607_s10 = smov 81  }
 0x25f   :  { %v2236_v58 = vsel %vm6576_vm15, %v5552_v38, %v5514_v47  ;;  %v2254_v14 = vrot.slane %v2245_v16, %v4504_v42  ;;  %v2161_v55 = vadd.f32 %v2159_v7, %v2134_v43  ;;  %v2213_v30 = vmul.f32 %v2209_v44, %v2196_v22  ;;  %vm6577_vm0 = vmmov %vm6576_vm15  ;;  %v2407_v44 = vld [vmem:[#allocation7 + $0x83] ss:$8 sm:$0x3] }
 0x260   :  { %v2237_v59 = vsel %vm6577_vm0, %v5514_v47, %v5594_v21  ;;  %v2162_v31 = vadd.f32 %v2160_v60, %v2135_v40  ;;  %v2214_v48 = vmul.f32 %v2210_v25, %v2200_v20  ;;  %vm6578_vm1 = vcmask 244736   ;;  %v2368_v33 = vpop.permute.xlu1 %2367  ;;  %v2395_v22 = vpop.permute.xlu0 %2394 }
 0x261   :  { %v2263_v38 = vsel %vm6578_vm1, %v5554_v62, %v5634_v12  ;;  %v2277_v41 = vrot.slane %v2272_v10, %v4501_v51  ;;  %v2188_v35 = vadd.f32 %v2186_v24, %v2161_v55  ;;  %v2240_v5 = vmul.f32 %v2236_v58, %v2223_v4  ;;  %vm6579_vm2 = vmmov %vm6578_vm1  ;;  %2956 = vrot.lane.b32.xlu0 %v6433_v29, %s3708_s12 }
 0x262   :  { %v2264_v47 = vsel %vm6579_vm2, %v5634_v12, %v5596_v49  ;;  %v2281_v21 = vrot.slane %v2272_v10, %v4504_v42  ;;  %v2189_v57 = vadd.f32 %v2187_v3, %v2162_v31  ;;  %v2241_v13 = vmul.f32 %v2237_v59, %v2227_v32  ;;  %2954 = vrot.lane.b32.xlu1 %v5158_v15, %s3708_s12  ;;  %v2434_v59 = vld [vmem:[#allocation7 + $0x84] ss:$8 sm:$0x3]  ;;  %s3458_s12 = sld [smem:[#allocation3 + $0x1]] }
 0x263   :  { %vm6580_vm3 = vcmask 236544   ;;  %v2304_v62 = vrot.slane %v2299_v1, %v4501_v51  ;;  %v2215_v20 = vadd.f32 %v2213_v30, %v2188_v35  ;;  %v2267_v2 = vmul.f32 %v2263_v38, %v2250_v0 }
 0x264   :  { %v2290_v52 = vsel %vm6580_vm3, %v5676_v28, %v5636_v50  ;;  %vm6581_vm11 = vmmov %vm6580_vm3  ;;  %v2216_v49 = vadd.f32 %v2214_v48, %v2189_v57  ;;  %v2268_v12 = vmul.f32 %v2264_v47, %v2254_v14  ;;  %vm6582_vm12 = vcmask 154624   ;;  %v2420_v9 = vpop.permute.xlu0 %2419 }
 0x265   :  { %v2291_v17 = vsel %vm6581_vm11, %v5636_v50, %v5710_v23  ;;  %v2317_v28 = vsel %vm6582_vm12, %v5678_v53, %v5735_v8  ;;  %v2242_v27 = vadd.f32 %v2240_v5, %v2215_v20  ;;  %v2294_v36 = vmul.f32 %v2290_v52, %v2277_v41  ;;  %v2393_v50 = vpop.permute.xlu1 %2392  ;;  %v2380_v23 = vld [vmem:[#allocation7 + $0x82] ss:$8 sm:$0x3]  ;;  %vm6583_vm13 = vmmov %vm6582_vm12  ;;  %2981 = vrot.lane.b32.xlu0 %v5158_v15, %s6585_s27 }
 0x266   :  { %v2308_v4 = vrot.slane %v2299_v1, %v4504_v42  ;;  %v2331_v16 = vrot.slane %v2326_v56, %v4501_v51  ;;  %v2243_v7 = vadd.f32 %v2241_v13, %v2216_v49  ;;  %v2295_v54 = vmul.f32 %v2291_v17, %v2281_v21  ;;  %2979 = vrot.lane.b32.xlu1 %v6426_v46, %s6585_s27 }
 0x267   :  { %v2318_v37 = vsel %vm6583_vm13, %v5735_v8, %v5712_v34  ;;  %vm6584_vm14 = vcmask 146432   ;;  %v2269_v60 = vadd.f32 %v2267_v2, %v2242_v27  ;;  %v2321_v63 = vmul.f32 %v2317_v28, %v2304_v62  ;;  %v2461_v27 = vld [vmem:[#allocation7 + $0x85] ss:$8 sm:$0x3] }
 0x268   :  { %v2344_v53 = vsel %vm6584_vm14, %v5758_v61, %v5737_v39  ;;  %v2358_v11 = vrot.slane %v2353_v45, %v4501_v51  ;;  %v2270_v32 = vadd.f32 %v2268_v12, %v2243_v7  ;;  %v2335_v43 = vrot.slane %v2326_v56, %v4504_v42  ;;  %vm6587_vm0 = vmmov %vm6584_vm14  ;;  %v2424_v10 = vpop.permute.xlu0 %2423 }
 0x269   :  { %vm6586_vm15 = vcmask 138240   ;;  %v2385_v8 = vrot.slane %v2380_v23, %v4501_v51  ;;  %v2296_v61 = vadd.f32 %v2294_v36, %v2269_v60  ;;  %v2322_v24 = vmul.f32 %v2318_v37, %v2308_v4  ;;  %v2397_v0 = vpop.permute.xlu1 %2396  ;;  %3006 = vrot.lane.b32.xlu0 %v6426_v46, %s6590_s28 }
 0x26a   :  { %v2371_v34 = vsel %vm6586_vm15, %v5760_v26, %v2368_v33  ;;  %v2348_v6 = vmul.f32 %v2344_v53, %v2331_v16  ;;  %v2345_v25 = vsel %vm6587_vm0, %v5737_v39, %v2343_v19  ;;  %v2297_v40 = vadd.f32 %v2295_v54, %v2270_v32  ;;  %vm6589_vm2 = vmmov %vm6586_vm15  ;;  %2983 = vrot.lane.b32.xlu1 %v6433_v29, %s6585_s27  ;;  %v2488_v53 = vld [vmem:[#allocation7 + $0x86] ss:$8 sm:$0x3] }
 0x26b   :  { %v2362_v3 = vrot.slane %v2353_v45, %v4504_v42  ;;  %vm6588_vm1 = vcmask 130048   ;;  %v2412_v14 = vrot.slane %v2407_v44, %v4501_v51  ;;  %v2323_v55 = vadd.f32 %v2321_v63, %v2296_v61 }
 0x26c   :  { %v2398_v58 = vsel %vm6588_vm1, %v2393_v50, %v2395_v22  ;;  %v2375_v30 = vmul.f32 %v2371_v34, %v2358_v11  ;;  %v2372_v26 = vsel %vm6589_vm2, %v2368_v33, %v5781_v18  ;;  %v2349_v39 = vmul.f32 %v2345_v25, %v2335_v43  ;;  %v2449_v35 = vpop.permute.xlu0 %2448  ;;  %vm6591_vm3 = vmmov %vm6588_vm1 }
 0x26d   :  { %v2389_v19 = vrot.slane %v2380_v23, %v4504_v42  ;;  %v2324_v1 = vadd.f32 %v2322_v24, %v2297_v40  ;;  %v2350_v31 = vadd.f32 %v2348_v6, %v2323_v55  ;;  %v2402_v48 = vmul.f32 %v2398_v58, %v2385_v8  ;;  %v2422_v38 = vpop.permute.xlu1 %2421  ;;  %3010 = vrot.lane.b32.xlu0 %v6433_v29, %s6590_s28 }
 0x26e   :  { %v2416_v41 = vrot.slane %v2407_v44, %v4504_v42  ;;  %v2376_v5 = vmul.f32 %v2372_v26, %v2362_v3  ;;  %v2399_v18 = vsel %vm6591_vm3, %v2395_v22, %v2397_v0  ;;  %vm6592_vm11 = vcmask 121856   ;;  %3008 = vrot.lane.b32.xlu1 %v5158_v15, %s6590_s28  ;;  %v2515_v3 = vld [vmem:[#allocation7 + $0x87] ss:$8 sm:$0x3] }
 0x26f   :  { %v2425_v47 = vsel %vm6592_vm11, %v2420_v9, %v2422_v38  ;;  %vm6593_vm12 = vmmov %vm6592_vm11  ;;  %v2377_v33 = vadd.f32 %v2375_v30, %v2350_v31  ;;  %v2439_v13 = vrot.slane %v2434_v59, %v4501_v51  ;;  %v2351_v52 = vadd.f32 %v2349_v39, %v2324_v1 }
 0x270   :  { %v2426_v21 = vsel %vm6593_vm12, %v2422_v38, %v2424_v10  ;;  %v2429_v57 = vmul.f32 %v2425_v47, %v2412_v14  ;;  %v2403_v56 = vmul.f32 %v2399_v18, %v2389_v19  ;;  %v2474_v2 = vpop.permute.xlu0 %2473  ;;  %vm6594_vm13 = vcmask 113664   ;;  %v2570_v47 = vld [vmem:[#allocation7 + $0x91] ss:$8 sm:$0x3] }
 0x271   :  { %v2404_v62 = vadd.f32 %v2402_v48, %v2377_v33  ;;  %v2447_v20 = vpop.permute.xlu1 %2446  ;;  %v2378_v22 = vadd.f32 %v2376_v5, %v2351_v52  ;;  %v2443_v49 = vrot.slane %v2434_v59, %v4504_v42  ;;  %v2430_v28 = vmul.f32 %v2426_v21, %v2416_v41  ;;  %3035 = vrot.lane.b32.xlu0 %v5158_v15, %s6595_s5  ;;  %vm6596_vm14 = vmmov %vm6594_vm13  ;;  %v2542_v59 = vld [vmem:[#allocation7 + $0x90] ss:$8 sm:$0x3] }
 0x272   :  { %v2452_v17 = vsel %vm6594_vm13, %v2447_v20, %v2449_v35  ;;  %v2466_v9 = vrot.slane %v2461_v27, %v4501_v51  ;;  %3033 = vrot.lane.b32.xlu1 %v6426_v46, %s6595_s5  ;;  %v2470_v37 = vrot.slane %v2461_v27, %v4504_v42  ;;  %vm6598_vm15 = vcmask 105472   ;;  %v3450_v52 = vld [vmem:[%s6139_s4] ss:$0 sm:$0xff]  ;;  %v2599_v27 = vld [vmem:[#allocation7 + $0x92] ss:$8 sm:$0x3] }
 0x273   :  { %v2431_v12 = vadd.f32 %v2429_v57, %v2404_v62  ;;  %v2456_v45 = vmul.f32 %v2452_v17, %v2439_v13  ;;  %v2405_v36 = vadd.f32 %v2403_v56, %v2378_v22  ;;  %vm6599_vm0 = vmmov %vm6598_vm15  ;;  %v2493_v8 = vrot.slane %v2488_v53, %v4501_v51  ;;  %v3455_v13 = vld.sshfl [vmem:[#allocation2 + $0xa] sm:$0x33 pattern:$0x76325410]  ;;  %s6609_s4 = smov 80  }
 0x274   :  { %v2478_v50 = vpop.permute.xlu0 %2477  ;;  %vm6600_vm1 = vcmask 23552   ;;  %v2497_v40 = vrot.slane %v2488_v53, %v4504_v42  ;;  %v2520_v39 = vrot.slane %v2515_v3, %v4501_v51  ;;  %v2524_v19 = vrot.slane %v2515_v3, %v4504_v42 }
 0x275   :  { %v2458_v4 = vadd.f32 %v2456_v45, %v2431_v12  ;;  %v2451_v16 = vpop.permute.xlu1 %2450  ;;  %v2432_v7 = vadd.f32 %v2430_v28, %v2405_v36  ;;  %3060 = vrot.lane.b32.xlu0 %v6426_v46, %s6597_s29  ;;  %vm6602_vm2 = vmmov %vm6600_vm1  ;;  %vm6604_vm3 = vcmask 15360   ;;  %v2547_v18 = vrot.slane %v2542_v59, %v4501_v51 }
 0x276   :  { %v2453_v23 = vsel %vm6596_vm14, %v2449_v35, %v2451_v16  ;;  %3037 = vrot.lane.b32.xlu1 %v6433_v29, %s6595_s5  ;;  %vm6605_vm11 = vmmov %vm6604_vm3  ;;  %v2575_v56 = vrot.slane %v2570_v47, %v4501_v51  ;;  %vm6606_vm12 = vcmask 7168   ;;  %v2590_v22 = vcombine.high %v3455_v13, %v3455_v13 }
 0x277   :  { %v2457_v54 = vmul.f32 %v2453_v23, %v2443_v49  ;;  %v2551_v12 = vrot.slane %v2542_v59, %v4504_v42  ;;  %vm6608_vm13 = vmmov %vm6606_vm12  ;;  %v2608_v53 = vrot.slane %v2599_v27, %v4504_v42  ;;  %vm6610_vm14 = vcmask 1039360  }
 0x278   :  { %v2503_v11 = vpop.permute.xlu0 %2502 }
 0x279   :  { %v2459_v60 = vadd.f32 %v2457_v54, %v2432_v7  ;;  %v2476_v63 = vpop.permute.xlu1 %2475  ;;  %3064 = vrot.lane.b32.xlu0 %v6433_v29, %s6597_s29 }
 0x27a   :  { %v2479_v44 = vsel %vm6598_vm15, %v2474_v2, %v2476_v63  ;;  %v2480_v32 = vsel %vm6599_vm0, %v2476_v63, %v2478_v50  ;;  %3062 = vrot.lane.b32.xlu1 %v5158_v15, %s6597_s29  ;;  %v2579_v2 = vrot.slane %v2570_v47, %v4504_v42  ;;  %v2593_v50 = vmul.f32 %v3455_v13, %v2575_v56  ;;  %vm6611_vm15 = vmmov %vm6610_vm14 }
 0x27b   :  { %v2483_v43 = vmul.f32 %v2479_v44, %v2466_v9  ;;  %v2484_v34 = vmul.f32 %v2480_v32, %v2470_v37  ;;  %v2604_v37 = vrot.slane %v2599_v27, %v4501_v51  ;;  %vm6612_vm0 = vcmask 1031168  }
 0x27c   :  { %v2528_v25 = vpop.permute.xlu0 %2527  ;;  %v2594_v9 = vmul.f32 %v2590_v22, %v2579_v2  ;;  %v3280_v27 = vstv %s3458_s12 }
 0x27d   :  { %v2485_v61 = vadd.f32 %v2483_v43, %v2458_v4  ;;  %v2486_v24 = vadd.f32 %v2484_v34, %v2459_v60  ;;  %v2501_v6 = vpop.permute.xlu1 %2500  ;;  %3089 = vrot.lane.b32.xlu0 %v5158_v15, %s6601_s6  ;;  %v2643_v60 = vld [vmem:[#allocation7 + $0x93] ss:$8 sm:$0x3] }
 0x27e   :  { %v2506_v0 = vsel %vm6600_vm1, %v2501_v6, %v2503_v11  ;;  %3087 = vrot.lane.b32.xlu1 %v6426_v46, %s6601_s6  ;;  %vm6613_vm1 = vmmov %vm6612_vm0 }
 0x27f   :  { %v2510_v10 = vmul.f32 %v2506_v0, %v2493_v8  ;;  %v2648_v8 = vrot.slane %v2643_v60, %v4501_v51 }
 0x280   :  { %v2532_v55 = vpop.permute.xlu0 %2531 }
 0x281   :  { %v2512_v58 = vadd.f32 %v2510_v10, %v2485_v61  ;;  %v2505_v14 = vpop.permute.xlu1 %2504  ;;  %3114 = vrot.lane.b32.xlu0 %v6426_v46, %s6603_s30 }
 0x282   :  { %v2507_v30 = vsel %vm6602_vm2, %v2503_v11, %v2505_v14  ;;  %3091 = vrot.lane.b32.xlu1 %v6433_v29, %s6601_s6  ;;  %v2652_v14 = vrot.slane %v2643_v60, %v4504_v42  ;;  %vm6614_vm2 = vcmask 1022976  }
 0x283   :  { %v2511_v26 = vmul.f32 %v2507_v30, %v2497_v40 }
 0x284   :  { %v2557_v48 = vpop.permute.xlu0 %2556 }
 0x285   :  { %v2513_v1 = vadd.f32 %v2511_v26, %v2486_v24  ;;  %v2530_v31 = vpop.permute.xlu1 %2529  ;;  %3118 = vrot.lane.b32.xlu0 %v6433_v29, %s6603_s30  ;;  %v340_v49 = vpop.f32.mrb[0].mxu1 }
 0x286   :  { %v2533_v38 = vsel %vm6604_vm3, %v2528_v25, %v2530_v31  ;;  %v2534_v41 = vsel %vm6605_vm11, %v2530_v31, %v2532_v55  ;;  %3116 = vrot.lane.b32.xlu1 %v5158_v15, %s6603_s30  ;;  %v341_v28 = vadd.f32 %v3450_v52, %v340_v49  ;;  %v3481_v45 = vpop.f32.mrb[1].mxu1  ;;  %v2670_v55 = vld [vmem:[#allocation7 + $0x94] ss:$8 sm:$0x3]  ;;  %vm6615_vm3 = vmmov %vm6614_vm2  ;;  %vm6616_vm11 = vcmask 941056  }
 0x287   :  { %v2537_v35 = vmul.f32 %v2533_v38, %v2520_v39  ;;  %v2538_v5 = vmul.f32 %v2534_v41, %v2524_v19  ;;  %v2679_v38 = vrot.slane %v2670_v55, %v4504_v42  ;;  %v2697_v41 = vld [vmem:[#allocation7 + $0x95] ss:$8 sm:$0x3]  ;;  %v2724_v49 = vld [vmem:[#allocation7 + $0x96] ss:$8 sm:$0x3] }
 0x288   :  { %v2629_v62 = vpop.permute.xlu0 %2628  ;;  %v3453_v23 = vmul.f32 -1.442695, %v341_v28  ;;  %v2702_v13 = vrot.slane %v2697_v41, %v4501_v51 }
 0x289   :  { %v2539_v21 = vadd.f32 %v2537_v35, %v2512_v58  ;;  %v2540_v33 = vadd.f32 %v2538_v5, %v2513_v1  ;;  %v2555_v57 = vpop.permute.xlu1 %2554  ;;  %3143 = vrot.lane.b32.xlu0 %v5158_v15, %s6607_s10 }
 0x28a   :  { %v2560_v20 = vsel %vm6606_vm12, %v2555_v57, %v2557_v48  ;;  %3141 = vrot.lane.b32.xlu1 %v6426_v46, %s6607_s10  ;;  %3550 = vpow2.f32 %v3453_v23  ;;  %vm6617_vm12 = vmmov %vm6616_vm11  ;;  %v2733_v23 = vrot.slane %v2724_v49, %v4504_v42 }
 0x28b   :  { %v2564_v17 = vmul.f32 %v2560_v20, %v2547_v18 }
 0x28c   :  { %v2633_v16 = vpop.permute.xlu0 %2632 }
 0x28d   :  { %v2566_v36 = vadd.f32 %v2564_v17, %v2539_v21  ;;  %v2559_v4 = vpop.permute.xlu1 %2558  ;;  %3168 = vrot.lane.b32.xlu0 %v6426_v46, %s6609_s4  ;;  %v2706_v17 = vrot.slane %v2697_v41, %v4504_v42 }
 0x28e   :  { %v2561_v7 = vsel %vm6608_vm13, %v2557_v48, %v2559_v4  ;;  %3145 = vrot.lane.b32.xlu1 %v6433_v29, %s6607_s10  ;;  %v2675_v48 = vrot.slane %v2670_v55, %v4501_v51  ;;  %vm6618_vm13 = vcmask 932864  }
 0x28f   :  { %v2565_v54 = vmul.f32 %v2561_v7, %v2551_v12  ;;  %v2595_v32 = vadd.f32 %v2593_v50, %v2566_v36  ;;  %v2729_v50 = vrot.slane %v2724_v49, %v4501_v51  ;;  %v2751_v7 = vld [vmem:[#allocation7 + $0x97] ss:$8 sm:$0x3] }
 0x290   :  { %v2658_v44 = vpop.permute.xlu0 %2657 }
 0x291   :  { %v2567_v63 = vadd.f32 %v2565_v54, %v2540_v33  ;;  %v2631_v11 = vpop.permute.xlu1 %2630  ;;  %3172 = vrot.lane.b32.xlu0 %v6433_v29, %s6609_s4 }
 0x292   :  { %v2634_v43 = vsel %vm6610_vm14, %v2629_v62, %v2631_v11  ;;  %v2635_v34 = vsel %vm6611_vm15, %v2631_v11, %v2633_v16  ;;  %3170 = vrot.lane.b32.xlu1 %v5158_v15, %s6609_s4  ;;  %vm6619_vm14 = vmmov %vm6618_vm13  ;;  %vm6620_vm15 = vcmask 924672  }
 0x293   :  { %v2596_v61 = vadd.f32 %v2594_v9, %v2567_v63  ;;  %v2638_v24 = vmul.f32 %v2634_v43, %v2604_v37  ;;  %v2639_v6 = vmul.f32 %v2635_v34, %v2608_v53 }
 0x294   :  { %v2683_v40 = vpop.permute.xlu0 %2682  ;;  %v3551_v19 = vpop.eup %3550 }
 0x295   :  { %v2640_v25 = vadd.f32 %v2638_v24, %v2595_v32  ;;  %v2641_v0 = vadd.f32 %v2639_v6, %v2596_v61  ;;  %v2656_v10 = vpop.permute.xlu1 %2655  ;;  %3197 = vrot.lane.b32.xlu0 %v5158_v15, %s3717_s11  ;;  %v347_v1 = vadd.f32 1.0, %v3551_v19  ;;  %v2760_v6 = vrot.slane %v2751_v7, %v4504_v42 }
 0x296   :  { %v2661_v3 = vsel %vm6612_vm0, %v2656_v10, %v2658_v44  ;;  %3195 = vrot.lane.b32.xlu1 %v6426_v46, %s3717_s11  ;;  %vm6621_vm0 = vmmov %vm6620_vm15 }
 0x297   :  { %v2665_v58 = vmul.f32 %v2661_v3, %v2648_v8  ;;  %3552 = vrcp.f32 %v347_v1 }
 0x298   :  { %v2687_v39 = vpop.permute.xlu0 %2686 }
 0x299   :  { %v2667_v30 = vadd.f32 %v2665_v58, %v2640_v25  ;;  %v2660_v26 = vpop.permute.xlu1 %2659  ;;  %3222 = vrot.lane.b32.xlu0 %v6426_v46, %s3718_s3  ;;  %v2778_v25 = vld [vmem:[#allocation7 + $0xa0] ss:$8 sm:$0x3] }
 0x29a   :  { %v2662_v59 = vsel %vm6613_vm1, %v2658_v44, %v2660_v26  ;;  %3199 = vrot.lane.b32.xlu1 %v6433_v29, %s3717_s11  ;;  %v2756_v44 = vrot.slane %v2751_v7, %v4501_v51  ;;  %v2787_v55 = vrot.slane %v2778_v25, %v4504_v42  ;;  %vm6622_vm1 = vcmask 916480  }
 0x29b   :  { %v2666_v31 = vmul.f32 %v2662_v59, %v2652_v14  ;;  %v2783_v14 = vrot.slane %v2778_v25, %v4501_v51 }
 0x29c   :  { %v2712_v18 = vpop.permute.xlu0 %2711 }
 0x29d   :  { %v2668_v35 = vadd.f32 %v2666_v31, %v2641_v0  ;;  %v2685_v5 = vpop.permute.xlu1 %2684  ;;  %3226 = vrot.lane.b32.xlu0 %v6433_v29, %s3718_s3 }
 0x29e   :  { %v2688_v47 = vsel %vm6614_vm2, %v2683_v40, %v2685_v5  ;;  %v2689_v21 = vsel %vm6615_vm3, %v2685_v5, %v2687_v39  ;;  %3224 = vrot.lane.b32.xlu1 %v5158_v15, %s3718_s3  ;;  %vm6623_vm2 = vmmov %vm6622_vm1  ;;  %vm6624_vm3 = vcmask 908288   ;;  %s3721_s3 = smov [#allocation10]  }
 0x29f   :  { %v2692_v33 = vmul.f32 %v2688_v47, %v2675_v48  ;;  %v2693_v57 = vmul.f32 %v2689_v21, %v2679_v38 }
 0x2a0   :  { %v2737_v20 = vpop.permute.xlu0 %2736 }
 0x2a1   :  { %v2694_v52 = vadd.f32 %v2692_v33, %v2667_v30  ;;  %v2695_v62 = vadd.f32 %v2693_v57, %v2668_v35  ;;  %v2710_v56 = vpop.permute.xlu1 %2709  ;;  %3251 = vrot.lane.b32.xlu0 %v5158_v15, %s3719_s15  ;;  %v3553_v4 = vpop.eup %3552  ;;  %v2805_v30 = vld [vmem:[#allocation7 + $0xa1] ss:$8 sm:$0x3] }
 0x2a2   :  { %v2715_v2 = vsel %vm6616_vm11, %v2710_v56, %v2712_v18  ;;  %3249 = vrot.lane.b32.xlu1 %v6426_v46, %s3719_s15  ;;  %v3281_v9 = vmul.f32 %v3553_v4, %v3280_v27  ;;  %v2810_v38 = vrot.slane %v2805_v30, %v4501_v51  ;;  %v2814_v33 = vrot.slane %v2805_v30, %v4504_v42  ;;  %vm6625_vm11 = vmmov %vm6624_vm3 }
 0x2a3   :  { %v2719_v22 = vmul.f32 %v2715_v2, %v2702_v13 }
 0x2a4   :  { %v2741_v45 = vpop.permute.xlu0 %2740  ;;  %v3285_v63 = vrot.slane %v3281_v9, %v4501_v51  ;;  %v3304_v3 = vrot.slane %v3281_v9, %v4504_v42 }
 0x2a5   :  { %v2721_v12 = vadd.f32 %v2719_v22, %v2694_v52  ;;  %v2714_v28 = vpop.permute.xlu1 %2713 }
 0x2a6   :  { %v2716_v36 = vsel %vm6617_vm12, %v2712_v18, %v2714_v28  ;;  %3253 = vrot.lane.b32.xlu1 %v6433_v29, %s3719_s15  ;;  %3287 = vbcast.lane.b32.xlu0 %v3285_v63, 256  ;;  %vm6626_vm12 = vcmask 900096   ;;  %s3434_s15 = sshll.u32 %s3721_s3, 4  ;;  %s3435_s15 = int_to_ptr.vmem [resolvable:$true] %s3434_s15 }
 0x2a7   :  { %v2720_v16 = vmul.f32 %v2716_v36, %v2706_v17  ;;  %s3634_s11 = scalar_lea.vmem %s3435_s15, 2048  ;;  %p3639_p8 = scmp.lt.s32.totalorder %s3435_s15, %s3435_s15 }
 0x2a8   :  { %v2766_v37 = vpop.permute.xlu0 %2765  ;;  %p3635_p7 = scmp.ne.s32.totalorder %s3435_s15, %s3634_s11  ;;  %p3640_p9 = scmp.lt.s32.totalorder %s3634_s11, %s3634_s11 }
 0x2a9   :  { %v2722_v54 = vadd.f32 %v2720_v16, %v2695_v62  ;;  %v2739_v15 = vpop.permute.xlu1 %2738 }
 0x2aa   :  { %v2742_v53 = vsel %vm6618_vm13, %v2737_v20, %v2739_v15  ;;  %v2743_v60 = vsel %vm6619_vm14, %v2739_v15, %v2741_v45  ;;  %3291 = vbcast.lane.b32.xlu1 %v3285_v63, 264  ;;  %3295 = vbcast.lane.b32.xlu0 %v3285_v63, 272  ;;  %vm6627_vm13 = vcmask 891904   ;;  %vm6628_vm14 = vmmov %vm6626_vm12  ;;  %p3641_p10 = por %p3640_p9, %p3639_p8 }
 0x2ab   :  { %v2746_v46 = vmul.f32 %v2742_v53, %v2729_v50  ;;  %v2747_v11 = vmul.f32 %v2743_v60, %v2733_v23 }
 0x2ac   :  { %v2791_v8 = vpop.permute.xlu0 %2790  ;;  %p3642_p11 = pnand %p3641_p10, %p3635_p7 }
 0x2ad   :  { %v2748_v32 = vadd.f32 %v2746_v46, %v2721_v12  ;;  %v2749_v43 = vadd.f32 %v2747_v11, %v2722_v54  ;;  %v2764_v34 = vpop.permute.xlu1 %2763 }
 0x2ae   :  { %v2769_v61 = vsel %vm6620_vm15, %v2764_v34, %v2766_v37  ;;  %3299 = vbcast.lane.b32.xlu1 %v3285_v63, 280  ;;  %3306 = vbcast.lane.b32.xlu0 %v3304_v3, 256  ;;  %v2832_v34 = vld [vmem:[#allocation7 + $0xa2] ss:$8 sm:$0x3]  ;;  %vm6629_vm15 = vcmask 809984  }
 0x2af   :  { %v2773_v24 = vmul.f32 %v2769_v61, %v2756_v44 }
 0x2b0   :  { %v2795_v29 = vpop.permute.xlu0 %2794 }
 0x2b1   :  { %v2775_v0 = vadd.f32 %v2773_v24, %v2748_v32  ;;  %v2768_v10 = vpop.permute.xlu1 %2767  ;;  %v2859_v24 = vld [vmem:[#allocation7 + $0xa3] ss:$8 sm:$0x3] }
 0x2b2   :  { %v2770_v40 = vsel %vm6621_vm0, %v2766_v37, %v2768_v10  ;;  %3310 = vbcast.lane.b32.xlu1 %v3304_v3, 264  ;;  %3314 = vbcast.lane.b32.xlu0 %v3304_v3, 272  ;;  %v2864_v10 = vrot.slane %v2859_v24, %v4501_v51  ;;  %vm6630_vm0 = vmmov %vm6627_vm13 }
 0x2b3   :  { %v2774_v58 = vmul.f32 %v2770_v40, %v2760_v6  ;;  %v2837_v6 = vrot.slane %v2832_v34, %v4501_v51 }
 0x2b4   :  { %v2820_v19 = vpop.permute.xlu0 %2819 }
 0x2b5   :  { %v2776_v26 = vadd.f32 %v2774_v58, %v2749_v43  ;;  %v2793_v39 = vpop.permute.xlu1 %2792  ;;  %v2913_v58 = vld [vmem:[#allocation7 + $0xa5] ss:$8 sm:$0x3] }
 0x2b6   :  { %v2796_v59 = vsel %vm6622_vm1, %v2791_v8, %v2793_v39  ;;  %v2797_v1 = vsel %vm6623_vm2, %v2793_v39, %v2795_v29  ;;  %3318 = vbcast.lane.b32.xlu1 %v3304_v3, 280  ;;  %vm6631_vm1 = vcmask 801792   ;;  %vm6632_vm2 = vmmov %vm6629_vm15 }
 0x2b7   :  { %v2800_v31 = vmul.f32 %v2796_v59, %v2783_v14  ;;  %v2801_v48 = vmul.f32 %v2797_v1, %v2787_v55  ;;  %v2841_v55 = vrot.slane %v2832_v34, %v4504_v42  ;;  %v2868_v1 = vrot.slane %v2859_v24, %v4504_v42 }
 0x2b8   :  { %v2845_v18 = vpop.permute.xlu0 %2844 }
 0x2b9   :  { %v2802_v41 = vadd.f32 %v2800_v31, %v2775_v0  ;;  %v2803_v35 = vadd.f32 %v2801_v48, %v2776_v26  ;;  %v2818_v5 = vpop.permute.xlu1 %2817  ;;  %v2886_v0 = vld [vmem:[#allocation7 + $0xa4] ss:$8 sm:$0x3]  ;;  %v2918_v31 = vrot.slane %v2913_v58, %v4501_v51 }
 0x2ba   :  { %v2823_v47 = vsel %vm6624_vm3, %v2818_v5, %v2820_v19  ;;  %v2891_v30 = vrot.slane %v2886_v0, %v4501_v51  ;;  %vm6633_vm3 = vcmask 793600  }
 0x2bb   :  { %v2827_v21 = vmul.f32 %v2823_v47, %v2810_v38 }
 0x2bc   :  { %v2849_v52 = vpop.permute.xlu0 %2848 }
 0x2bd   :  { %v2829_v57 = vadd.f32 %v2827_v21, %v2802_v41  ;;  %v2822_v13 = vpop.permute.xlu1 %2821 }
 0x2be   :  { %v2824_v62 = vsel %vm6625_vm11, %v2820_v19, %v2822_v13  ;;  %v2940_v19 = vld [vmem:[#allocation7 + $0xa6] ss:$8 sm:$0x3]  ;;  %vm6634_vm11 = vmmov %vm6631_vm1 }
 0x2bf   :  { %v2828_v56 = vmul.f32 %v2824_v62, %v2814_v33  ;;  %v2945_v13 = vrot.slane %v2940_v19, %v4501_v51 }
 0x2c0   :  { %v2874_v22 = vpop.permute.xlu0 %2873 }
 0x2c1   :  { %v5968_v20 = vadd.f32 %v2828_v56, %v2803_v35  ;;  %v2847_v2 = vpop.permute.xlu1 %2846  ;;  %v2895_v35 = vrot.slane %v2886_v0, %v4504_v42  ;;  %v2922_v56 = vrot.slane %v2913_v58, %v4504_v42 }
 0x2c2   :  { %v2850_v25 = vsel %vm6626_vm12, %v2845_v18, %v2847_v2  ;;  %v2851_v26 = vsel %vm6628_vm14, %v2847_v2, %v2849_v52  ;;  %v2967_v18 = vld [vmem:[#allocation7 + $0xa7] ss:$8 sm:$0x3]  ;;  %v2994_v52 = vld [vmem:[#allocation7 + $0xb0] ss:$8 sm:$0x3]  ;;  %vm6635_vm12 = vmmov %vm6633_vm3 }
 0x2c3   :  { %v2854_v14 = vmul.f32 %v2850_v25, %v2837_v6  ;;  %v2855_v21 = vmul.f32 %v2851_v26, %v2841_v55  ;;  %v2949_v6 = vrot.slane %v2940_v19, %v4504_v42  ;;  %v3075_v26 = vld [vmem:[#allocation7 + $0xb3] ss:$8 sm:$0x3] }
 0x2c4   :  { %v2899_v49 = vpop.permute.xlu0 %2898 }
 0x2c5   :  { %v2872_v17 = vpop.permute.xlu1 %2871  ;;  %v2856_v47 = vadd.f32 %v2854_v14, %v2829_v57  ;;  %v2976_v14 = vrot.slane %v2967_v18, %v4504_v42 }
 0x2c6   :  { %v2877_v3 = vsel %vm6627_vm13, %v2872_v17, %v2874_v22  ;;  %vm6636_vm13 = vcmask 777216  }
 0x2c7   :  { %v2881_v59 = vmul.f32 %v2877_v3, %v2864_v10  ;;  %v3048_v3 = vld [vmem:[#allocation7 + $0xb2] ss:$8 sm:$0x3]  ;;  %vm6637_vm14 = vmmov %vm6636_vm13 }
 0x2c8   :  { %v2903_v28 = vpop.permute.xlu0 %2902 }
 0x2c9   :  { %v2876_v12 = vpop.permute.xlu1 %2875  ;;  %v2883_v17 = vadd.f32 %v2881_v59, %v2856_v47  ;;  %v3053_v59 = vrot.slane %v3048_v3, %v4501_v51 }
 0x2ca   :  { %v2878_v41 = vsel %vm6630_vm0, %v2874_v22, %v2876_v12  ;;  %v2972_v12 = vrot.slane %v2967_v18, %v4501_v51 }
 0x2cb   :  { %v2882_v22 = vmul.f32 %v2878_v41, %v2868_v1 }
 0x2cc   :  { %v2928_v27 = vpop.permute.xlu0 %2927 }
 0x2cd   :  { %v2901_v45 = vpop.permute.xlu1 %2900 }
 0x2ce   :  { %v2904_v39 = vsel %vm6629_vm15, %v2899_v49, %v2901_v45  ;;  %v2905_v62 = vsel %vm6632_vm2, %v2901_v45, %v2903_v28  ;;  %v2999_v45 = vrot.slane %v2994_v52, %v4501_v51 }
 0x2cf   :  { %v2908_v33 = vmul.f32 %v2904_v39, %v2891_v30  ;;  %v2909_v0 = vmul.f32 %v2905_v62, %v2895_v35 }
 0x2d0   :  { %v2953_v4 = vpop.permute.xlu0 %2952 }
 0x2d1   :  { %v2926_v36 = vpop.permute.xlu1 %2925  ;;  %v2910_v25 = vadd.f32 %v2908_v33, %v2883_v17 }
 0x2d2   :  { %v2931_v5 = vsel %vm6631_vm1, %v2926_v36, %v2928_v27  ;;  %v3021_v36 = vld [vmem:[#allocation7 + $0xb1] ss:$8 sm:$0x3] }
 0x2d3   :  { %v2935_v49 = vmul.f32 %v2931_v5, %v2918_v31  ;;  %v3102_v5 = vld [vmem:[#allocation7 + $0xb4] ss:$8 sm:$0x3]  ;;  %v3030_v47 = vrot.slane %v3021_v36, %v4504_v42 }
 0x2d4   :  { %v5970_v50 = vpop.permute.xlu0 %2956 }
 0x2d5   :  { %v2930_v16 = vpop.permute.xlu1 %2929  ;;  %v2937_v55 = vadd.f32 %v2935_v49, %v2910_v25 }
 0x2d6   :  { %v2932_v24 = vsel %vm6634_vm11, %v2928_v27, %v2930_v16  ;;  %v3026_v16 = vrot.slane %v3021_v36, %v4501_v51  ;;  %v3156_v36 = vld [vmem:[#allocation7 + $0xb6] ss:$8 sm:$0x3] }
 0x2d7   :  { %v2936_v30 = vmul.f32 %v2932_v24, %v2922_v56 }
 0x2d8   :  { %v5974_v9 = vpop.permute.xlu0 %2981 }
 0x2d9   :  { %v5972_v23 = vpop.permute.xlu1 %2954 }
 0x2da   :  { %v2958_v2 = vsel %vm6633_vm3, %v2953_v4, %v5972_v23  ;;  %v2857_v4 = vadd.f32 %v2855_v21, %v5968_v20  ;;  %v2959_v58 = vsel %vm6635_vm12, %v5972_v23, %v5970_v50  ;;  %v3003_v23 = vrot.slane %v2994_v52, %v4504_v42  ;;  %v3129_v52 = vld [vmem:[#allocation7 + $0xb5] ss:$8 sm:$0x3] }
 0x2db   :  { %v2962_v10 = vmul.f32 %v2958_v2, %v2945_v13  ;;  %v2963_v41 = vmul.f32 %v2959_v58, %v2949_v6  ;;  %v3084_v6 = vrot.slane %v3075_v26, %v4504_v42 }
 0x2dc   :  { %v5976_v54 = vpop.permute.xlu0 %3006 }
 0x2dd   :  { %v2980_v7 = vpop.permute.xlu1 %2979  ;;  %v2964_v31 = vadd.f32 %v2962_v10, %v2937_v55 }
 0x2de   :  { %v2985_v28 = vsel %vm1613_vm10, %v2980_v7, %v5974_v9  ;;  %v2884_v7 = vadd.f32 %v2882_v22, %v2857_v4 }
 0x2df   :  { %v2989_v20 = vmul.f32 %v2985_v28, %v2972_v12 }
 0x2e0   :  { %v5980_v37 = vpop.permute.xlu0 %3010  ;;  %v2911_v1 = vadd.f32 %v2909_v0, %v2884_v7  ;;  %v3183_v0 = vld [vmem:[#allocation7 + $0xb7] ss:$8 sm:$0x3]  ;;  %v3210_v7 = vld [vmem:[#allocation7 + $0xc0] ss:$8 sm:$0x3] }
 0x2e1   :  { %v5978_v15 = vpop.permute.xlu1 %2983  ;;  %v2991_v21 = vadd.f32 %v2989_v20, %v2964_v31 }
 0x2e2   :  { %v2986_v50 = vsel %vm1613_vm10, %v5974_v9, %v5978_v15  ;;  %vm6638_vm10 = vcmask 760832   ;;  %v3080_v15 = vrot.slane %v3075_v26, %v4501_v51 }
 0x2e3   :  { %v2990_v33 = vmul.f32 %v2986_v50, %v2976_v14  ;;  %vm6639_vm15 = vmmov %vm6638_vm10 }
 0x2e4   :  { %v5984_v60 = vpop.permute.xlu0 %3035 }
 0x2e5   :  { %v5982_v53 = vpop.permute.xlu1 %3008 }
 0x2e6   :  { %v3012_v27 = vsel %vm6636_vm13, %v5976_v54, %v5982_v53  ;;  %v3013_v18 = vsel %vm6637_vm14, %v5982_v53, %v5980_v37  ;;  %v3057_v37 = vrot.slane %v3048_v3, %v4504_v42 }
 0x2e7   :  { %v3016_v35 = vmul.f32 %v3012_v27, %v2999_v45  ;;  %v3017_v49 = vmul.f32 %v3013_v18, %v3003_v23 }
 0x2e8   :  { %v5988_v46 = vpop.permute.xlu0 %3060 }
 0x2e9   :  { %v5986_v63 = vpop.permute.xlu1 %3033  ;;  %v3018_v22 = vadd.f32 %v3016_v35, %v2991_v21 }
 0x2ea   :  { %v3039_v54 = vsel %vm1669_vm7, %v5986_v63, %v5984_v60  ;;  %v2938_v63 = vadd.f32 %v2936_v30, %v2911_v1  ;;  %v3138_v30 = vrot.slane %v3129_v52, %v4504_v42  ;;  %v3165_v1 = vrot.slane %v3156_v36, %v4504_v42 }
 0x2eb   :  { %v3043_v13 = vmul.f32 %v3039_v54, %v3026_v16 }
 0x2ec   :  { %v5992_v44 = vpop.permute.xlu0 %3064  ;;  %v2965_v17 = vadd.f32 %v2963_v41, %v2938_v63 }
 0x2ed   :  { %v5990_v11 = vpop.permute.xlu1 %3037  ;;  %v3045_v28 = vadd.f32 %v3043_v13, %v3018_v22  ;;  %v3219_v13 = vrot.slane %v3210_v7, %v4504_v42 }
 0x2ee   :  { %v3040_v2 = vsel %vm1669_vm7, %v5984_v60, %v5990_v11  ;;  %vm6640_vm7 = vcmask 670720   ;;  %v3134_v11 = vrot.slane %v3129_v52, %v4501_v51 }
 0x2ef   :  { %v3044_v45 = vmul.f32 %v3040_v2, %v3030_v47  ;;  %vm6641_vm0 = vmmov %vm6640_vm7  ;;  %v3192_v47 = vrot.slane %v3183_v0, %v4504_v42 }
 0x2f0   :  { %v5996_v43 = vpop.permute.xlu0 %3089 }
 0x2f1   :  { %v5994_v32 = vpop.permute.xlu1 %3062 }
 0x2f2   :  { %v3066_v9 = vsel %vm6638_vm10, %v5988_v46, %v5994_v32  ;;  %v3107_v46 = vrot.slane %v3102_v5, %v4501_v51  ;;  %v3067_v24 = vsel %vm6639_vm15, %v5994_v32, %v5992_v44  ;;  %v3111_v44 = vrot.slane %v3102_v5, %v4504_v42  ;;  %v3237_v5 = vld [vmem:[#allocation7 + $0xc1] ss:$8 sm:$0x3] }
 0x2f3   :  { %v3070_v12 = vmul.f32 %v3066_v9, %v3053_v59  ;;  %v3071_v27 = vmul.f32 %v3067_v24, %v3057_v37  ;;  %v3242_v52 = vrot.slane %v3237_v5, %v4501_v51 }
 0x2f4   :  { %v6000_v61 = vpop.permute.xlu0 %3114 }
 0x2f5   :  { %v5998_v8 = vpop.permute.xlu1 %3087  ;;  %v3072_v14 = vadd.f32 %v3070_v12, %v3045_v28 }
 0x2f6   :  { %v3093_v53 = vsel %vm1725_vm4, %v5998_v8, %v5996_v43  ;;  %v2992_v8 = vadd.f32 %v2990_v33, %v2965_v17 }
 0x2f7   :  { %v3097_v4 = vmul.f32 %v3093_v53, %v3080_v15 }
 0x2f8   :  { %v6007_v40 = vpop.permute.xlu0 %3118  ;;  %v3019_v58 = vadd.f32 %v3017_v49, %v2992_v8  ;;  %v3264_v8 = vstv %s6104_s0 }
 0x2f9   :  { %v6005_v29 = vpop.permute.xlu1 %3091 }
 0x2fa   :  { %v3094_v3 = vsel %vm1725_vm4, %v5996_v43, %v6005_v29  ;;  %vm6642_vm4 = vcmask 654336   ;;  %v3188_v29 = vrot.slane %v3183_v0, %v4501_v51  ;;  %v3046_v20 = vadd.f32 %v3044_v45, %v3019_v58 }
 0x2fb   :  { %v3098_v26 = vmul.f32 %v3094_v3, %v3084_v6  ;;  %vm6643_vm1 = vmmov %vm6642_vm4 }
 0x2fc   :  { %v6018_v38 = vpop.permute.xlu0 %3143  ;;  %v3073_v31 = vadd.f32 %v3071_v27, %v3046_v20  ;;  %v6644_v20 = vld [vmem:[#allocation15_spill] sm:$0xff] }
 0x2fd   :  { %v6016_v48 = vpop.permute.xlu1 %3116 }
 0x2fe   :  { %v3120_v60 = vsel %vm6640_vm7, %v6000_v61, %v6016_v48  ;;  %v3161_v61 = vrot.slane %v3156_v36, %v4501_v51  ;;  %v3121_v55 = vsel %vm6641_vm0, %v6016_v48, %v6007_v40  ;;  %v3215_v48 = vrot.slane %v3210_v7, %v4501_v51 }
 0x2ff   :  { %v3124_v16 = vmul.f32 %v3120_v60, %v3107_v46  ;;  %v3100_v9 = vadd.f32 %v3098_v26, %v3073_v31  ;;  %v3246_v36 = vrot.slane %v3237_v5, %v4504_v42 }
 0x300   :  { %v6031_v57 = vpop.permute.xlu0 %3168 }
 0x301   :  { %v6029_v34 = vpop.permute.xlu1 %3141 }
 0x302   :  { %v3147_v32 = vsel %vm1781_vm8, %v6029_v34, %v6018_v38  ;;  %v3099_v34 = vadd.f32 %v3097_v4, %v3072_v14 }
 0x303   :  { %v3151_v50 = vmul.f32 %v3147_v32, %v3134_v11 }
 0x304   :  { %v6047_v19 = vpop.permute.xlu0 %3172  ;;  %v3126_v41 = vadd.f32 %v3124_v16, %v3099_v34 }
 0x305   :  { %v3146_v39 = vpop.permute.xlu1 %3145 }
 0x306   :  { %v3148_v59 = vsel %vm1781_vm8, %v6018_v38, %v3146_v39  ;;  %v3153_v38 = vadd.f32 %v3151_v50, %v3126_v41 }
 0x307   :  { %v3152_v39 = vmul.f32 %v3148_v59, %v3138_v30 }
 0x308   :  { %v3198_v56 = vpop.permute.xlu0 %3197 }
 0x309   :  { %v3171_v62 = vpop.permute.xlu1 %3170 }
 0x30a   :  { %v3174_v43 = vsel %vm6642_vm4, %v6031_v57, %v3171_v62  ;;  %v3125_v57 = vmul.f32 %v3121_v55, %v3111_v44  ;;  %v3175_v18 = vsel %vm6643_vm1, %v3171_v62, %v6047_v19  ;;  %v3720_v55 = vmov 1966171168  }
 0x30b   :  { %v3178_v35 = vmul.f32 %v3174_v43, %v3161_v61  ;;  %v3179_v62 = vmul.f32 %v3175_v18, %v3165_v1  ;;  %v3324_v30 = vunpack.c.l.s4 %v3720_v55 }
 0x30c   :  { %v3223_v10 = vpop.permute.xlu0 %3222  ;;  %v3127_v2 = vadd.f32 %v3125_v57, %v3100_v9 }
 0x30d   :  { %v3196_v25 = vpop.permute.xlu1 %3195  ;;  %v3180_v19 = vadd.f32 %v3178_v35, %v3153_v38  ;;  %v3325_v43 = vunpack.c.0.s8 %v3324_v30 }
 0x30e   :  { %v3201_v40 = vsel %vm1837_vm9, %v3196_v25, %v3198_v56  ;;  %v3154_v17 = vadd.f32 %v3152_v39, %v3127_v2  ;;  %v3564_v2 = vld [vmem:[#allocation8 + $0x10] sm:$0xff] }
 0x30f   :  { %v3205_v15 = vmul.f32 %v3201_v40, %v3188_v29  ;;  %v3328_v34 = vsub.s32 %v3325_v43, %v6644_v20  ;;  %v3570_v43 = vld [vmem:[#allocation8 + $0x40] sm:$0xff]  ;;  %v3571_v20 = vld [vmem:[#allocation8 + $0x48] sm:$0xff] }
 0x310   :  { %v3227_v54 = vpop.permute.xlu0 %3226  ;;  %v3181_v24 = vadd.f32 %v3179_v62, %v3154_v17  ;;  %v3565_v62 = vld [vmem:[#allocation8 + $0x18] sm:$0xff]  ;;  %v3566_v17 = vld [vmem:[#allocation8 + $0x20] sm:$0xff] }
 0x311   :  { %v3200_v23 = vpop.permute.xlu1 %3199  ;;  %v3207_v22 = vadd.f32 %v3205_v15, %v3180_v19 }
 0x312   :  { %v3202_v21 = vsel %vm1837_vm9, %v3198_v56, %v3200_v23 }
 0x313   :  { %v3206_v49 = vmul.f32 %v3202_v21, %v3192_v47  ;;  %v3562_v21 = vld [vmem:[#allocation8] sm:$0xff] }
 0x314   :  { %v3252_v53 = vpop.permute.xlu0 %3251 }
 0x315   :  { %v3225_v63 = vpop.permute.xlu1 %3224  ;;  %v3208_v28 = vadd.f32 %v3206_v49, %v3181_v24  ;;  %v3567_v49 = vld [vmem:[#allocation8 + $0x28] sm:$0xff]  ;;  %v3569_v24 = vld [vmem:[#allocation8 + $0x38] sm:$0xff] }
 0x316   :  { %v3228_v33 = vsel %vm1865_vm5, %v3223_v10, %v3225_v63  ;;  %v3229_v46 = vsel %vm1865_vm5, %v3225_v63, %v3227_v54 }
 0x317   :  { %v3232_v37 = vmul.f32 %v3228_v33, %v3215_v48  ;;  %v3233_v60 = vmul.f32 %v3229_v46, %v3219_v13  ;;  %v3563_v13 = vld [vmem:[#allocation8 + $0x8] sm:$0xff] }
 0x318   :  { %v3288_v26 = vpop.permute.xlu0 %3287 }
 0x319   :  { %v3250_v12 = vpop.permute.xlu1 %3249  ;;  %v3234_v6 = vadd.f32 %v3232_v37, %v3207_v22  ;;  %v3235_v0 = vadd.f32 %v3233_v60, %v3208_v28 }
 0x31a   :  { %v3255_v56 = vsel %vm1893_vm6, %v3250_v12, %v3252_v53 }
 0x31b   :  { %v3259_v11 = vmul.f32 %v3255_v56, %v3242_v52  ;;  %v3568_v56 = vld [vmem:[#allocation8 + $0x30] sm:$0xff] }
 0x31c   :  { %v3296_v40 = vpop.permute.xlu0 %3295 }
 0x31d   :  { %v3261_v45 = vadd.f32 %v3259_v11, %v3234_v6  ;;  %v3254_v4 = vpop.permute.xlu1 %3253 }
 0x31e   :  { %v3256_v25 = vsel %vm1893_vm6, %v3252_v53, %v3254_v4 }
 0x31f   :  { %v3265_v10 = vadd.f32 %v3264_v8, %v3261_v45  ;;  %v3260_v3 = vmul.f32 %v3256_v25, %v3246_v36 }
 0x320   :  { %v3307_v53 = vpop.permute.xlu0 %3306 }
 0x321   :  { %v3456_v44 = vmul.f32 -1.442695, %v3265_v10  ;;  %v3262_v32 = vadd.f32 %v3260_v3, %v3235_v0  ;;  %v3292_v50 = vpop.permute.xlu1 %3291 }
 0x323   :  { %3554 = vpow2.f32 %v3456_v44  ;;  %v3266_v61 = vadd.f32 %v3264_v8, %v3262_v32 }
 0x325   :  { %v3457_v58 = vmul.f32 -1.442695, %v3266_v61  ;;  %v3300_v48 = vpop.permute.xlu1 %3299 }
 0x327   :  { %3556 = vpow2.f32 %v3457_v58 }
 0x329   :  { %v3311_v46 = vpop.permute.xlu1 %3310 }
 0x32d   :  { %v3555_v14 = vpop.eup %3554 }
 0x32e   :  { %v3273_v27 = vadd.f32 1.0, %v3555_v14  ;;  %v3315_v14 = vpop.permute.xlu0 %3314 }
 0x330   :  { %3558 = vrcp.f32 %v3273_v27  ;;  %v3319_v27 = vpop.permute.xlu1 %3318 }
 0x331   :  { %v3557_v16 = vpop.eup %3556 }
 0x332   :  { %v3274_v7 = vadd.f32 1.0, %v3557_v16 }
 0x334   :  { %3560 = vrcp.f32 %v3274_v7 }
 0x33a   :  { %v3559_v29 = vpop.eup %3558 }
 0x33e   :  { %v3561_v23 = vpop.eup %3560 }
 0x33f   :  { %v3322_v54 = vcombine.low %v3559_v29, %v3561_v23  ;;  %v3574_v23 = vld [vmem:[#allocation8 + $0x60] sm:$0xff] }
 0x341   :  { %v3329_v59 = vrot.slane %v3322_v54, %v3328_v34 }
 0x343   :  { %v3337_v1 = vrot.slane %v3329_v59, %v3328_v34  ;;  %v3330_v31 = vcombine.high %v3329_v59, %v3329_v59  ;;  %v3575_v59 = vld [vmem:[#allocation8 + $0x68] sm:$0xff] }
 0x345   :  { %v3348_v41 = vrot.slane %v3337_v1, %v4501_v51  ;;  %v3352_v57 = vrot.slane %v3337_v1, %v4504_v42  ;;  %v3344_v35 = vrot.slane %v3330_v31, %v3328_v34  ;;  %v3572_v34 = vld [vmem:[#allocation8 + $0x50] sm:$0xff]  ;;  %v3577_v31 = vld [vmem:[#allocation8 + $0x78] sm:$0xff] }
 0x347   :  { %v3365_v5 = vmul.f32 %v3348_v41, %v3288_v26  ;;  %v3366_v18 = vmul.f32 %v3352_v57, %v3288_v26  ;;  %v3367_v47 = vmul.f32 %v3348_v41, %v3292_v50  ;;  %v3368_v9 = vmul.f32 %v3352_v57, %v3292_v50  ;;  %v3573_v26 = vld [vmem:[#allocation8 + $0x58] sm:$0xff] }
 0x348   :  { %v3369_v38 = vmul.f32 %v3348_v41, %v3296_v40  ;;  %v3370_v39 = vmul.f32 %v3352_v57, %v3296_v40  ;;  %v3371_v15 = vmul.f32 %v3348_v41, %v3300_v48  ;;  %v3372_v63 = vmul.f32 %v3352_v57, %v3300_v48  ;;  %v3576_v40 = vld [vmem:[#allocation8 + $0x70] sm:$0xff] }
 0x349   :  { %v3381_v33 = vmul.f32 %v3562_v21, %v3365_v5  ;;  %v3382_v52 = vmul.f32 %v3563_v13, %v3366_v18  ;;  %v3383_v19 = vmul.f32 %v3564_v2, %v3367_v47  ;;  %v3384_v37 = vmul.f32 %v3565_v62, %v3368_v9 }
 0x34a   :  { %v3385_v22 = vmul.f32 %v3566_v17, %v3369_v38  ;;  %v3386_v12 = vmul.f32 %v3567_v49, %v3370_v39  ;;  %v3387_v36 = vmul.f32 %v3568_v56, %v3371_v15  ;;  %v3388_v6 = vmul.f32 %v3569_v24, %v3372_v63 }
 0x34b   :  { %v3397_v60 = vadd.f32 %v3562_v21, %v3381_v33  ;;  %v3398_v11 = vadd.f32 %v3563_v13, %v3382_v52  ;;  %v3399_v8 = vadd.f32 %v3564_v2, %v3383_v19  ;;  %v3400_v28 = vadd.f32 %v3565_v62, %v3384_v37 }
 0x34c   :  { %v3401_v45 = vadd.f32 %v3566_v17, %v3385_v22  ;;  %v3402_v4 = vadd.f32 %v3567_v49, %v3386_v12  ;;  %v3403_v25 = vadd.f32 %v3568_v56, %v3387_v36  ;;  %v3404_v0 = vadd.f32 %v3569_v24, %v3388_v6 }
 0x34d   :  { %3413 = vst [vmem:[#allocation10] sm:$0xff] %v3397_v60  ;;  %3414 = vst [vmem:[#allocation10 + $0x8] sm:$0xff] %v3398_v11  ;;  %v3356_v10 = vrot.slane %v3344_v35, %v4501_v51  ;;  %v3360_v3 = vrot.slane %v3344_v35, %v4504_v42 }
 0x34e   :  { %3415 = vst [vmem:[#allocation10 + $0x10] sm:$0xff] %v3399_v8  ;;  %3416 = vst [vmem:[#allocation10 + $0x18] sm:$0xff] %v3400_v28 }
 0x34f   :  { %3417 = vst [vmem:[#allocation10 + $0x20] sm:$0xff] %v3401_v45  ;;  %3418 = vst [vmem:[#allocation10 + $0x28] sm:$0xff] %v3402_v4  ;;  %v3373_v44 = vmul.f32 %v3356_v10, %v3307_v53  ;;  %v3374_v32 = vmul.f32 %v3360_v3, %v3307_v53  ;;  %v3375_v61 = vmul.f32 %v3356_v10, %v3311_v46 }
 0x350   :  { %3419 = vst [vmem:[#allocation10 + $0x30] sm:$0xff] %v3403_v25  ;;  %3420 = vst [vmem:[#allocation10 + $0x38] sm:$0xff] %v3404_v0  ;;  %v3376_v58 = vmul.f32 %v3360_v3, %v3311_v46  ;;  %v3377_v16 = vmul.f32 %v3356_v10, %v3315_v14  ;;  %v3378_v7 = vmul.f32 %v3360_v3, %v3315_v14 }
 0x351   :  { %v3379_v55 = vmul.f32 %v3356_v10, %v3319_v27  ;;  %v3380_v30 = vmul.f32 %v3360_v3, %v3319_v27  ;;  %v3389_v29 = vmul.f32 %v3570_v43, %v3373_v44  ;;  %v3390_v51 = vmul.f32 %v3571_v20, %v3374_v32 }
 0x352   :  { %v3391_v42 = vmul.f32 %v3572_v34, %v3375_v61  ;;  %v3392_v50 = vmul.f32 %v3573_v26, %v3376_v58  ;;  %v3393_v54 = vmul.f32 %v3574_v23, %v3377_v16  ;;  %v3394_v1 = vmul.f32 %v3575_v59, %v3378_v7 }
 0x353   :  { %v3395_v48 = vmul.f32 %v3576_v40, %v3379_v55  ;;  %v3396_v41 = vmul.f32 %v3577_v31, %v3380_v30  ;;  %v3405_v57 = vadd.f32 %v3570_v43, %v3389_v29  ;;  %v3406_v35 = vadd.f32 %v3571_v20, %v3390_v51 }
 0x354   :  { %v3407_v5 = vadd.f32 %v3572_v34, %v3391_v42  ;;  %v3408_v18 = vadd.f32 %v3573_v26, %v3392_v50  ;;  %v3409_v47 = vadd.f32 %v3574_v23, %v3393_v54  ;;  %v3410_v9 = vadd.f32 %v3575_v59, %v3394_v1 }
 0x355   :  { %v3411_v38 = vadd.f32 %v3576_v40, %v3395_v48  ;;  %v3412_v39 = vadd.f32 %v3577_v31, %v3396_v41  ;;  %3421 = vst [vmem:[#allocation10 + $0x40] sm:$0xff] %v3405_v57  ;;  %3422 = vst [vmem:[#allocation10 + $0x48] sm:$0xff] %v3406_v35 }
 0x356   :  { %3423 = vst [vmem:[#allocation10 + $0x50] sm:$0xff] %v3407_v5  ;;  %3424 = vst [vmem:[#allocation10 + $0x58] sm:$0xff] %v3408_v18 }
 0x357   :  { %3425 = vst [vmem:[#allocation10 + $0x60] sm:$0xff] %v3409_v47  ;;  %3426 = vst [vmem:[#allocation10 + $0x68] sm:$0xff] %v3410_v9 }
 0x358   :  { %3427 = vst [vmem:[#allocation10 + $0x70] sm:$0xff] %v3411_v38  ;;  %3428 = vst [vmem:[#allocation10 + $0x78] sm:$0xff] %v3412_v39 }
 0x359   :  { %3645 = shalt.err (!%p3642_p11)
}
 0x35a   :  { %s3646_s2 = scalar_lea.hbm %s6142_s7, 2048 }
 0x35b   :  { %p3647_p12 = scmp.ne.s32.totalorder %s6142_s7, %s3646_s2  ;;  %p3650_p13 = scmp.lt.u32.totalorder %s3646_s2, %s6142_s7 }
 0x35d   :  { %p3652_p0 = pnand %p3650_p13, %p3647_p12 }
 0x35f   :  { %3655 = shalt.err (!%p3652_p0)
}
 0x360   :  { %s6645_s20 = smov 256  }
 0x361   :  { %3440 = dma.vmem_to_hbm [thread:$0]  %s3435_s15, 2048, %s6142_s7, [#allocation5], %s6645_s20, %s6645_s20, %s3667_s16  }
 0x362   :  { %3662 = dma.done.wait [#allocation5], 2048  }
 0x363   :  { %3663 = vsyncadd [#allocation5], 4294965248 }
 0x364   :  { %3444 = vsyncpa [#allocation4], 1 }
 0x365   :  { %3445 = vsyncpa [#allocation9], 1 }
 0x366   :  { %3446 = vsyncpa [#allocation5], 1 }
 0x367   :  { %3447 = vsyncpa [#allocation6], 1 }

</bundles_post_ra>
